<compile_context>
chip_gen: v7x
topology: tpu7x:2x2x1
jax: 0.10.0
libtpu: 0.0.40
codegen_flags: <defaults>
</compile_context>

<pallas_src>
import numpy as np
import jax
import jax.numpy as jnp
from jax.experimental import pallas as pl
from jax.experimental.pallas import tpu as pltpu


# ----------------------------------------------------------------------------
# Fused kernel: LSTM recurrence + linear decoder + CRF (llh) + Viterbi decode.
# Whole (tiny) problem lives in VMEM/registers; time-major layout inside.
# ----------------------------------------------------------------------------
def make_lstmcrf_kernel(nlayers, T, Bp, E, H, L):
    f32 = jnp.float32

    def kernel(*refs):
        emb_ref = refs[0]                      # (T*Bp, E)  f32, time-major rows
        lens_ref = refs[1]                     # (Bp, 1)    i32 (0 for pad rows)
        tags_ref = refs[2]                     # (T, Bp, 1) i32
        layer_refs = refs[3:3 + 3 * nlayers]   # per layer: wihT, whhT, bias
        base = 3 + 3 * nlayers
        wdec_ref, bdec_ref, start_ref, end_ref, trans_ref = refs[base:base + 5]
        llh_ref = refs[base + 5]               # (1, 1)  f32
        tags_out_ref = refs[base + 6]          # (Bp, T) i32

        # ---- hoisted loop-invariant loads ------------------------------------
        lens = lens_ref[...]                                         # (Bp,1) i32
        wih = [layer_refs[3 * l + 0][...] for l in range(nlayers)]   # (in,4H)
        whh = [layer_refs[3 * l + 1][...] for l in range(nlayers)]   # (H,4H)
        bias = [layer_refs[3 * l + 2][...] for l in range(nlayers)]  # (1,4H)
        wdec = wdec_ref[...]                                         # (H, L)
        bdec = bdec_ref[...]                                         # (1, L)
        start = start_ref[...]                                       # (1, L)
        end = end_ref[...]                                           # (1, L)
        trans = trans_ref[...]                                       # (L, L)
        exp_trans = jnp.exp(trans)           # hoisted (log-space matmul trick)
        lane_L = jax.lax.broadcasted_iota(jnp.int32, (Bp, L), 1)

        # ---- phase 1: layer-0 input projection, all timesteps, one MXU matmul
        # Kept register-resident; per-step slices are (Bp,*) tile-aligned.
        xproj = jnp.dot(emb_ref[...], wih[0], preferred_element_type=f32) + bias[0]

        hs = [jnp.zeros((Bp, H), f32) for _ in range(nlayers)]
        cs = [jnp.zeros((Bp, H), f32) for _ in range(nlayers)]

        num = alpha = vscore = oh_prev = last_oh = None
        bp_hist = [None] * T          # int32 backpointers, register-resident

        # ---- phase 2: fully unrolled fused time loop --------------------------
        for t in range(T):
            msk = (lens > t).astype(f32)          # (Bp,1): 1 for real tokens
            x = None
            for l in range(nlayers):
                h_prev, c_prev = hs[l], cs[l]
                if l == 0:
                    gates = (xproj[t * Bp:(t + 1) * Bp, :]
                             + jnp.dot(h_prev, whh[0], preferred_element_type=f32))
                else:
                    gates = (jnp.dot(x, wih[l], preferred_element_type=f32)
                             + jnp.dot(h_prev, whh[l], preferred_element_type=f32)
                             + bias[l])
                i_g = jax.nn.sigmoid(gates[:, 0 * H:1 * H])
                f_g = jax.nn.sigmoid(gates[:, 1 * H:2 * H])
                g_g = jnp.tanh(gates[:, 2 * H:3 * H])
                o_g = jax.nn.sigmoid(gates[:, 3 * H:4 * H])
                c_new = f_g * c_prev + i_g * g_g
                h_new = o_g * jnp.tanh(c_new)
                # packed-sequence semantics: padded steps do not update state
                hs[l] = msk * h_new + (1.0 - msk) * h_prev
                cs[l] = msk * c_new + (1.0 - msk) * c_prev
                x = h_new * msk                   # pad_packed zero-pads output

            # linear decoder (fused per step; tiny MXU matmul)
            e_t = jnp.dot(x, wdec, preferred_element_type=f32) + bdec   # (Bp,L)
            oh_cur = (lane_L == tags_ref[t]).astype(f32)                # (Bp,L)

            if t == 0:
                # requires every real sequence to have length >= 1 (as torchcrf)
                alpha = start + e_t
                vscore = alpha
                num = jnp.sum(alpha * oh_cur, axis=1, keepdims=True)
                oh_prev = oh_cur
                last_oh = oh_cur
            else:
                m = msk
                # --- numerator (score of the given tag sequence), one reduce
                trans_row = jnp.dot(oh_prev, trans, preferred_element_type=f32)
                step_sc = jnp.sum((trans_row + e_t) * oh_cur, axis=1, keepdims=True)
                num = num + m * step_sc
                last_oh = m * oh_cur + (1.0 - m) * last_oh
                oh_prev = oh_cur

                # --- log-partition: max-shifted exp + one small MXU matmul
                mrow = jnp.max(alpha, axis=1, keepdims=True)
                p = jnp.exp(alpha - mrow)
                s = jnp.dot(p, exp_trans, preferred_element_type=f32)
                alpha = m * (mrow + jnp.log(s) + e_t) + (1.0 - m) * alpha

                # --- Viterbi: running max over previous tag i (no cross-lane
                # reductions); strict > keeps the first-maximal index.
                best_v = vscore[:, 0:1] + trans[0:1, :]          # prev tag 0
                bp = jnp.zeros((Bp, L), jnp.int32)
                for i in range(1, L):
                    cand = vscore[:, i:i + 1] + trans[i:i + 1, :]
                    upd = cand > best_v
                    best_v = jnp.where(upd, cand, best_v)
                    bp = jnp.where(upd, i, bp)
                bp_hist[t] = bp
                vscore = m * (best_v + e_t) + (1.0 - m) * vscore

        # ---- phase 3: CRF log-likelihood (sum over real batch rows only) -----
        num = num + jnp.sum(end * last_oh, axis=1, keepdims=True)
        xf = alpha + end
        mxf = jnp.max(xf, axis=1, keepdims=True)
        denom = mxf + jnp.log(jnp.sum(jnp.exp(xf - mxf), axis=1, keepdims=True))
        valid_b = (lens > 0).astype(f32)          # excludes batch-pad rows
        llh_ref[...] = jnp.sum((num - denom) * valid_b, axis=0, keepdims=True)

        # ---- phase 4: Viterbi backtrack (unrolled, int32 backpointers) -------
        vfinal = vscore + end
        fmx = jnp.max(vfinal, axis=1, keepdims=True)
        last_tag = jnp.min(jnp.where(vfinal == fmx, lane_L, L),
                           axis=1, keepdims=True)                 # (Bp,1) i32
        seq_end = lens - 1                                         # (Bp,1)
        lane_T = jax.lax.broadcasted_iota(jnp.int32, (Bp, T), 1)

        best = jnp.zeros((Bp, T), jnp.int32)
        cur = jnp.zeros((Bp, 1), jnp.int32)
        for t in range(T - 1, -1, -1):
            if t + 1 < T and bp_hist[t + 1] is not None:
                h_next = bp_hist[t + 1]                            # (Bp,L) i32
                prev = jnp.max(jnp.where(lane_L == cur, h_next, 0),
                               axis=1, keepdims=True)              # integer path
                new = jnp.where(seq_end == t, last_tag,
                                jnp.where(t < seq_end, prev, cur))
            else:
                new = jnp.where(seq_end == t, last_tag, cur)
            best = jnp.where(lane_T == t, new, best)
            cur = new
        tags_out_ref[...] = best

    return kernel


# ----------------------------------------------------------------------------
# Forward wrapper: embedding gather, batch pad to sublane multiple, layout
# transposes, one fused pallas_call.
# ----------------------------------------------------------------------------
def lstmcrf_forward(x, y, lens, params, nlayers, H, L):
    B, T = x.shape
    E = params['emb'].shape[1]
    Bp = ((B + 7) // 8) * 8          # pad batch to sublane height (8)
    pad_b = Bp - B

    x_p = jnp.pad(x, ((0, pad_b), (0, 0)))                 # pad token id 0
    y_p = jnp.pad(y, ((0, pad_b), (0, 0)), constant_values=L)  # pad label
    lens_p = jnp.pad(lens, (0, pad_b))                     # pad rows: len 0

    emb = params['emb'][x_p]                               # (Bp, T, E)
    # TODO(synk): self.drop is identity here (eval-mode dropout); training-mode
    # dropout masks are not reproduced.
    emb_flat = jnp.transpose(emb, (1, 0, 2)).reshape(T * Bp, E).astype(jnp.float32)
    lens2d = lens_p.reshape(Bp, 1).astype(jnp.int32)

    # CRF mask (y < num_tags) == (t < len) for right-padded sequences; derived
    # in-kernel from lens, so only tags are passed.
    num_tags = L
    y_ = (y_p - (y_p > num_tags - 1).astype(y_p.dtype)).astype(jnp.int32)
    tags_tm = jnp.transpose(y_)[:, :, None]                # (T, Bp, 1)

    layer_args = []
    in_dim = E
    for l in range(nlayers):
        w_ih = params[f'w_ih_{l}']                         # (4H, in_dim), gates i,f,g,o
        w_hh = params[f'w_hh_{l}']                         # (4H, H)
        b = (params[f'b_ih_{l}'] + params[f'b_hh_{l}']).reshape(1, 4 * H)
        layer_args += [w_ih.T, w_hh.T, b]
        in_dim = H
    wdec = params['w_dec'].T                               # (H, L)
    bdec = params['b_dec'].reshape(1, L)
    start = params['crf_start'].reshape(1, L)
    end = params['crf_end'].reshape(1, L)
    trans = params['crf_trans']

    n_in = 3 + 3 * nlayers + 5
    llh, best_padded = pl.pallas_call(
        make_lstmcrf_kernel(nlayers, T, Bp, E, H, L),
        out_shape=(jax.ShapeDtypeStruct((1, 1), jnp.float32),
                   jax.ShapeDtypeStruct((Bp, T), jnp.int32)),
        in_specs=[pl.BlockSpec(memory_space=pltpu.MemorySpace.VMEM)] * n_in,
        out_specs=(pl.BlockSpec(memory_space=pltpu.MemorySpace.VMEM),
                   pl.BlockSpec(memory_space=pltpu.MemorySpace.VMEM)),
    )(emb_flat, lens2d, tags_tm, *layer_args, wdec, bdec, start, end, trans)

    return -llh[0, 0], best_padded[:B]


if __name__ == "__main__":
    # TODO(synk): GloVe pretrained embeddings replaced by a deterministic random
    # table (no_glove path); no file loading.
    V, E, H, nlayers, L = 50, 16, 32, 1, 5
    B, T = 2, 8
    pad_symbol = 0

    key = jax.random.PRNGKey(0)
    ks = jax.random.split(key, 16)

    def init(k, shape):
        return 0.1 * jax.random.normal(k, shape, dtype=jnp.float32)

    params = {}
    emb_tbl = init(ks[0], (V, E))
    params['emb'] = emb_tbl.at[pad_symbol].set(0.0)        # padding_idx row = 0
    in_dim = E
    for l in range(nlayers):
        params[f'w_ih_{l}'] = init(ks[1 + 4 * l], (4 * H, in_dim))
        params[f'w_hh_{l}'] = init(ks[2 + 4 * l], (4 * H, H))
        params[f'b_ih_{l}'] = init(ks[3 + 4 * l], (4 * H,))
        params[f'b_hh_{l}'] = init(ks[4 + 4 * l], (4 * H,))
        in_dim = H
    params['w_dec'] = init(ks[10], (L, H))
    params['b_dec'] = init(ks[11], (L,))
    params['crf_start'] = init(ks[12], (L,))
    params['crf_end'] = init(ks[13], (L,))
    params['crf_trans'] = init(ks[14], (L, L))

    # deterministic example inputs (right-padded sequences)
    lens_np = np.array([8, 5], dtype=np.int32)
    valid = np.arange(T)[None, :] < lens_np[:, None]
    kx, ky = jax.random.split(ks[15])
    x_np = np.array(jax.random.randint(kx, (B, T), 1, V))
    y_np = np.array(jax.random.randint(ky, (B, T), 0, L))
    x_np = np.where(valid, x_np, pad_symbol).astype(np.int32)
    y_np = np.where(valid, y_np, L).astype(np.int32)       # pad label id >= num_tags

    x = jnp.asarray(x_np)
    y = jnp.asarray(y_np)
    lens = jnp.asarray(lens_np)

    fwd = jax.jit(lambda x_, y_, l_: lstmcrf_forward(x_, y_, l_, params, nlayers, H, L))
    neg_llh, best_padded = fwd(x, y, lens)
    neg_llh = jax.block_until_ready(neg_llh)
    best_padded = jax.block_until_ready(best_padded)

    # flatten like list(chain.from_iterable(best_seqs)) — lens are static here
    best_seqs = jnp.concatenate([best_padded[b, :int(lens_np[b])] for b in range(B)])
    jax.block_until_ready(best_seqs)
    print("KERNEL_OK")
</pallas_src>

<mosaic_0001>
module attributes {stable_mosaic.version = 11 : i64} {
  func.func @kernel(%arg0: memref<64x16xf32, #tpu.memory_space<vmem>>, %arg1: memref<8x1xi32, #tpu.memory_space<vmem>>, %arg2: memref<8x8x1xi32, #tpu.memory_space<vmem>>, %arg3: memref<16x128xf32, #tpu.memory_space<vmem>>, %arg4: memref<32x128xf32, #tpu.memory_space<vmem>>, %arg5: memref<1x128xf32, #tpu.memory_space<vmem>>, %arg6: memref<32x5xf32, #tpu.memory_space<vmem>>, %arg7: memref<1x5xf32, #tpu.memory_space<vmem>>, %arg8: memref<1x5xf32, #tpu.memory_space<vmem>>, %arg9: memref<1x5xf32, #tpu.memory_space<vmem>>, %arg10: memref<5x5xf32, #tpu.memory_space<vmem>>, %arg11: memref<1x1xf32, #tpu.memory_space<vmem>>, %arg12: memref<8x8xi32, #tpu.memory_space<vmem>>) attributes {dimension_semantics = [], scalar_prefetch = 0 : i64, scratch_operands = 0 : i64, tpu.core_type = #tpu.core_type<tc>} {
    %c0 = arith.constant 0 : index
    %c0_0 = arith.constant 0 : index
    %0 = vector.load %arg1[%c0, %c0_0] : memref<8x1xi32, #tpu.memory_space<vmem>>, vector<8x1xi32>
    %c0_1 = arith.constant 0 : index
    %c0_2 = arith.constant 0 : index
    %1 = vector.load %arg3[%c0_1, %c0_2] : memref<16x128xf32, #tpu.memory_space<vmem>>, vector<16x128xf32>
    %c0_3 = arith.constant 0 : index
    %c0_4 = arith.constant 0 : index
    %2 = vector.load %arg4[%c0_3, %c0_4] : memref<32x128xf32, #tpu.memory_space<vmem>>, vector<32x128xf32>
    %c0_5 = arith.constant 0 : index
    %c0_6 = arith.constant 0 : index
    %3 = vector.load %arg5[%c0_5, %c0_6] : memref<1x128xf32, #tpu.memory_space<vmem>>, vector<1x128xf32>
    %c0_7 = arith.constant 0 : index
    %c0_8 = arith.constant 0 : index
    %4 = vector.load %arg6[%c0_7, %c0_8] : memref<32x5xf32, #tpu.memory_space<vmem>>, vector<32x5xf32>
    %c0_9 = arith.constant 0 : index
    %c0_10 = arith.constant 0 : index
    %5 = vector.load %arg7[%c0_9, %c0_10] : memref<1x5xf32, #tpu.memory_space<vmem>>, vector<1x5xf32>
    %c0_11 = arith.constant 0 : index
    %c0_12 = arith.constant 0 : index
    %6 = vector.load %arg8[%c0_11, %c0_12] : memref<1x5xf32, #tpu.memory_space<vmem>>, vector<1x5xf32>
    %c0_13 = arith.constant 0 : index
    %c0_14 = arith.constant 0 : index
    %7 = vector.load %arg9[%c0_13, %c0_14] : memref<1x5xf32, #tpu.memory_space<vmem>>, vector<1x5xf32>
    %c0_15 = arith.constant 0 : index
    %c0_16 = arith.constant 0 : index
    %8 = vector.load %arg10[%c0_15, %c0_16] : memref<5x5xf32, #tpu.memory_space<vmem>>, vector<5x5xf32>
    %9 = math.exp %8 : vector<5x5xf32>
    %10 = tpu.iota {dimensions = array<i32: 1>} : vector<8x5xi32>
    %c0_17 = arith.constant 0 : index
    %c0_18 = arith.constant 0 : index
    %11 = vector.load %arg0[%c0_17, %c0_18] : memref<64x16xf32, #tpu.memory_space<vmem>>, vector<64x16xf32>
    %cst = arith.constant dense<0.000000e+00> : vector<64x128xf32>
    %12 = tpu.matmul %11, %1, %cst {dimension_numbers = #tpu.dot_dimension_numbers<[1], [0], [0], [1], [0, 0, 1, 1], [], []>} : vector<64x16xf32>, vector<16x128xf32>, vector<64x128xf32> -> vector<64x128xf32>
    %13 = vector.broadcast %3 : vector<1x128xf32> to vector<64x128xf32>
    %14 = arith.addf %12, %13 : vector<64x128xf32>
    %cst_19 = arith.constant 0.000000e+00 : f32
    %15 = vector.broadcast %cst_19 : f32 to vector<8x32xf32>
    %cst_20 = arith.constant 0.000000e+00 : f32
    %16 = vector.broadcast %cst_20 : f32 to vector<8x32xf32>
    %c0_i32 = arith.constant 0 : i32
    %17 = vector.broadcast %c0_i32 : i32 to vector<8x1xi32>
    %18 = arith.cmpi sgt, %0, %17 : vector<8x1xi32>
    %19 = arith.extui %18 : vector<8x1xi1> to vector<8x1xi32>
    %20 = arith.sitofp %19 : vector<8x1xi32> to vector<8x1xf32>
    %21 = vector.extract_strided_slice %14 {offsets = [0, 0], sizes = [8, 128], strides = [1, 1]} : vector<64x128xf32> to vector<8x128xf32>
    %cst_21 = arith.constant dense<0.000000e+00> : vector<8x128xf32>
    %22 = tpu.matmul %15, %2, %cst_21 {dimension_numbers = #tpu.dot_dimension_numbers<[1], [0], [0], [1], [0, 0, 1, 1], [], []>} : vector<8x32xf32>, vector<32x128xf32>, vector<8x128xf32> -> vector<8x128xf32>
    %23 = arith.addf %21, %22 : vector<8x128xf32>
    %24 = vector.extract_strided_slice %23 {offsets = [0, 0], sizes = [8, 32], strides = [1, 1]} : vector<8x128xf32> to vector<8x32xf32>
    %25 = arith.negf %24 : vector<8x32xf32>
    %26 = math.exp %25 : vector<8x32xf32>
    %cst_22 = arith.constant 1.000000e+00 : f32
    %27 = vector.broadcast %cst_22 : f32 to vector<8x32xf32>
    %28 = arith.addf %27, %26 : vector<8x32xf32>
    %29 = arith.divf %27, %28 : vector<8x32xf32>
    %30 = vector.extract_strided_slice %23 {offsets = [0, 32], sizes = [8, 32], strides = [1, 1]} : vector<8x128xf32> to vector<8x32xf32>
    %31 = arith.negf %30 : vector<8x32xf32>
    %32 = math.exp %31 : vector<8x32xf32>
    %cst_23 = arith.constant 1.000000e+00 : f32
    %33 = vector.broadcast %cst_23 : f32 to vector<8x32xf32>
    %34 = arith.addf %33, %32 : vector<8x32xf32>
    %35 = arith.divf %33, %34 : vector<8x32xf32>
    %36 = vector.extract_strided_slice %23 {offsets = [0, 64], sizes = [8, 32], strides = [1, 1]} : vector<8x128xf32> to vector<8x32xf32>
    %37 = math.tanh %36 : vector<8x32xf32>
    %38 = vector.extract_strided_slice %23 {offsets = [0, 96], sizes = [8, 32], strides = [1, 1]} : vector<8x128xf32> to vector<8x32xf32>
    %39 = arith.negf %38 : vector<8x32xf32>
    %40 = math.exp %39 : vector<8x32xf32>
    %cst_24 = arith.constant 1.000000e+00 : f32
    %41 = vector.broadcast %cst_24 : f32 to vector<8x32xf32>
    %42 = arith.addf %41, %40 : vector<8x32xf32>
    %43 = arith.divf %41, %42 : vector<8x32xf32>
    %44 = arith.mulf %35, %16 : vector<8x32xf32>
    %45 = arith.mulf %29, %37 : vector<8x32xf32>
    %46 = arith.addf %44, %45 : vector<8x32xf32>
    %47 = math.tanh %46 : vector<8x32xf32>
    %48 = arith.mulf %43, %47 : vector<8x32xf32>
    %49 = vector.broadcast %20 : vector<8x1xf32> to vector<8x32xf32>
    %50 = arith.mulf %49, %48 : vector<8x32xf32>
    %cst_25 = arith.constant 1.000000e+00 : f32
    %51 = vector.broadcast %cst_25 : f32 to vector<8x1xf32>
    %52 = arith.subf %51, %20 : vector<8x1xf32>
    %53 = vector.broadcast %52 : vector<8x1xf32> to vector<8x32xf32>
    %54 = arith.mulf %53, %15 : vector<8x32xf32>
    %55 = arith.addf %50, %54 : vector<8x32xf32>
    %56 = vector.broadcast %20 : vector<8x1xf32> to vector<8x32xf32>
    %57 = arith.mulf %56, %46 : vector<8x32xf32>
    %cst_26 = arith.constant 1.000000e+00 : f32
    %58 = vector.broadcast %cst_26 : f32 to vector<8x1xf32>
    %59 = arith.subf %58, %20 : vector<8x1xf32>
    %60 = vector.broadcast %59 : vector<8x1xf32> to vector<8x32xf32>
    %61 = arith.mulf %60, %16 : vector<8x32xf32>
    %62 = arith.addf %57, %61 : vector<8x32xf32>
    %63 = vector.broadcast %20 : vector<8x1xf32> to vector<8x32xf32>
    %64 = arith.mulf %48, %63 : vector<8x32xf32>
    %cst_27 = arith.constant dense<0.000000e+00> : vector<8x5xf32>
    %65 = tpu.matmul %64, %4, %cst_27 {dimension_numbers = #tpu.dot_dimension_numbers<[1], [0], [0], [1], [0, 0, 1, 1], [], []>} : vector<8x32xf32>, vector<32x5xf32>, vector<8x5xf32> -> vector<8x5xf32>
    %66 = vector.broadcast %5 : vector<1x5xf32> to vector<8x5xf32>
    %67 = arith.addf %65, %66 : vector<8x5xf32>
    %c0_28 = arith.constant 0 : index
    %c0_29 = arith.constant 0 : index
    %c0_30 = arith.constant 0 : index
    %68 = vector.load %arg2[%c0_28, %c0_29, %c0_30] : memref<8x8x1xi32, #tpu.memory_space<vmem>>, vector<1x8x1xi32>
    %69 = vector.shape_cast %68 : vector<1x8x1xi32> to vector<8x1xi32>
    %70 = vector.broadcast %69 : vector<8x1xi32> to vector<8x5xi32>
    %71 = arith.cmpi eq, %10, %70 : vector<8x5xi32>
    %72 = arith.extui %71 : vector<8x5xi1> to vector<8x5xi32>
    %73 = arith.sitofp %72 : vector<8x5xi32> to vector<8x5xf32>
    %74 = vector.broadcast %6 : vector<1x5xf32> to vector<8x5xf32>
    %75 = arith.addf %74, %67 : vector<8x5xf32>
    %76 = arith.mulf %75, %73 : vector<8x5xf32>
    %cst_31 = arith.constant dense<0.000000e+00> : vector<8xf32>
    %77 = vector.multi_reduction <add>, %76, %cst_31 [1] : vector<8x5xf32> to vector<8xf32>
    %78 = vector.shape_cast %77 : vector<8xf32> to vector<8x1xf32>
    %c1_i32 = arith.constant 1 : i32
    %79 = vector.broadcast %c1_i32 : i32 to vector<8x1xi32>
    %80 = arith.cmpi sgt, %0, %79 : vector<8x1xi32>
    %81 = arith.extui %80 : vector<8x1xi1> to vector<8x1xi32>
    %82 = arith.sitofp %81 : vector<8x1xi32> to vector<8x1xf32>
    %83 = vector.extract_strided_slice %14 {offsets = [8, 0], sizes = [8, 128], strides = [1, 1]} : vector<64x128xf32> to vector<8x128xf32>
    %cst_32 = arith.constant dense<0.000000e+00> : vector<8x128xf32>
    %84 = tpu.matmul %55, %2, %cst_32 {dimension_numbers = #tpu.dot_dimension_numbers<[1], [0], [0], [1], [0, 0, 1, 1], [], []>} : vector<8x32xf32>, vector<32x128xf32>, vector<8x128xf32> -> vector<8x128xf32>
    %85 = arith.addf %83, %84 : vector<8x128xf32>
    %86 = vector.extract_strided_slice %85 {offsets = [0, 0], sizes = [8, 32], strides = [1, 1]} : vector<8x128xf32> to vector<8x32xf32>
    %87 = arith.negf %86 : vector<8x32xf32>
    %88 = math.exp %87 : vector<8x32xf32>
    %cst_33 = arith.constant 1.000000e+00 : f32
    %89 = vector.broadcast %cst_33 : f32 to vector<8x32xf32>
    %90 = arith.addf %89, %88 : vector<8x32xf32>
    %91 = arith.divf %89, %90 : vector<8x32xf32>
    %92 = vector.extract_strided_slice %85 {offsets = [0, 32], sizes = [8, 32], strides = [1, 1]} : vector<8x128xf32> to vector<8x32xf32>
    %93 = arith.negf %92 : vector<8x32xf32>
    %94 = math.exp %93 : vector<8x32xf32>
    %cst_34 = arith.constant 1.000000e+00 : f32
    %95 = vector.broadcast %cst_34 : f32 to vector<8x32xf32>
    %96 = arith.addf %95, %94 : vector<8x32xf32>
    %97 = arith.divf %95, %96 : vector<8x32xf32>
    %98 = vector.extract_strided_slice %85 {offsets = [0, 64], sizes = [8, 32], strides = [1, 1]} : vector<8x128xf32> to vector<8x32xf32>
    %99 = math.tanh %98 : vector<8x32xf32>
    %100 = vector.extract_strided_slice %85 {offsets = [0, 96], sizes = [8, 32], strides = [1, 1]} : vector<8x128xf32> to vector<8x32xf32>
    %101 = arith.negf %100 : vector<8x32xf32>
    %102 = math.exp %101 : vector<8x32xf32>
    %cst_35 = arith.constant 1.000000e+00 : f32
    %103 = vector.broadcast %cst_35 : f32 to vector<8x32xf32>
    %104 = arith.addf %103, %102 : vector<8x32xf32>
    %105 = arith.divf %103, %104 : vector<8x32xf32>
    %106 = arith.mulf %97, %62 : vector<8x32xf32>
    %107 = arith.mulf %91, %99 : vector<8x32xf32>
    %108 = arith.addf %106, %107 : vector<8x32xf32>
    %109 = math.tanh %108 : vector<8x32xf32>
    %110 = arith.mulf %105, %109 : vector<8x32xf32>
    %111 = vector.broadcast %82 : vector<8x1xf32> to vector<8x32xf32>
    %112 = arith.mulf %111, %110 : vector<8x32xf32>
    %cst_36 = arith.constant 1.000000e+00 : f32
    %113 = vector.broadcast %cst_36 : f32 to vector<8x1xf32>
    %114 = arith.subf %113, %82 : vector<8x1xf32>
    %115 = vector.broadcast %114 : vector<8x1xf32> to vector<8x32xf32>
    %116 = arith.mulf %115, %55 : vector<8x32xf32>
    %117 = arith.addf %112, %116 : vector<8x32xf32>
    %118 = vector.broadcast %82 : vector<8x1xf32> to vector<8x32xf32>
    %119 = arith.mulf %118, %108 : vector<8x32xf32>
    %cst_37 = arith.constant 1.000000e+00 : f32
    %120 = vector.broadcast %cst_37 : f32 to vector<8x1xf32>
    %121 = arith.subf %120, %82 : vector<8x1xf32>
    %122 = vector.broadcast %121 : vector<8x1xf32> to vector<8x32xf32>
    %123 = arith.mulf %122, %62 : vector<8x32xf32>
    %124 = arith.addf %119, %123 : vector<8x32xf32>
    %125 = vector.broadcast %82 : vector<8x1xf32> to vector<8x32xf32>
    %126 = arith.mulf %110, %125 : vector<8x32xf32>
    %cst_38 = arith.constant dense<0.000000e+00> : vector<8x5xf32>
    %127 = tpu.matmul %126, %4, %cst_38 {dimension_numbers = #tpu.dot_dimension_numbers<[1], [0], [0], [1], [0, 0, 1, 1], [], []>} : vector<8x32xf32>, vector<32x5xf32>, vector<8x5xf32> -> vector<8x5xf32>
    %128 = vector.broadcast %5 : vector<1x5xf32> to vector<8x5xf32>
    %129 = arith.addf %127, %128 : vector<8x5xf32>
    %c1 = arith.constant 1 : index
    %c0_39 = arith.constant 0 : index
    %c0_40 = arith.constant 0 : index
    %130 = vector.load %arg2[%c1, %c0_39, %c0_40] : memref<8x8x1xi32, #tpu.memory_space<vmem>>, vector<1x8x1xi32>
    %131 = vector.shape_cast %130 : vector<1x8x1xi32> to vector<8x1xi32>
    %132 = vector.broadcast %131 : vector<8x1xi32> to vector<8x5xi32>
    %133 = arith.cmpi eq, %10, %132 : vector<8x5xi32>
    %134 = arith.extui %133 : vector<8x5xi1> to vector<8x5xi32>
    %135 = arith.sitofp %134 : vector<8x5xi32> to vector<8x5xf32>
    %cst_41 = arith.constant dense<0.000000e+00> : vector<8x5xf32>
    %136 = tpu.matmul %73, %8, %cst_41 {dimension_numbers = #tpu.dot_dimension_numbers<[1], [0], [0], [1], [0, 0, 1, 1], [], []>} : vector<8x5xf32>, vector<5x5xf32>, vector<8x5xf32> -> vector<8x5xf32>
    %137 = arith.addf %136, %129 : vector<8x5xf32>
    %138 = arith.mulf %137, %135 : vector<8x5xf32>
    %cst_42 = arith.constant dense<0.000000e+00> : vector<8xf32>
    %139 = vector.multi_reduction <add>, %138, %cst_42 [1] : vector<8x5xf32> to vector<8xf32>
    %140 = vector.shape_cast %139 : vector<8xf32> to vector<8x1xf32>
    %141 = arith.mulf %82, %140 : vector<8x1xf32>
    %142 = arith.addf %78, %141 : vector<8x1xf32>
    %143 = vector.broadcast %82 : vector<8x1xf32> to vector<8x5xf32>
    %144 = arith.mulf %143, %135 : vector<8x5xf32>
    %cst_43 = arith.constant 1.000000e+00 : f32
    %145 = vector.broadcast %cst_43 : f32 to vector<8x1xf32>
    %146 = arith.subf %145, %82 : vector<8x1xf32>
    %147 = vector.broadcast %146 : vector<8x1xf32> to vector<8x5xf32>
    %148 = arith.mulf %147, %73 : vector<8x5xf32>
    %149 = arith.addf %144, %148 : vector<8x5xf32>
    %cst_44 = arith.constant dense<0xFF800000> : vector<8xf32>
    %150 = vector.multi_reduction <maximumf>, %75, %cst_44 [1] : vector<8x5xf32> to vector<8xf32>
    %151 = vector.shape_cast %150 : vector<8xf32> to vector<8x1xf32>
    %152 = vector.broadcast %151 : vector<8x1xf32> to vector<8x5xf32>
    %153 = arith.subf %75, %152 : vector<8x5xf32>
    %154 = math.exp %153 : vector<8x5xf32>
    %cst_45 = arith.constant dense<0.000000e+00> : vector<8x5xf32>
    %155 = tpu.matmul %154, %9, %cst_45 {dimension_numbers = #tpu.dot_dimension_numbers<[1], [0], [0], [1], [0, 0, 1, 1], [], []>} : vector<8x5xf32>, vector<5x5xf32>, vector<8x5xf32> -> vector<8x5xf32>
    %156 = math.log %155 : vector<8x5xf32>
    %157 = vector.broadcast %151 : vector<8x1xf32> to vector<8x5xf32>
    %158 = arith.addf %157, %156 : vector<8x5xf32>
    %159 = arith.addf %158, %129 : vector<8x5xf32>
    %160 = vector.broadcast %82 : vector<8x1xf32> to vector<8x5xf32>
    %161 = arith.mulf %160, %159 : vector<8x5xf32>
    %cst_46 = arith.constant 1.000000e+00 : f32
    %162 = vector.broadcast %cst_46 : f32 to vector<8x1xf32>
    %163 = arith.subf %162, %82 : vector<8x1xf32>
    %164 = vector.broadcast %163 : vector<8x1xf32> to vector<8x5xf32>
    %165 = arith.mulf %164, %75 : vector<8x5xf32>
    %166 = arith.addf %161, %165 : vector<8x5xf32>
    %167 = vector.extract_strided_slice %75 {offsets = [0, 0], sizes = [8, 1], strides = [1, 1]} : vector<8x5xf32> to vector<8x1xf32>
    %168 = vector.extract_strided_slice %8 {offsets = [0, 0], sizes = [1, 5], strides = [1, 1]} : vector<5x5xf32> to vector<1x5xf32>
    %169 = vector.broadcast %167 : vector<8x1xf32> to vector<8x5xf32>
    %170 = vector.broadcast %168 : vector<1x5xf32> to vector<8x5xf32>
    %171 = arith.addf %169, %170 : vector<8x5xf32>
    %c0_i32_47 = arith.constant 0 : i32
    %172 = vector.broadcast %c0_i32_47 : i32 to vector<8x5xi32>
    %173 = vector.extract_strided_slice %75 {offsets = [0, 1], sizes = [8, 1], strides = [1, 1]} : vector<8x5xf32> to vector<8x1xf32>
    %174 = vector.extract_strided_slice %8 {offsets = [1, 0], sizes = [1, 5], strides = [1, 1]} : vector<5x5xf32> to vector<1x5xf32>
    %175 = vector.broadcast %173 : vector<8x1xf32> to vector<8x5xf32>
    %176 = vector.broadcast %174 : vector<1x5xf32> to vector<8x5xf32>
    %177 = arith.addf %175, %176 : vector<8x5xf32>
    %178 = arith.cmpf ogt, %177, %171 : vector<8x5xf32>
    %179 = arith.select %178, %177, %171 : vector<8x5xi1>, vector<8x5xf32>
    %c1_i32_48 = arith.constant 1 : i32
    %180 = vector.broadcast %c1_i32_48 : i32 to vector<8x5xi32>
    %181 = arith.select %178, %180, %172 : vector<8x5xi1>, vector<8x5xi32>
    %182 = vector.extract_strided_slice %75 {offsets = [0, 2], sizes = [8, 1], strides = [1, 1]} : vector<8x5xf32> to vector<8x1xf32>
    %183 = vector.extract_strided_slice %8 {offsets = [2, 0], sizes = [1, 5], strides = [1, 1]} : vector<5x5xf32> to vector<1x5xf32>
    %184 = vector.broadcast %182 : vector<8x1xf32> to vector<8x5xf32>
    %185 = vector.broadcast %183 : vector<1x5xf32> to vector<8x5xf32>
    %186 = arith.addf %184, %185 : vector<8x5xf32>
    %187 = arith.cmpf ogt, %186, %179 : vector<8x5xf32>
    %188 = arith.select %187, %186, %179 : vector<8x5xi1>, vector<8x5xf32>
    %c2_i32 = arith.constant 2 : i32
    %189 = vector.broadcast %c2_i32 : i32 to vector<8x5xi32>
    %190 = arith.select %187, %189, %181 : vector<8x5xi1>, vector<8x5xi32>
    %191 = vector.extract_strided_slice %75 {offsets = [0, 3], sizes = [8, 1], strides = [1, 1]} : vector<8x5xf32> to vector<8x1xf32>
    %192 = vector.extract_strided_slice %8 {offsets = [3, 0], sizes = [1, 5], strides = [1, 1]} : vector<5x5xf32> to vector<1x5xf32>
    %193 = vector.broadcast %191 : vector<8x1xf32> to vector<8x5xf32>
    %194 = vector.broadcast %192 : vector<1x5xf32> to vector<8x5xf32>
    %195 = arith.addf %193, %194 : vector<8x5xf32>
    %196 = arith.cmpf ogt, %195, %188 : vector<8x5xf32>
    %197 = arith.select %196, %195, %188 : vector<8x5xi1>, vector<8x5xf32>
    %c3_i32 = arith.constant 3 : i32
    %198 = vector.broadcast %c3_i32 : i32 to vector<8x5xi32>
    %199 = arith.select %196, %198, %190 : vector<8x5xi1>, vector<8x5xi32>
    %200 = vector.extract_strided_slice %75 {offsets = [0, 4], sizes = [8, 1], strides = [1, 1]} : vector<8x5xf32> to vector<8x1xf32>
    %201 = vector.extract_strided_slice %8 {offsets = [4, 0], sizes = [1, 5], strides = [1, 1]} : vector<5x5xf32> to vector<1x5xf32>
    %202 = vector.broadcast %200 : vector<8x1xf32> to vector<8x5xf32>
    %203 = vector.broadcast %201 : vector<1x5xf32> to vector<8x5xf32>
    %204 = arith.addf %202, %203 : vector<8x5xf32>
    %205 = arith.cmpf ogt, %204, %197 : vector<8x5xf32>
    %206 = arith.select %205, %204, %197 : vector<8x5xi1>, vector<8x5xf32>
    %c4_i32 = arith.constant 4 : i32
    %207 = vector.broadcast %c4_i32 : i32 to vector<8x5xi32>
    %208 = arith.select %205, %207, %199 : vector<8x5xi1>, vector<8x5xi32>
    %209 = arith.addf %206, %129 : vector<8x5xf32>
    %210 = vector.broadcast %82 : vector<8x1xf32> to vector<8x5xf32>
    %211 = arith.mulf %210, %209 : vector<8x5xf32>
    %cst_49 = arith.constant 1.000000e+00 : f32
    %212 = vector.broadcast %cst_49 : f32 to vector<8x1xf32>
    %213 = arith.subf %212, %82 : vector<8x1xf32>
    %214 = vector.broadcast %213 : vector<8x1xf32> to vector<8x5xf32>
    %215 = arith.mulf %214, %75 : vector<8x5xf32>
    %216 = arith.addf %211, %215 : vector<8x5xf32>
    %c2_i32_50 = arith.constant 2 : i32
    %217 = vector.broadcast %c2_i32_50 : i32 to vector<8x1xi32>
    %218 = arith.cmpi sgt, %0, %217 : vector<8x1xi32>
    %219 = arith.extui %218 : vector<8x1xi1> to vector<8x1xi32>
    %220 = arith.sitofp %219 : vector<8x1xi32> to vector<8x1xf32>
    %221 = vector.extract_strided_slice %14 {offsets = [16, 0], sizes = [8, 128], strides = [1, 1]} : vector<64x128xf32> to vector<8x128xf32>
    %cst_51 = arith.constant dense<0.000000e+00> : vector<8x128xf32>
    %222 = tpu.matmul %117, %2, %cst_51 {dimension_numbers = #tpu.dot_dimension_numbers<[1], [0], [0], [1], [0, 0, 1, 1], [], []>} : vector<8x32xf32>, vector<32x128xf32>, vector<8x128xf32> -> vector<8x128xf32>
    %223 = arith.addf %221, %222 : vector<8x128xf32>
    %224 = vector.extract_strided_slice %223 {offsets = [0, 0], sizes = [8, 32], strides = [1, 1]} : vector<8x128xf32> to vector<8x32xf32>
    %225 = arith.negf %224 : vector<8x32xf32>
    %226 = math.exp %225 : vector<8x32xf32>
    %cst_52 = arith.constant 1.000000e+00 : f32
    %227 = vector.broadcast %cst_52 : f32 to vector<8x32xf32>
    %228 = arith.addf %227, %226 : vector<8x32xf32>
    %229 = arith.divf %227, %228 : vector<8x32xf32>
    %230 = vector.extract_strided_slice %223 {offsets = [0, 32], sizes = [8, 32], strides = [1, 1]} : vector<8x128xf32> to vector<8x32xf32>
    %231 = arith.negf %230 : vector<8x32xf32>
    %232 = math.exp %231 : vector<8x32xf32>
    %cst_53 = arith.constant 1.000000e+00 : f32
    %233 = vector.broadcast %cst_53 : f32 to vector<8x32xf32>
    %234 = arith.addf %233, %232 : vector<8x32xf32>
    %235 = arith.divf %233, %234 : vector<8x32xf32>
    %236 = vector.extract_strided_slice %223 {offsets = [0, 64], sizes = [8, 32], strides = [1, 1]} : vector<8x128xf32> to vector<8x32xf32>
    %237 = math.tanh %236 : vector<8x32xf32>
    %238 = vector.extract_strided_slice %223 {offsets = [0, 96], sizes = [8, 32], strides = [1, 1]} : vector<8x128xf32> to vector<8x32xf32>
    %239 = arith.negf %238 : vector<8x32xf32>
    %240 = math.exp %239 : vector<8x32xf32>
    %cst_54 = arith.constant 1.000000e+00 : f32
    %241 = vector.broadcast %cst_54 : f32 to vector<8x32xf32>
    %242 = arith.addf %241, %240 : vector<8x32xf32>
    %243 = arith.divf %241, %242 : vector<8x32xf32>
    %244 = arith.mulf %235, %124 : vector<8x32xf32>
    %245 = arith.mulf %229, %237 : vector<8x32xf32>
    %246 = arith.addf %244, %245 : vector<8x32xf32>
    %247 = math.tanh %246 : vector<8x32xf32>
    %248 = arith.mulf %243, %247 : vector<8x32xf32>
    %249 = vector.broadcast %220 : vector<8x1xf32> to vector<8x32xf32>
    %250 = arith.mulf %249, %248 : vector<8x32xf32>
    %cst_55 = arith.constant 1.000000e+00 : f32
    %251 = vector.broadcast %cst_55 : f32 to vector<8x1xf32>
    %252 = arith.subf %251, %220 : vector<8x1xf32>
    %253 = vector.broadcast %252 : vector<8x1xf32> to vector<8x32xf32>
    %254 = arith.mulf %253, %117 : vector<8x32xf32>
    %255 = arith.addf %250, %254 : vector<8x32xf32>
    %256 = vector.broadcast %220 : vector<8x1xf32> to vector<8x32xf32>
    %257 = arith.mulf %256, %246 : vector<8x32xf32>
    %cst_56 = arith.constant 1.000000e+00 : f32
    %258 = vector.broadcast %cst_56 : f32 to vector<8x1xf32>
    %259 = arith.subf %258, %220 : vector<8x1xf32>
    %260 = vector.broadcast %259 : vector<8x1xf32> to vector<8x32xf32>
    %261 = arith.mulf %260, %124 : vector<8x32xf32>
    %262 = arith.addf %257, %261 : vector<8x32xf32>
    %263 = vector.broadcast %220 : vector<8x1xf32> to vector<8x32xf32>
    %264 = arith.mulf %248, %263 : vector<8x32xf32>
    %cst_57 = arith.constant dense<0.000000e+00> : vector<8x5xf32>
    %265 = tpu.matmul %264, %4, %cst_57 {dimension_numbers = #tpu.dot_dimension_numbers<[1], [0], [0], [1], [0, 0, 1, 1], [], []>} : vector<8x32xf32>, vector<32x5xf32>, vector<8x5xf32> -> vector<8x5xf32>
    %266 = vector.broadcast %5 : vector<1x5xf32> to vector<8x5xf32>
    %267 = arith.addf %265, %266 : vector<8x5xf32>
    %c2 = arith.constant 2 : index
    %c0_58 = arith.constant 0 : index
    %c0_59 = arith.constant 0 : index
    %268 = vector.load %arg2[%c2, %c0_58, %c0_59] : memref<8x8x1xi32, #tpu.memory_space<vmem>>, vector<1x8x1xi32>
    %269 = vector.shape_cast %268 : vector<1x8x1xi32> to vector<8x1xi32>
    %270 = vector.broadcast %269 : vector<8x1xi32> to vector<8x5xi32>
    %271 = arith.cmpi eq, %10, %270 : vector<8x5xi32>
    %272 = arith.extui %271 : vector<8x5xi1> to vector<8x5xi32>
    %273 = arith.sitofp %272 : vector<8x5xi32> to vector<8x5xf32>
    %cst_60 = arith.constant dense<0.000000e+00> : vector<8x5xf32>
    %274 = tpu.matmul %135, %8, %cst_60 {dimension_numbers = #tpu.dot_dimension_numbers<[1], [0], [0], [1], [0, 0, 1, 1], [], []>} : vector<8x5xf32>, vector<5x5xf32>, vector<8x5xf32> -> vector<8x5xf32>
    %275 = arith.addf %274, %267 : vector<8x5xf32>
    %276 = arith.mulf %275, %273 : vector<8x5xf32>
    %cst_61 = arith.constant dense<0.000000e+00> : vector<8xf32>
    %277 = vector.multi_reduction <add>, %276, %cst_61 [1] : vector<8x5xf32> to vector<8xf32>
    %278 = vector.shape_cast %277 : vector<8xf32> to vector<8x1xf32>
    %279 = arith.mulf %220, %278 : vector<8x1xf32>
    %280 = arith.addf %142, %279 : vector<8x1xf32>
    %281 = vector.broadcast %220 : vector<8x1xf32> to vector<8x5xf32>
    %282 = arith.mulf %281, %273 : vector<8x5xf32>
    %cst_62 = arith.constant 1.000000e+00 : f32
    %283 = vector.broadcast %cst_62 : f32 to vector<8x1xf32>
    %284 = arith.subf %283, %220 : vector<8x1xf32>
    %285 = vector.broadcast %284 : vector<8x1xf32> to vector<8x5xf32>
    %286 = arith.mulf %285, %149 : vector<8x5xf32>
    %287 = arith.addf %282, %286 : vector<8x5xf32>
    %cst_63 = arith.constant dense<0xFF800000> : vector<8xf32>
    %288 = vector.multi_reduction <maximumf>, %166, %cst_63 [1] : vector<8x5xf32> to vector<8xf32>
    %289 = vector.shape_cast %288 : vector<8xf32> to vector<8x1xf32>
    %290 = vector.broadcast %289 : vector<8x1xf32> to vector<8x5xf32>
    %291 = arith.subf %166, %290 : vector<8x5xf32>
    %292 = math.exp %291 : vector<8x5xf32>
    %cst_64 = arith.constant dense<0.000000e+00> : vector<8x5xf32>
    %293 = tpu.matmul %292, %9, %cst_64 {dimension_numbers = #tpu.dot_dimension_numbers<[1], [0], [0], [1], [0, 0, 1, 1], [], []>} : vector<8x5xf32>, vector<5x5xf32>, vector<8x5xf32> -> vector<8x5xf32>
    %294 = math.log %293 : vector<8x5xf32>
    %295 = vector.broadcast %289 : vector<8x1xf32> to vector<8x5xf32>
    %296 = arith.addf %295, %294 : vector<8x5xf32>
    %297 = arith.addf %296, %267 : vector<8x5xf32>
    %298 = vector.broadcast %220 : vector<8x1xf32> to vector<8x5xf32>
    %299 = arith.mulf %298, %297 : vector<8x5xf32>
    %cst_65 = arith.constant 1.000000e+00 : f32
    %300 = vector.broadcast %cst_65 : f32 to vector<8x1xf32>
    %301 = arith.subf %300, %220 : vector<8x1xf32>
    %302 = vector.broadcast %301 : vector<8x1xf32> to vector<8x5xf32>
    %303 = arith.mulf %302, %166 : vector<8x5xf32>
    %304 = arith.addf %299, %303 : vector<8x5xf32>
    %305 = vector.extract_strided_slice %216 {offsets = [0, 0], sizes = [8, 1], strides = [1, 1]} : vector<8x5xf32> to vector<8x1xf32>
    %306 = vector.extract_strided_slice %8 {offsets = [0, 0], sizes = [1, 5], strides = [1, 1]} : vector<5x5xf32> to vector<1x5xf32>
    %307 = vector.broadcast %305 : vector<8x1xf32> to vector<8x5xf32>
    %308 = vector.broadcast %306 : vector<1x5xf32> to vector<8x5xf32>
    %309 = arith.addf %307, %308 : vector<8x5xf32>
    %c0_i32_66 = arith.constant 0 : i32
    %310 = vector.broadcast %c0_i32_66 : i32 to vector<8x5xi32>
    %311 = vector.extract_strided_slice %216 {offsets = [0, 1], sizes = [8, 1], strides = [1, 1]} : vector<8x5xf32> to vector<8x1xf32>
    %312 = vector.extract_strided_slice %8 {offsets = [1, 0], sizes = [1, 5], strides = [1, 1]} : vector<5x5xf32> to vector<1x5xf32>
    %313 = vector.broadcast %311 : vector<8x1xf32> to vector<8x5xf32>
    %314 = vector.broadcast %312 : vector<1x5xf32> to vector<8x5xf32>
    %315 = arith.addf %313, %314 : vector<8x5xf32>
    %316 = arith.cmpf ogt, %315, %309 : vector<8x5xf32>
    %317 = arith.select %316, %315, %309 : vector<8x5xi1>, vector<8x5xf32>
    %c1_i32_67 = arith.constant 1 : i32
    %318 = vector.broadcast %c1_i32_67 : i32 to vector<8x5xi32>
    %319 = arith.select %316, %318, %310 : vector<8x5xi1>, vector<8x5xi32>
    %320 = vector.extract_strided_slice %216 {offsets = [0, 2], sizes = [8, 1], strides = [1, 1]} : vector<8x5xf32> to vector<8x1xf32>
    %321 = vector.extract_strided_slice %8 {offsets = [2, 0], sizes = [1, 5], strides = [1, 1]} : vector<5x5xf32> to vector<1x5xf32>
    %322 = vector.broadcast %320 : vector<8x1xf32> to vector<8x5xf32>
    %323 = vector.broadcast %321 : vector<1x5xf32> to vector<8x5xf32>
    %324 = arith.addf %322, %323 : vector<8x5xf32>
    %325 = arith.cmpf ogt, %324, %317 : vector<8x5xf32>
    %326 = arith.select %325, %324, %317 : vector<8x5xi1>, vector<8x5xf32>
    %c2_i32_68 = arith.constant 2 : i32
    %327 = vector.broadcast %c2_i32_68 : i32 to vector<8x5xi32>
    %328 = arith.select %325, %327, %319 : vector<8x5xi1>, vector<8x5xi32>
    %329 = vector.extract_strided_slice %216 {offsets = [0, 3], sizes = [8, 1], strides = [1, 1]} : vector<8x5xf32> to vector<8x1xf32>
    %330 = vector.extract_strided_slice %8 {offsets = [3, 0], sizes = [1, 5], strides = [1, 1]} : vector<5x5xf32> to vector<1x5xf32>
    %331 = vector.broadcast %329 : vector<8x1xf32> to vector<8x5xf32>
    %332 = vector.broadcast %330 : vector<1x5xf32> to vector<8x5xf32>
    %333 = arith.addf %331, %332 : vector<8x5xf32>
    %334 = arith.cmpf ogt, %333, %326 : vector<8x5xf32>
    %335 = arith.select %334, %333, %326 : vector<8x5xi1>, vector<8x5xf32>
    %c3_i32_69 = arith.constant 3 : i32
    %336 = vector.broadcast %c3_i32_69 : i32 to vector<8x5xi32>
    %337 = arith.select %334, %336, %328 : vector<8x5xi1>, vector<8x5xi32>
    %338 = vector.extract_strided_slice %216 {offsets = [0, 4], sizes = [8, 1], strides = [1, 1]} : vector<8x5xf32> to vector<8x1xf32>
    %339 = vector.extract_strided_slice %8 {offsets = [4, 0], sizes = [1, 5], strides = [1, 1]} : vector<5x5xf32> to vector<1x5xf32>
    %340 = vector.broadcast %338 : vector<8x1xf32> to vector<8x5xf32>
    %341 = vector.broadcast %339 : vector<1x5xf32> to vector<8x5xf32>
    %342 = arith.addf %340, %341 : vector<8x5xf32>
    %343 = arith.cmpf ogt, %342, %335 : vector<8x5xf32>
    %344 = arith.select %343, %342, %335 : vector<8x5xi1>, vector<8x5xf32>
    %c4_i32_70 = arith.constant 4 : i32
    %345 = vector.broadcast %c4_i32_70 : i32 to vector<8x5xi32>
    %346 = arith.select %343, %345, %337 : vector<8x5xi1>, vector<8x5xi32>
    %347 = arith.addf %344, %267 : vector<8x5xf32>
    %348 = vector.broadcast %220 : vector<8x1xf32> to vector<8x5xf32>
    %349 = arith.mulf %348, %347 : vector<8x5xf32>
    %cst_71 = arith.constant 1.000000e+00 : f32
    %350 = vector.broadcast %cst_71 : f32 to vector<8x1xf32>
    %351 = arith.subf %350, %220 : vector<8x1xf32>
    %352 = vector.broadcast %351 : vector<8x1xf32> to vector<8x5xf32>
    %353 = arith.mulf %352, %216 : vector<8x5xf32>
    %354 = arith.addf %349, %353 : vector<8x5xf32>
    %c3_i32_72 = arith.constant 3 : i32
    %355 = vector.broadcast %c3_i32_72 : i32 to vector<8x1xi32>
    %356 = arith.cmpi sgt, %0, %355 : vector<8x1xi32>
    %357 = arith.extui %356 : vector<8x1xi1> to vector<8x1xi32>
    %358 = arith.sitofp %357 : vector<8x1xi32> to vector<8x1xf32>
    %359 = vector.extract_strided_slice %14 {offsets = [24, 0], sizes = [8, 128], strides = [1, 1]} : vector<64x128xf32> to vector<8x128xf32>
    %cst_73 = arith.constant dense<0.000000e+00> : vector<8x128xf32>
    %360 = tpu.matmul %255, %2, %cst_73 {dimension_numbers = #tpu.dot_dimension_numbers<[1], [0], [0], [1], [0, 0, 1, 1], [], []>} : vector<8x32xf32>, vector<32x128xf32>, vector<8x128xf32> -> vector<8x128xf32>
    %361 = arith.addf %359, %360 : vector<8x128xf32>
    %362 = vector.extract_strided_slice %361 {offsets = [0, 0], sizes = [8, 32], strides = [1, 1]} : vector<8x128xf32> to vector<8x32xf32>
    %363 = arith.negf %362 : vector<8x32xf32>
    %364 = math.exp %363 : vector<8x32xf32>
    %cst_74 = arith.constant 1.000000e+00 : f32
    %365 = vector.broadcast %cst_74 : f32 to vector<8x32xf32>
    %366 = arith.addf %365, %364 : vector<8x32xf32>
    %367 = arith.divf %365, %366 : vector<8x32xf32>
    %368 = vector.extract_strided_slice %361 {offsets = [0, 32], sizes = [8, 32], strides = [1, 1]} : vector<8x128xf32> to vector<8x32xf32>
    %369 = arith.negf %368 : vector<8x32xf32>
    %370 = math.exp %369 : vector<8x32xf32>
    %cst_75 = arith.constant 1.000000e+00 : f32
    %371 = vector.broadcast %cst_75 : f32 to vector<8x32xf32>
    %372 = arith.addf %371, %370 : vector<8x32xf32>
    %373 = arith.divf %371, %372 : vector<8x32xf32>
    %374 = vector.extract_strided_slice %361 {offsets = [0, 64], sizes = [8, 32], strides = [1, 1]} : vector<8x128xf32> to vector<8x32xf32>
    %375 = math.tanh %374 : vector<8x32xf32>
    %376 = vector.extract_strided_slice %361 {offsets = [0, 96], sizes = [8, 32], strides = [1, 1]} : vector<8x128xf32> to vector<8x32xf32>
    %377 = arith.negf %376 : vector<8x32xf32>
    %378 = math.exp %377 : vector<8x32xf32>
    %cst_76 = arith.constant 1.000000e+00 : f32
    %379 = vector.broadcast %cst_76 : f32 to vector<8x32xf32>
    %380 = arith.addf %379, %378 : vector<8x32xf32>
    %381 = arith.divf %379, %380 : vector<8x32xf32>
    %382 = arith.mulf %373, %262 : vector<8x32xf32>
    %383 = arith.mulf %367, %375 : vector<8x32xf32>
    %384 = arith.addf %382, %383 : vector<8x32xf32>
    %385 = math.tanh %384 : vector<8x32xf32>
    %386 = arith.mulf %381, %385 : vector<8x32xf32>
    %387 = vector.broadcast %358 : vector<8x1xf32> to vector<8x32xf32>
    %388 = arith.mulf %387, %386 : vector<8x32xf32>
    %cst_77 = arith.constant 1.000000e+00 : f32
    %389 = vector.broadcast %cst_77 : f32 to vector<8x1xf32>
    %390 = arith.subf %389, %358 : vector<8x1xf32>
    %391 = vector.broadcast %390 : vector<8x1xf32> to vector<8x32xf32>
    %392 = arith.mulf %391, %255 : vector<8x32xf32>
    %393 = arith.addf %388, %392 : vector<8x32xf32>
    %394 = vector.broadcast %358 : vector<8x1xf32> to vector<8x32xf32>
    %395 = arith.mulf %394, %384 : vector<8x32xf32>
    %cst_78 = arith.constant 1.000000e+00 : f32
    %396 = vector.broadcast %cst_78 : f32 to vector<8x1xf32>
    %397 = arith.subf %396, %358 : vector<8x1xf32>
    %398 = vector.broadcast %397 : vector<8x1xf32> to vector<8x32xf32>
    %399 = arith.mulf %398, %262 : vector<8x32xf32>
    %400 = arith.addf %395, %399 : vector<8x32xf32>
    %401 = vector.broadcast %358 : vector<8x1xf32> to vector<8x32xf32>
    %402 = arith.mulf %386, %401 : vector<8x32xf32>
    %cst_79 = arith.constant dense<0.000000e+00> : vector<8x5xf32>
    %403 = tpu.matmul %402, %4, %cst_79 {dimension_numbers = #tpu.dot_dimension_numbers<[1], [0], [0], [1], [0, 0, 1, 1], [], []>} : vector<8x32xf32>, vector<32x5xf32>, vector<8x5xf32> -> vector<8x5xf32>
    %404 = vector.broadcast %5 : vector<1x5xf32> to vector<8x5xf32>
    %405 = arith.addf %403, %404 : vector<8x5xf32>
    %c3 = arith.constant 3 : index
    %c0_80 = arith.constant 0 : index
    %c0_81 = arith.constant 0 : index
    %406 = vector.load %arg2[%c3, %c0_80, %c0_81] : memref<8x8x1xi32, #tpu.memory_space<vmem>>, vector<1x8x1xi32>
    %407 = vector.shape_cast %406 : vector<1x8x1xi32> to vector<8x1xi32>
    %408 = vector.broadcast %407 : vector<8x1xi32> to vector<8x5xi32>
    %409 = arith.cmpi eq, %10, %408 : vector<8x5xi32>
    %410 = arith.extui %409 : vector<8x5xi1> to vector<8x5xi32>
    %411 = arith.sitofp %410 : vector<8x5xi32> to vector<8x5xf32>
    %cst_82 = arith.constant dense<0.000000e+00> : vector<8x5xf32>
    %412 = tpu.matmul %273, %8, %cst_82 {dimension_numbers = #tpu.dot_dimension_numbers<[1], [0], [0], [1], [0, 0, 1, 1], [], []>} : vector<8x5xf32>, vector<5x5xf32>, vector<8x5xf32> -> vector<8x5xf32>
    %413 = arith.addf %412, %405 : vector<8x5xf32>
    %414 = arith.mulf %413, %411 : vector<8x5xf32>
    %cst_83 = arith.constant dense<0.000000e+00> : vector<8xf32>
    %415 = vector.multi_reduction <add>, %414, %cst_83 [1] : vector<8x5xf32> to vector<8xf32>
    %416 = vector.shape_cast %415 : vector<8xf32> to vector<8x1xf32>
    %417 = arith.mulf %358, %416 : vector<8x1xf32>
    %418 = arith.addf %280, %417 : vector<8x1xf32>
    %419 = vector.broadcast %358 : vector<8x1xf32> to vector<8x5xf32>
    %420 = arith.mulf %419, %411 : vector<8x5xf32>
    %cst_84 = arith.constant 1.000000e+00 : f32
    %421 = vector.broadcast %cst_84 : f32 to vector<8x1xf32>
    %422 = arith.subf %421, %358 : vector<8x1xf32>
    %423 = vector.broadcast %422 : vector<8x1xf32> to vector<8x5xf32>
    %424 = arith.mulf %423, %287 : vector<8x5xf32>
    %425 = arith.addf %420, %424 : vector<8x5xf32>
    %cst_85 = arith.constant dense<0xFF800000> : vector<8xf32>
    %426 = vector.multi_reduction <maximumf>, %304, %cst_85 [1] : vector<8x5xf32> to vector<8xf32>
    %427 = vector.shape_cast %426 : vector<8xf32> to vector<8x1xf32>
    %428 = vector.broadcast %427 : vector<8x1xf32> to vector<8x5xf32>
    %429 = arith.subf %304, %428 : vector<8x5xf32>
    %430 = math.exp %429 : vector<8x5xf32>
    %cst_86 = arith.constant dense<0.000000e+00> : vector<8x5xf32>
    %431 = tpu.matmul %430, %9, %cst_86 {dimension_numbers = #tpu.dot_dimension_numbers<[1], [0], [0], [1], [0, 0, 1, 1], [], []>} : vector<8x5xf32>, vector<5x5xf32>, vector<8x5xf32> -> vector<8x5xf32>
    %432 = math.log %431 : vector<8x5xf32>
    %433 = vector.broadcast %427 : vector<8x1xf32> to vector<8x5xf32>
    %434 = arith.addf %433, %432 : vector<8x5xf32>
    %435 = arith.addf %434, %405 : vector<8x5xf32>
    %436 = vector.broadcast %358 : vector<8x1xf32> to vector<8x5xf32>
    %437 = arith.mulf %436, %435 : vector<8x5xf32>
    %cst_87 = arith.constant 1.000000e+00 : f32
    %438 = vector.broadcast %cst_87 : f32 to vector<8x1xf32>
    %439 = arith.subf %438, %358 : vector<8x1xf32>
    %440 = vector.broadcast %439 : vector<8x1xf32> to vector<8x5xf32>
    %441 = arith.mulf %440, %304 : vector<8x5xf32>
    %442 = arith.addf %437, %441 : vector<8x5xf32>
    %443 = vector.extract_strided_slice %354 {offsets = [0, 0], sizes = [8, 1], strides = [1, 1]} : vector<8x5xf32> to vector<8x1xf32>
    %444 = vector.extract_strided_slice %8 {offsets = [0, 0], sizes = [1, 5], strides = [1, 1]} : vector<5x5xf32> to vector<1x5xf32>
    %445 = vector.broadcast %443 : vector<8x1xf32> to vector<8x5xf32>
    %446 = vector.broadcast %444 : vector<1x5xf32> to vector<8x5xf32>
    %447 = arith.addf %445, %446 : vector<8x5xf32>
    %c0_i32_88 = arith.constant 0 : i32
    %448 = vector.broadcast %c0_i32_88 : i32 to vector<8x5xi32>
    %449 = vector.extract_strided_slice %354 {offsets = [0, 1], sizes = [8, 1], strides = [1, 1]} : vector<8x5xf32> to vector<8x1xf32>
    %450 = vector.extract_strided_slice %8 {offsets = [1, 0], sizes = [1, 5], strides = [1, 1]} : vector<5x5xf32> to vector<1x5xf32>
    %451 = vector.broadcast %449 : vector<8x1xf32> to vector<8x5xf32>
    %452 = vector.broadcast %450 : vector<1x5xf32> to vector<8x5xf32>
    %453 = arith.addf %451, %452 : vector<8x5xf32>
    %454 = arith.cmpf ogt, %453, %447 : vector<8x5xf32>
    %455 = arith.select %454, %453, %447 : vector<8x5xi1>, vector<8x5xf32>
    %c1_i32_89 = arith.constant 1 : i32
    %456 = vector.broadcast %c1_i32_89 : i32 to vector<8x5xi32>
    %457 = arith.select %454, %456, %448 : vector<8x5xi1>, vector<8x5xi32>
    %458 = vector.extract_strided_slice %354 {offsets = [0, 2], sizes = [8, 1], strides = [1, 1]} : vector<8x5xf32> to vector<8x1xf32>
    %459 = vector.extract_strided_slice %8 {offsets = [2, 0], sizes = [1, 5], strides = [1, 1]} : vector<5x5xf32> to vector<1x5xf32>
    %460 = vector.broadcast %458 : vector<8x1xf32> to vector<8x5xf32>
    %461 = vector.broadcast %459 : vector<1x5xf32> to vector<8x5xf32>
    %462 = arith.addf %460, %461 : vector<8x5xf32>
    %463 = arith.cmpf ogt, %462, %455 : vector<8x5xf32>
    %464 = arith.select %463, %462, %455 : vector<8x5xi1>, vector<8x5xf32>
    %c2_i32_90 = arith.constant 2 : i32
    %465 = vector.broadcast %c2_i32_90 : i32 to vector<8x5xi32>
    %466 = arith.select %463, %465, %457 : vector<8x5xi1>, vector<8x5xi32>
    %467 = vector.extract_strided_slice %354 {offsets = [0, 3], sizes = [8, 1], strides = [1, 1]} : vector<8x5xf32> to vector<8x1xf32>
    %468 = vector.extract_strided_slice %8 {offsets = [3, 0], sizes = [1, 5], strides = [1, 1]} : vector<5x5xf32> to vector<1x5xf32>
    %469 = vector.broadcast %467 : vector<8x1xf32> to vector<8x5xf32>
    %470 = vector.broadcast %468 : vector<1x5xf32> to vector<8x5xf32>
    %471 = arith.addf %469, %470 : vector<8x5xf32>
    %472 = arith.cmpf ogt, %471, %464 : vector<8x5xf32>
    %473 = arith.select %472, %471, %464 : vector<8x5xi1>, vector<8x5xf32>
    %c3_i32_91 = arith.constant 3 : i32
    %474 = vector.broadcast %c3_i32_91 : i32 to vector<8x5xi32>
    %475 = arith.select %472, %474, %466 : vector<8x5xi1>, vector<8x5xi32>
    %476 = vector.extract_strided_slice %354 {offsets = [0, 4], sizes = [8, 1], strides = [1, 1]} : vector<8x5xf32> to vector<8x1xf32>
    %477 = vector.extract_strided_slice %8 {offsets = [4, 0], sizes = [1, 5], strides = [1, 1]} : vector<5x5xf32> to vector<1x5xf32>
    %478 = vector.broadcast %476 : vector<8x1xf32> to vector<8x5xf32>
    %479 = vector.broadcast %477 : vector<1x5xf32> to vector<8x5xf32>
    %480 = arith.addf %478, %479 : vector<8x5xf32>
    %481 = arith.cmpf ogt, %480, %473 : vector<8x5xf32>
    %482 = arith.select %481, %480, %473 : vector<8x5xi1>, vector<8x5xf32>
    %c4_i32_92 = arith.constant 4 : i32
    %483 = vector.broadcast %c4_i32_92 : i32 to vector<8x5xi32>
    %484 = arith.select %481, %483, %475 : vector<8x5xi1>, vector<8x5xi32>
    %485 = arith.addf %482, %405 : vector<8x5xf32>
    %486 = vector.broadcast %358 : vector<8x1xf32> to vector<8x5xf32>
    %487 = arith.mulf %486, %485 : vector<8x5xf32>
    %cst_93 = arith.constant 1.000000e+00 : f32
    %488 = vector.broadcast %cst_93 : f32 to vector<8x1xf32>
    %489 = arith.subf %488, %358 : vector<8x1xf32>
    %490 = vector.broadcast %489 : vector<8x1xf32> to vector<8x5xf32>
    %491 = arith.mulf %490, %354 : vector<8x5xf32>
    %492 = arith.addf %487, %491 : vector<8x5xf32>
    %c4_i32_94 = arith.constant 4 : i32
    %493 = vector.broadcast %c4_i32_94 : i32 to vector<8x1xi32>
    %494 = arith.cmpi sgt, %0, %493 : vector<8x1xi32>
    %495 = arith.extui %494 : vector<8x1xi1> to vector<8x1xi32>
    %496 = arith.sitofp %495 : vector<8x1xi32> to vector<8x1xf32>
    %497 = vector.extract_strided_slice %14 {offsets = [32, 0], sizes = [8, 128], strides = [1, 1]} : vector<64x128xf32> to vector<8x128xf32>
    %cst_95 = arith.constant dense<0.000000e+00> : vector<8x128xf32>
    %498 = tpu.matmul %393, %2, %cst_95 {dimension_numbers = #tpu.dot_dimension_numbers<[1], [0], [0], [1], [0, 0, 1, 1], [], []>} : vector<8x32xf32>, vector<32x128xf32>, vector<8x128xf32> -> vector<8x128xf32>
    %499 = arith.addf %497, %498 : vector<8x128xf32>
    %500 = vector.extract_strided_slice %499 {offsets = [0, 0], sizes = [8, 32], strides = [1, 1]} : vector<8x128xf32> to vector<8x32xf32>
    %501 = arith.negf %500 : vector<8x32xf32>
    %502 = math.exp %501 : vector<8x32xf32>
    %cst_96 = arith.constant 1.000000e+00 : f32
    %503 = vector.broadcast %cst_96 : f32 to vector<8x32xf32>
    %504 = arith.addf %503, %502 : vector<8x32xf32>
    %505 = arith.divf %503, %504 : vector<8x32xf32>
    %506 = vector.extract_strided_slice %499 {offsets = [0, 32], sizes = [8, 32], strides = [1, 1]} : vector<8x128xf32> to vector<8x32xf32>
    %507 = arith.negf %506 : vector<8x32xf32>
    %508 = math.exp %507 : vector<8x32xf32>
    %cst_97 = arith.constant 1.000000e+00 : f32
    %509 = vector.broadcast %cst_97 : f32 to vector<8x32xf32>
    %510 = arith.addf %509, %508 : vector<8x32xf32>
    %511 = arith.divf %509, %510 : vector<8x32xf32>
    %512 = vector.extract_strided_slice %499 {offsets = [0, 64], sizes = [8, 32], strides = [1, 1]} : vector<8x128xf32> to vector<8x32xf32>
    %513 = math.tanh %512 : vector<8x32xf32>
    %514 = vector.extract_strided_slice %499 {offsets = [0, 96], sizes = [8, 32], strides = [1, 1]} : vector<8x128xf32> to vector<8x32xf32>
    %515 = arith.negf %514 : vector<8x32xf32>
    %516 = math.exp %515 : vector<8x32xf32>
    %cst_98 = arith.constant 1.000000e+00 : f32
    %517 = vector.broadcast %cst_98 : f32 to vector<8x32xf32>
    %518 = arith.addf %517, %516 : vector<8x32xf32>
    %519 = arith.divf %517, %518 : vector<8x32xf32>
    %520 = arith.mulf %511, %400 : vector<8x32xf32>
    %521 = arith.mulf %505, %513 : vector<8x32xf32>
    %522 = arith.addf %520, %521 : vector<8x32xf32>
    %523 = math.tanh %522 : vector<8x32xf32>
    %524 = arith.mulf %519, %523 : vector<8x32xf32>
    %525 = vector.broadcast %496 : vector<8x1xf32> to vector<8x32xf32>
    %526 = arith.mulf %525, %524 : vector<8x32xf32>
    %cst_99 = arith.constant 1.000000e+00 : f32
    %527 = vector.broadcast %cst_99 : f32 to vector<8x1xf32>
    %528 = arith.subf %527, %496 : vector<8x1xf32>
    %529 = vector.broadcast %528 : vector<8x1xf32> to vector<8x32xf32>
    %530 = arith.mulf %529, %393 : vector<8x32xf32>
    %531 = arith.addf %526, %530 : vector<8x32xf32>
    %532 = vector.broadcast %496 : vector<8x1xf32> to vector<8x32xf32>
    %533 = arith.mulf %532, %522 : vector<8x32xf32>
    %cst_100 = arith.constant 1.000000e+00 : f32
    %534 = vector.broadcast %cst_100 : f32 to vector<8x1xf32>
    %535 = arith.subf %534, %496 : vector<8x1xf32>
    %536 = vector.broadcast %535 : vector<8x1xf32> to vector<8x32xf32>
    %537 = arith.mulf %536, %400 : vector<8x32xf32>
    %538 = arith.addf %533, %537 : vector<8x32xf32>
    %539 = vector.broadcast %496 : vector<8x1xf32> to vector<8x32xf32>
    %540 = arith.mulf %524, %539 : vector<8x32xf32>
    %cst_101 = arith.constant dense<0.000000e+00> : vector<8x5xf32>
    %541 = tpu.matmul %540, %4, %cst_101 {dimension_numbers = #tpu.dot_dimension_numbers<[1], [0], [0], [1], [0, 0, 1, 1], [], []>} : vector<8x32xf32>, vector<32x5xf32>, vector<8x5xf32> -> vector<8x5xf32>
    %542 = vector.broadcast %5 : vector<1x5xf32> to vector<8x5xf32>
    %543 = arith.addf %541, %542 : vector<8x5xf32>
    %c4 = arith.constant 4 : index
    %c0_102 = arith.constant 0 : index
    %c0_103 = arith.constant 0 : index
    %544 = vector.load %arg2[%c4, %c0_102, %c0_103] : memref<8x8x1xi32, #tpu.memory_space<vmem>>, vector<1x8x1xi32>
    %545 = vector.shape_cast %544 : vector<1x8x1xi32> to vector<8x1xi32>
    %546 = vector.broadcast %545 : vector<8x1xi32> to vector<8x5xi32>
    %547 = arith.cmpi eq, %10, %546 : vector<8x5xi32>
    %548 = arith.extui %547 : vector<8x5xi1> to vector<8x5xi32>
    %549 = arith.sitofp %548 : vector<8x5xi32> to vector<8x5xf32>
    %cst_104 = arith.constant dense<0.000000e+00> : vector<8x5xf32>
    %550 = tpu.matmul %411, %8, %cst_104 {dimension_numbers = #tpu.dot_dimension_numbers<[1], [0], [0], [1], [0, 0, 1, 1], [], []>} : vector<8x5xf32>, vector<5x5xf32>, vector<8x5xf32> -> vector<8x5xf32>
    %551 = arith.addf %550, %543 : vector<8x5xf32>
    %552 = arith.mulf %551, %549 : vector<8x5xf32>
    %cst_105 = arith.constant dense<0.000000e+00> : vector<8xf32>
    %553 = vector.multi_reduction <add>, %552, %cst_105 [1] : vector<8x5xf32> to vector<8xf32>
    %554 = vector.shape_cast %553 : vector<8xf32> to vector<8x1xf32>
    %555 = arith.mulf %496, %554 : vector<8x1xf32>
    %556 = arith.addf %418, %555 : vector<8x1xf32>
    %557 = vector.broadcast %496 : vector<8x1xf32> to vector<8x5xf32>
    %558 = arith.mulf %557, %549 : vector<8x5xf32>
    %cst_106 = arith.constant 1.000000e+00 : f32
    %559 = vector.broadcast %cst_106 : f32 to vector<8x1xf32>
    %560 = arith.subf %559, %496 : vector<8x1xf32>
    %561 = vector.broadcast %560 : vector<8x1xf32> to vector<8x5xf32>
    %562 = arith.mulf %561, %425 : vector<8x5xf32>
    %563 = arith.addf %558, %562 : vector<8x5xf32>
    %cst_107 = arith.constant dense<0xFF800000> : vector<8xf32>
    %564 = vector.multi_reduction <maximumf>, %442, %cst_107 [1] : vector<8x5xf32> to vector<8xf32>
    %565 = vector.shape_cast %564 : vector<8xf32> to vector<8x1xf32>
    %566 = vector.broadcast %565 : vector<8x1xf32> to vector<8x5xf32>
    %567 = arith.subf %442, %566 : vector<8x5xf32>
    %568 = math.exp %567 : vector<8x5xf32>
    %cst_108 = arith.constant dense<0.000000e+00> : vector<8x5xf32>
    %569 = tpu.matmul %568, %9, %cst_108 {dimension_numbers = #tpu.dot_dimension_numbers<[1], [0], [0], [1], [0, 0, 1, 1], [], []>} : vector<8x5xf32>, vector<5x5xf32>, vector<8x5xf32> -> vector<8x5xf32>
    %570 = math.log %569 : vector<8x5xf32>
    %571 = vector.broadcast %565 : vector<8x1xf32> to vector<8x5xf32>
    %572 = arith.addf %571, %570 : vector<8x5xf32>
    %573 = arith.addf %572, %543 : vector<8x5xf32>
    %574 = vector.broadcast %496 : vector<8x1xf32> to vector<8x5xf32>
    %575 = arith.mulf %574, %573 : vector<8x5xf32>
    %cst_109 = arith.constant 1.000000e+00 : f32
    %576 = vector.broadcast %cst_109 : f32 to vector<8x1xf32>
    %577 = arith.subf %576, %496 : vector<8x1xf32>
    %578 = vector.broadcast %577 : vector<8x1xf32> to vector<8x5xf32>
    %579 = arith.mulf %578, %442 : vector<8x5xf32>
    %580 = arith.addf %575, %579 : vector<8x5xf32>
    %581 = vector.extract_strided_slice %492 {offsets = [0, 0], sizes = [8, 1], strides = [1, 1]} : vector<8x5xf32> to vector<8x1xf32>
    %582 = vector.extract_strided_slice %8 {offsets = [0, 0], sizes = [1, 5], strides = [1, 1]} : vector<5x5xf32> to vector<1x5xf32>
    %583 = vector.broadcast %581 : vector<8x1xf32> to vector<8x5xf32>
    %584 = vector.broadcast %582 : vector<1x5xf32> to vector<8x5xf32>
    %585 = arith.addf %583, %584 : vector<8x5xf32>
    %c0_i32_110 = arith.constant 0 : i32
    %586 = vector.broadcast %c0_i32_110 : i32 to vector<8x5xi32>
    %587 = vector.extract_strided_slice %492 {offsets = [0, 1], sizes = [8, 1], strides = [1, 1]} : vector<8x5xf32> to vector<8x1xf32>
    %588 = vector.extract_strided_slice %8 {offsets = [1, 0], sizes = [1, 5], strides = [1, 1]} : vector<5x5xf32> to vector<1x5xf32>
    %589 = vector.broadcast %587 : vector<8x1xf32> to vector<8x5xf32>
    %590 = vector.broadcast %588 : vector<1x5xf32> to vector<8x5xf32>
    %591 = arith.addf %589, %590 : vector<8x5xf32>
    %592 = arith.cmpf ogt, %591, %585 : vector<8x5xf32>
    %593 = arith.select %592, %591, %585 : vector<8x5xi1>, vector<8x5xf32>
    %c1_i32_111 = arith.constant 1 : i32
    %594 = vector.broadcast %c1_i32_111 : i32 to vector<8x5xi32>
    %595 = arith.select %592, %594, %586 : vector<8x5xi1>, vector<8x5xi32>
    %596 = vector.extract_strided_slice %492 {offsets = [0, 2], sizes = [8, 1], strides = [1, 1]} : vector<8x5xf32> to vector<8x1xf32>
    %597 = vector.extract_strided_slice %8 {offsets = [2, 0], sizes = [1, 5], strides = [1, 1]} : vector<5x5xf32> to vector<1x5xf32>
    %598 = vector.broadcast %596 : vector<8x1xf32> to vector<8x5xf32>
    %599 = vector.broadcast %597 : vector<1x5xf32> to vector<8x5xf32>
    %600 = arith.addf %598, %599 : vector<8x5xf32>
    %601 = arith.cmpf ogt, %600, %593 : vector<8x5xf32>
    %602 = arith.select %601, %600, %593 : vector<8x5xi1>, vector<8x5xf32>
    %c2_i32_112 = arith.constant 2 : i32
    %603 = vector.broadcast %c2_i32_112 : i32 to vector<8x5xi32>
    %604 = arith.select %601, %603, %595 : vector<8x5xi1>, vector<8x5xi32>
    %605 = vector.extract_strided_slice %492 {offsets = [0, 3], sizes = [8, 1], strides = [1, 1]} : vector<8x5xf32> to vector<8x1xf32>
    %606 = vector.extract_strided_slice %8 {offsets = [3, 0], sizes = [1, 5], strides = [1, 1]} : vector<5x5xf32> to vector<1x5xf32>
    %607 = vector.broadcast %605 : vector<8x1xf32> to vector<8x5xf32>
    %608 = vector.broadcast %606 : vector<1x5xf32> to vector<8x5xf32>
    %609 = arith.addf %607, %608 : vector<8x5xf32>
    %610 = arith.cmpf ogt, %609, %602 : vector<8x5xf32>
    %611 = arith.select %610, %609, %602 : vector<8x5xi1>, vector<8x5xf32>
    %c3_i32_113 = arith.constant 3 : i32
    %612 = vector.broadcast %c3_i32_113 : i32 to vector<8x5xi32>
    %613 = arith.select %610, %612, %604 : vector<8x5xi1>, vector<8x5xi32>
    %614 = vector.extract_strided_slice %492 {offsets = [0, 4], sizes = [8, 1], strides = [1, 1]} : vector<8x5xf32> to vector<8x1xf32>
    %615 = vector.extract_strided_slice %8 {offsets = [4, 0], sizes = [1, 5], strides = [1, 1]} : vector<5x5xf32> to vector<1x5xf32>
    %616 = vector.broadcast %614 : vector<8x1xf32> to vector<8x5xf32>
    %617 = vector.broadcast %615 : vector<1x5xf32> to vector<8x5xf32>
    %618 = arith.addf %616, %617 : vector<8x5xf32>
    %619 = arith.cmpf ogt, %618, %611 : vector<8x5xf32>
    %620 = arith.select %619, %618, %611 : vector<8x5xi1>, vector<8x5xf32>
    %c4_i32_114 = arith.constant 4 : i32
    %621 = vector.broadcast %c4_i32_114 : i32 to vector<8x5xi32>
    %622 = arith.select %619, %621, %613 : vector<8x5xi1>, vector<8x5xi32>
    %623 = arith.addf %620, %543 : vector<8x5xf32>
    %624 = vector.broadcast %496 : vector<8x1xf32> to vector<8x5xf32>
    %625 = arith.mulf %624, %623 : vector<8x5xf32>
    %cst_115 = arith.constant 1.000000e+00 : f32
    %626 = vector.broadcast %cst_115 : f32 to vector<8x1xf32>
    %627 = arith.subf %626, %496 : vector<8x1xf32>
    %628 = vector.broadcast %627 : vector<8x1xf32> to vector<8x5xf32>
    %629 = arith.mulf %628, %492 : vector<8x5xf32>
    %630 = arith.addf %625, %629 : vector<8x5xf32>
    %c5_i32 = arith.constant 5 : i32
    %631 = vector.broadcast %c5_i32 : i32 to vector<8x1xi32>
    %632 = arith.cmpi sgt, %0, %631 : vector<8x1xi32>
    %633 = arith.extui %632 : vector<8x1xi1> to vector<8x1xi32>
    %634 = arith.sitofp %633 : vector<8x1xi32> to vector<8x1xf32>
    %635 = vector.extract_strided_slice %14 {offsets = [40, 0], sizes = [8, 128], strides = [1, 1]} : vector<64x128xf32> to vector<8x128xf32>
    %cst_116 = arith.constant dense<0.000000e+00> : vector<8x128xf32>
    %636 = tpu.matmul %531, %2, %cst_116 {dimension_numbers = #tpu.dot_dimension_numbers<[1], [0], [0], [1], [0, 0, 1, 1], [], []>} : vector<8x32xf32>, vector<32x128xf32>, vector<8x128xf32> -> vector<8x128xf32>
    %637 = arith.addf %635, %636 : vector<8x128xf32>
    %638 = vector.extract_strided_slice %637 {offsets = [0, 0], sizes = [8, 32], strides = [1, 1]} : vector<8x128xf32> to vector<8x32xf32>
    %639 = arith.negf %638 : vector<8x32xf32>
    %640 = math.exp %639 : vector<8x32xf32>
    %cst_117 = arith.constant 1.000000e+00 : f32
    %641 = vector.broadcast %cst_117 : f32 to vector<8x32xf32>
    %642 = arith.addf %641, %640 : vector<8x32xf32>
    %643 = arith.divf %641, %642 : vector<8x32xf32>
    %644 = vector.extract_strided_slice %637 {offsets = [0, 32], sizes = [8, 32], strides = [1, 1]} : vector<8x128xf32> to vector<8x32xf32>
    %645 = arith.negf %644 : vector<8x32xf32>
    %646 = math.exp %645 : vector<8x32xf32>
    %cst_118 = arith.constant 1.000000e+00 : f32
    %647 = vector.broadcast %cst_118 : f32 to vector<8x32xf32>
    %648 = arith.addf %647, %646 : vector<8x32xf32>
    %649 = arith.divf %647, %648 : vector<8x32xf32>
    %650 = vector.extract_strided_slice %637 {offsets = [0, 64], sizes = [8, 32], strides = [1, 1]} : vector<8x128xf32> to vector<8x32xf32>
    %651 = math.tanh %650 : vector<8x32xf32>
    %652 = vector.extract_strided_slice %637 {offsets = [0, 96], sizes = [8, 32], strides = [1, 1]} : vector<8x128xf32> to vector<8x32xf32>
    %653 = arith.negf %652 : vector<8x32xf32>
    %654 = math.exp %653 : vector<8x32xf32>
    %cst_119 = arith.constant 1.000000e+00 : f32
    %655 = vector.broadcast %cst_119 : f32 to vector<8x32xf32>
    %656 = arith.addf %655, %654 : vector<8x32xf32>
    %657 = arith.divf %655, %656 : vector<8x32xf32>
    %658 = arith.mulf %649, %538 : vector<8x32xf32>
    %659 = arith.mulf %643, %651 : vector<8x32xf32>
    %660 = arith.addf %658, %659 : vector<8x32xf32>
    %661 = math.tanh %660 : vector<8x32xf32>
    %662 = arith.mulf %657, %661 : vector<8x32xf32>
    %663 = vector.broadcast %634 : vector<8x1xf32> to vector<8x32xf32>
    %664 = arith.mulf %663, %662 : vector<8x32xf32>
    %cst_120 = arith.constant 1.000000e+00 : f32
    %665 = vector.broadcast %cst_120 : f32 to vector<8x1xf32>
    %666 = arith.subf %665, %634 : vector<8x1xf32>
    %667 = vector.broadcast %666 : vector<8x1xf32> to vector<8x32xf32>
    %668 = arith.mulf %667, %531 : vector<8x32xf32>
    %669 = arith.addf %664, %668 : vector<8x32xf32>
    %670 = vector.broadcast %634 : vector<8x1xf32> to vector<8x32xf32>
    %671 = arith.mulf %670, %660 : vector<8x32xf32>
    %cst_121 = arith.constant 1.000000e+00 : f32
    %672 = vector.broadcast %cst_121 : f32 to vector<8x1xf32>
    %673 = arith.subf %672, %634 : vector<8x1xf32>
    %674 = vector.broadcast %673 : vector<8x1xf32> to vector<8x32xf32>
    %675 = arith.mulf %674, %538 : vector<8x32xf32>
    %676 = arith.addf %671, %675 : vector<8x32xf32>
    %677 = vector.broadcast %634 : vector<8x1xf32> to vector<8x32xf32>
    %678 = arith.mulf %662, %677 : vector<8x32xf32>
    %cst_122 = arith.constant dense<0.000000e+00> : vector<8x5xf32>
    %679 = tpu.matmul %678, %4, %cst_122 {dimension_numbers = #tpu.dot_dimension_numbers<[1], [0], [0], [1], [0, 0, 1, 1], [], []>} : vector<8x32xf32>, vector<32x5xf32>, vector<8x5xf32> -> vector<8x5xf32>
    %680 = vector.broadcast %5 : vector<1x5xf32> to vector<8x5xf32>
    %681 = arith.addf %679, %680 : vector<8x5xf32>
    %c5 = arith.constant 5 : index
    %c0_123 = arith.constant 0 : index
    %c0_124 = arith.constant 0 : index
    %682 = vector.load %arg2[%c5, %c0_123, %c0_124] : memref<8x8x1xi32, #tpu.memory_space<vmem>>, vector<1x8x1xi32>
    %683 = vector.shape_cast %682 : vector<1x8x1xi32> to vector<8x1xi32>
    %684 = vector.broadcast %683 : vector<8x1xi32> to vector<8x5xi32>
    %685 = arith.cmpi eq, %10, %684 : vector<8x5xi32>
    %686 = arith.extui %685 : vector<8x5xi1> to vector<8x5xi32>
    %687 = arith.sitofp %686 : vector<8x5xi32> to vector<8x5xf32>
    %cst_125 = arith.constant dense<0.000000e+00> : vector<8x5xf32>
    %688 = tpu.matmul %549, %8, %cst_125 {dimension_numbers = #tpu.dot_dimension_numbers<[1], [0], [0], [1], [0, 0, 1, 1], [], []>} : vector<8x5xf32>, vector<5x5xf32>, vector<8x5xf32> -> vector<8x5xf32>
    %689 = arith.addf %688, %681 : vector<8x5xf32>
    %690 = arith.mulf %689, %687 : vector<8x5xf32>
    %cst_126 = arith.constant dense<0.000000e+00> : vector<8xf32>
    %691 = vector.multi_reduction <add>, %690, %cst_126 [1] : vector<8x5xf32> to vector<8xf32>
    %692 = vector.shape_cast %691 : vector<8xf32> to vector<8x1xf32>
    %693 = arith.mulf %634, %692 : vector<8x1xf32>
    %694 = arith.addf %556, %693 : vector<8x1xf32>
    %695 = vector.broadcast %634 : vector<8x1xf32> to vector<8x5xf32>
    %696 = arith.mulf %695, %687 : vector<8x5xf32>
    %cst_127 = arith.constant 1.000000e+00 : f32
    %697 = vector.broadcast %cst_127 : f32 to vector<8x1xf32>
    %698 = arith.subf %697, %634 : vector<8x1xf32>
    %699 = vector.broadcast %698 : vector<8x1xf32> to vector<8x5xf32>
    %700 = arith.mulf %699, %563 : vector<8x5xf32>
    %701 = arith.addf %696, %700 : vector<8x5xf32>
    %cst_128 = arith.constant dense<0xFF800000> : vector<8xf32>
    %702 = vector.multi_reduction <maximumf>, %580, %cst_128 [1] : vector<8x5xf32> to vector<8xf32>
    %703 = vector.shape_cast %702 : vector<8xf32> to vector<8x1xf32>
    %704 = vector.broadcast %703 : vector<8x1xf32> to vector<8x5xf32>
    %705 = arith.subf %580, %704 : vector<8x5xf32>
    %706 = math.exp %705 : vector<8x5xf32>
    %cst_129 = arith.constant dense<0.000000e+00> : vector<8x5xf32>
    %707 = tpu.matmul %706, %9, %cst_129 {dimension_numbers = #tpu.dot_dimension_numbers<[1], [0], [0], [1], [0, 0, 1, 1], [], []>} : vector<8x5xf32>, vector<5x5xf32>, vector<8x5xf32> -> vector<8x5xf32>
    %708 = math.log %707 : vector<8x5xf32>
    %709 = vector.broadcast %703 : vector<8x1xf32> to vector<8x5xf32>
    %710 = arith.addf %709, %708 : vector<8x5xf32>
    %711 = arith.addf %710, %681 : vector<8x5xf32>
    %712 = vector.broadcast %634 : vector<8x1xf32> to vector<8x5xf32>
    %713 = arith.mulf %712, %711 : vector<8x5xf32>
    %cst_130 = arith.constant 1.000000e+00 : f32
    %714 = vector.broadcast %cst_130 : f32 to vector<8x1xf32>
    %715 = arith.subf %714, %634 : vector<8x1xf32>
    %716 = vector.broadcast %715 : vector<8x1xf32> to vector<8x5xf32>
    %717 = arith.mulf %716, %580 : vector<8x5xf32>
    %718 = arith.addf %713, %717 : vector<8x5xf32>
    %719 = vector.extract_strided_slice %630 {offsets = [0, 0], sizes = [8, 1], strides = [1, 1]} : vector<8x5xf32> to vector<8x1xf32>
    %720 = vector.extract_strided_slice %8 {offsets = [0, 0], sizes = [1, 5], strides = [1, 1]} : vector<5x5xf32> to vector<1x5xf32>
    %721 = vector.broadcast %719 : vector<8x1xf32> to vector<8x5xf32>
    %722 = vector.broadcast %720 : vector<1x5xf32> to vector<8x5xf32>
    %723 = arith.addf %721, %722 : vector<8x5xf32>
    %c0_i32_131 = arith.constant 0 : i32
    %724 = vector.broadcast %c0_i32_131 : i32 to vector<8x5xi32>
    %725 = vector.extract_strided_slice %630 {offsets = [0, 1], sizes = [8, 1], strides = [1, 1]} : vector<8x5xf32> to vector<8x1xf32>
    %726 = vector.extract_strided_slice %8 {offsets = [1, 0], sizes = [1, 5], strides = [1, 1]} : vector<5x5xf32> to vector<1x5xf32>
    %727 = vector.broadcast %725 : vector<8x1xf32> to vector<8x5xf32>
    %728 = vector.broadcast %726 : vector<1x5xf32> to vector<8x5xf32>
    %729 = arith.addf %727, %728 : vector<8x5xf32>
    %730 = arith.cmpf ogt, %729, %723 : vector<8x5xf32>
    %731 = arith.select %730, %729, %723 : vector<8x5xi1>, vector<8x5xf32>
    %c1_i32_132 = arith.constant 1 : i32
    %732 = vector.broadcast %c1_i32_132 : i32 to vector<8x5xi32>
    %733 = arith.select %730, %732, %724 : vector<8x5xi1>, vector<8x5xi32>
    %734 = vector.extract_strided_slice %630 {offsets = [0, 2], sizes = [8, 1], strides = [1, 1]} : vector<8x5xf32> to vector<8x1xf32>
    %735 = vector.extract_strided_slice %8 {offsets = [2, 0], sizes = [1, 5], strides = [1, 1]} : vector<5x5xf32> to vector<1x5xf32>
    %736 = vector.broadcast %734 : vector<8x1xf32> to vector<8x5xf32>
    %737 = vector.broadcast %735 : vector<1x5xf32> to vector<8x5xf32>
    %738 = arith.addf %736, %737 : vector<8x5xf32>
    %739 = arith.cmpf ogt, %738, %731 : vector<8x5xf32>
    %740 = arith.select %739, %738, %731 : vector<8x5xi1>, vector<8x5xf32>
    %c2_i32_133 = arith.constant 2 : i32
    %741 = vector.broadcast %c2_i32_133 : i32 to vector<8x5xi32>
    %742 = arith.select %739, %741, %733 : vector<8x5xi1>, vector<8x5xi32>
    %743 = vector.extract_strided_slice %630 {offsets = [0, 3], sizes = [8, 1], strides = [1, 1]} : vector<8x5xf32> to vector<8x1xf32>
    %744 = vector.extract_strided_slice %8 {offsets = [3, 0], sizes = [1, 5], strides = [1, 1]} : vector<5x5xf32> to vector<1x5xf32>
    %745 = vector.broadcast %743 : vector<8x1xf32> to vector<8x5xf32>
    %746 = vector.broadcast %744 : vector<1x5xf32> to vector<8x5xf32>
    %747 = arith.addf %745, %746 : vector<8x5xf32>
    %748 = arith.cmpf ogt, %747, %740 : vector<8x5xf32>
    %749 = arith.select %748, %747, %740 : vector<8x5xi1>, vector<8x5xf32>
    %c3_i32_134 = arith.constant 3 : i32
    %750 = vector.broadcast %c3_i32_134 : i32 to vector<8x5xi32>
    %751 = arith.select %748, %750, %742 : vector<8x5xi1>, vector<8x5xi32>
    %752 = vector.extract_strided_slice %630 {offsets = [0, 4], sizes = [8, 1], strides = [1, 1]} : vector<8x5xf32> to vector<8x1xf32>
    %753 = vector.extract_strided_slice %8 {offsets = [4, 0], sizes = [1, 5], strides = [1, 1]} : vector<5x5xf32> to vector<1x5xf32>
    %754 = vector.broadcast %752 : vector<8x1xf32> to vector<8x5xf32>
    %755 = vector.broadcast %753 : vector<1x5xf32> to vector<8x5xf32>
    %756 = arith.addf %754, %755 : vector<8x5xf32>
    %757 = arith.cmpf ogt, %756, %749 : vector<8x5xf32>
    %758 = arith.select %757, %756, %749 : vector<8x5xi1>, vector<8x5xf32>
    %c4_i32_135 = arith.constant 4 : i32
    %759 = vector.broadcast %c4_i32_135 : i32 to vector<8x5xi32>
    %760 = arith.select %757, %759, %751 : vector<8x5xi1>, vector<8x5xi32>
    %761 = arith.addf %758, %681 : vector<8x5xf32>
    %762 = vector.broadcast %634 : vector<8x1xf32> to vector<8x5xf32>
    %763 = arith.mulf %762, %761 : vector<8x5xf32>
    %cst_136 = arith.constant 1.000000e+00 : f32
    %764 = vector.broadcast %cst_136 : f32 to vector<8x1xf32>
    %765 = arith.subf %764, %634 : vector<8x1xf32>
    %766 = vector.broadcast %765 : vector<8x1xf32> to vector<8x5xf32>
    %767 = arith.mulf %766, %630 : vector<8x5xf32>
    %768 = arith.addf %763, %767 : vector<8x5xf32>
    %c6_i32 = arith.constant 6 : i32
    %769 = vector.broadcast %c6_i32 : i32 to vector<8x1xi32>
    %770 = arith.cmpi sgt, %0, %769 : vector<8x1xi32>
    %771 = arith.extui %770 : vector<8x1xi1> to vector<8x1xi32>
    %772 = arith.sitofp %771 : vector<8x1xi32> to vector<8x1xf32>
    %773 = vector.extract_strided_slice %14 {offsets = [48, 0], sizes = [8, 128], strides = [1, 1]} : vector<64x128xf32> to vector<8x128xf32>
    %cst_137 = arith.constant dense<0.000000e+00> : vector<8x128xf32>
    %774 = tpu.matmul %669, %2, %cst_137 {dimension_numbers = #tpu.dot_dimension_numbers<[1], [0], [0], [1], [0, 0, 1, 1], [], []>} : vector<8x32xf32>, vector<32x128xf32>, vector<8x128xf32> -> vector<8x128xf32>
    %775 = arith.addf %773, %774 : vector<8x128xf32>
    %776 = vector.extract_strided_slice %775 {offsets = [0, 0], sizes = [8, 32], strides = [1, 1]} : vector<8x128xf32> to vector<8x32xf32>
    %777 = arith.negf %776 : vector<8x32xf32>
    %778 = math.exp %777 : vector<8x32xf32>
    %cst_138 = arith.constant 1.000000e+00 : f32
    %779 = vector.broadcast %cst_138 : f32 to vector<8x32xf32>
    %780 = arith.addf %779, %778 : vector<8x32xf32>
    %781 = arith.divf %779, %780 : vector<8x32xf32>
    %782 = vector.extract_strided_slice %775 {offsets = [0, 32], sizes = [8, 32], strides = [1, 1]} : vector<8x128xf32> to vector<8x32xf32>
    %783 = arith.negf %782 : vector<8x32xf32>
    %784 = math.exp %783 : vector<8x32xf32>
    %cst_139 = arith.constant 1.000000e+00 : f32
    %785 = vector.broadcast %cst_139 : f32 to vector<8x32xf32>
    %786 = arith.addf %785, %784 : vector<8x32xf32>
    %787 = arith.divf %785, %786 : vector<8x32xf32>
    %788 = vector.extract_strided_slice %775 {offsets = [0, 64], sizes = [8, 32], strides = [1, 1]} : vector<8x128xf32> to vector<8x32xf32>
    %789 = math.tanh %788 : vector<8x32xf32>
    %790 = vector.extract_strided_slice %775 {offsets = [0, 96], sizes = [8, 32], strides = [1, 1]} : vector<8x128xf32> to vector<8x32xf32>
    %791 = arith.negf %790 : vector<8x32xf32>
    %792 = math.exp %791 : vector<8x32xf32>
    %cst_140 = arith.constant 1.000000e+00 : f32
    %793 = vector.broadcast %cst_140 : f32 to vector<8x32xf32>
    %794 = arith.addf %793, %792 : vector<8x32xf32>
    %795 = arith.divf %793, %794 : vector<8x32xf32>
    %796 = arith.mulf %787, %676 : vector<8x32xf32>
    %797 = arith.mulf %781, %789 : vector<8x32xf32>
    %798 = arith.addf %796, %797 : vector<8x32xf32>
    %799 = math.tanh %798 : vector<8x32xf32>
    %800 = arith.mulf %795, %799 : vector<8x32xf32>
    %801 = vector.broadcast %772 : vector<8x1xf32> to vector<8x32xf32>
    %802 = arith.mulf %801, %800 : vector<8x32xf32>
    %cst_141 = arith.constant 1.000000e+00 : f32
    %803 = vector.broadcast %cst_141 : f32 to vector<8x1xf32>
    %804 = arith.subf %803, %772 : vector<8x1xf32>
    %805 = vector.broadcast %804 : vector<8x1xf32> to vector<8x32xf32>
    %806 = arith.mulf %805, %669 : vector<8x32xf32>
    %807 = arith.addf %802, %806 : vector<8x32xf32>
    %808 = vector.broadcast %772 : vector<8x1xf32> to vector<8x32xf32>
    %809 = arith.mulf %808, %798 : vector<8x32xf32>
    %cst_142 = arith.constant 1.000000e+00 : f32
    %810 = vector.broadcast %cst_142 : f32 to vector<8x1xf32>
    %811 = arith.subf %810, %772 : vector<8x1xf32>
    %812 = vector.broadcast %811 : vector<8x1xf32> to vector<8x32xf32>
    %813 = arith.mulf %812, %676 : vector<8x32xf32>
    %814 = arith.addf %809, %813 : vector<8x32xf32>
    %815 = vector.broadcast %772 : vector<8x1xf32> to vector<8x32xf32>
    %816 = arith.mulf %800, %815 : vector<8x32xf32>
    %cst_143 = arith.constant dense<0.000000e+00> : vector<8x5xf32>
    %817 = tpu.matmul %816, %4, %cst_143 {dimension_numbers = #tpu.dot_dimension_numbers<[1], [0], [0], [1], [0, 0, 1, 1], [], []>} : vector<8x32xf32>, vector<32x5xf32>, vector<8x5xf32> -> vector<8x5xf32>
    %818 = vector.broadcast %5 : vector<1x5xf32> to vector<8x5xf32>
    %819 = arith.addf %817, %818 : vector<8x5xf32>
    %c6 = arith.constant 6 : index
    %c0_144 = arith.constant 0 : index
    %c0_145 = arith.constant 0 : index
    %820 = vector.load %arg2[%c6, %c0_144, %c0_145] : memref<8x8x1xi32, #tpu.memory_space<vmem>>, vector<1x8x1xi32>
    %821 = vector.shape_cast %820 : vector<1x8x1xi32> to vector<8x1xi32>
    %822 = vector.broadcast %821 : vector<8x1xi32> to vector<8x5xi32>
    %823 = arith.cmpi eq, %10, %822 : vector<8x5xi32>
    %824 = arith.extui %823 : vector<8x5xi1> to vector<8x5xi32>
    %825 = arith.sitofp %824 : vector<8x5xi32> to vector<8x5xf32>
    %cst_146 = arith.constant dense<0.000000e+00> : vector<8x5xf32>
    %826 = tpu.matmul %687, %8, %cst_146 {dimension_numbers = #tpu.dot_dimension_numbers<[1], [0], [0], [1], [0, 0, 1, 1], [], []>} : vector<8x5xf32>, vector<5x5xf32>, vector<8x5xf32> -> vector<8x5xf32>
    %827 = arith.addf %826, %819 : vector<8x5xf32>
    %828 = arith.mulf %827, %825 : vector<8x5xf32>
    %cst_147 = arith.constant dense<0.000000e+00> : vector<8xf32>
    %829 = vector.multi_reduction <add>, %828, %cst_147 [1] : vector<8x5xf32> to vector<8xf32>
    %830 = vector.shape_cast %829 : vector<8xf32> to vector<8x1xf32>
    %831 = arith.mulf %772, %830 : vector<8x1xf32>
    %832 = arith.addf %694, %831 : vector<8x1xf32>
    %833 = vector.broadcast %772 : vector<8x1xf32> to vector<8x5xf32>
    %834 = arith.mulf %833, %825 : vector<8x5xf32>
    %cst_148 = arith.constant 1.000000e+00 : f32
    %835 = vector.broadcast %cst_148 : f32 to vector<8x1xf32>
    %836 = arith.subf %835, %772 : vector<8x1xf32>
    %837 = vector.broadcast %836 : vector<8x1xf32> to vector<8x5xf32>
    %838 = arith.mulf %837, %701 : vector<8x5xf32>
    %839 = arith.addf %834, %838 : vector<8x5xf32>
    %cst_149 = arith.constant dense<0xFF800000> : vector<8xf32>
    %840 = vector.multi_reduction <maximumf>, %718, %cst_149 [1] : vector<8x5xf32> to vector<8xf32>
    %841 = vector.shape_cast %840 : vector<8xf32> to vector<8x1xf32>
    %842 = vector.broadcast %841 : vector<8x1xf32> to vector<8x5xf32>
    %843 = arith.subf %718, %842 : vector<8x5xf32>
    %844 = math.exp %843 : vector<8x5xf32>
    %cst_150 = arith.constant dense<0.000000e+00> : vector<8x5xf32>
    %845 = tpu.matmul %844, %9, %cst_150 {dimension_numbers = #tpu.dot_dimension_numbers<[1], [0], [0], [1], [0, 0, 1, 1], [], []>} : vector<8x5xf32>, vector<5x5xf32>, vector<8x5xf32> -> vector<8x5xf32>
    %846 = math.log %845 : vector<8x5xf32>
    %847 = vector.broadcast %841 : vector<8x1xf32> to vector<8x5xf32>
    %848 = arith.addf %847, %846 : vector<8x5xf32>
    %849 = arith.addf %848, %819 : vector<8x5xf32>
    %850 = vector.broadcast %772 : vector<8x1xf32> to vector<8x5xf32>
    %851 = arith.mulf %850, %849 : vector<8x5xf32>
    %cst_151 = arith.constant 1.000000e+00 : f32
    %852 = vector.broadcast %cst_151 : f32 to vector<8x1xf32>
    %853 = arith.subf %852, %772 : vector<8x1xf32>
    %854 = vector.broadcast %853 : vector<8x1xf32> to vector<8x5xf32>
    %855 = arith.mulf %854, %718 : vector<8x5xf32>
    %856 = arith.addf %851, %855 : vector<8x5xf32>
    %857 = vector.extract_strided_slice %768 {offsets = [0, 0], sizes = [8, 1], strides = [1, 1]} : vector<8x5xf32> to vector<8x1xf32>
    %858 = vector.extract_strided_slice %8 {offsets = [0, 0], sizes = [1, 5], strides = [1, 1]} : vector<5x5xf32> to vector<1x5xf32>
    %859 = vector.broadcast %857 : vector<8x1xf32> to vector<8x5xf32>
    %860 = vector.broadcast %858 : vector<1x5xf32> to vector<8x5xf32>
    %861 = arith.addf %859, %860 : vector<8x5xf32>
    %c0_i32_152 = arith.constant 0 : i32
    %862 = vector.broadcast %c0_i32_152 : i32 to vector<8x5xi32>
    %863 = vector.extract_strided_slice %768 {offsets = [0, 1], sizes = [8, 1], strides = [1, 1]} : vector<8x5xf32> to vector<8x1xf32>
    %864 = vector.extract_strided_slice %8 {offsets = [1, 0], sizes = [1, 5], strides = [1, 1]} : vector<5x5xf32> to vector<1x5xf32>
    %865 = vector.broadcast %863 : vector<8x1xf32> to vector<8x5xf32>
    %866 = vector.broadcast %864 : vector<1x5xf32> to vector<8x5xf32>
    %867 = arith.addf %865, %866 : vector<8x5xf32>
    %868 = arith.cmpf ogt, %867, %861 : vector<8x5xf32>
    %869 = arith.select %868, %867, %861 : vector<8x5xi1>, vector<8x5xf32>
    %c1_i32_153 = arith.constant 1 : i32
    %870 = vector.broadcast %c1_i32_153 : i32 to vector<8x5xi32>
    %871 = arith.select %868, %870, %862 : vector<8x5xi1>, vector<8x5xi32>
    %872 = vector.extract_strided_slice %768 {offsets = [0, 2], sizes = [8, 1], strides = [1, 1]} : vector<8x5xf32> to vector<8x1xf32>
    %873 = vector.extract_strided_slice %8 {offsets = [2, 0], sizes = [1, 5], strides = [1, 1]} : vector<5x5xf32> to vector<1x5xf32>
    %874 = vector.broadcast %872 : vector<8x1xf32> to vector<8x5xf32>
    %875 = vector.broadcast %873 : vector<1x5xf32> to vector<8x5xf32>
    %876 = arith.addf %874, %875 : vector<8x5xf32>
    %877 = arith.cmpf ogt, %876, %869 : vector<8x5xf32>
    %878 = arith.select %877, %876, %869 : vector<8x5xi1>, vector<8x5xf32>
    %c2_i32_154 = arith.constant 2 : i32
    %879 = vector.broadcast %c2_i32_154 : i32 to vector<8x5xi32>
    %880 = arith.select %877, %879, %871 : vector<8x5xi1>, vector<8x5xi32>
    %881 = vector.extract_strided_slice %768 {offsets = [0, 3], sizes = [8, 1], strides = [1, 1]} : vector<8x5xf32> to vector<8x1xf32>
    %882 = vector.extract_strided_slice %8 {offsets = [3, 0], sizes = [1, 5], strides = [1, 1]} : vector<5x5xf32> to vector<1x5xf32>
    %883 = vector.broadcast %881 : vector<8x1xf32> to vector<8x5xf32>
    %884 = vector.broadcast %882 : vector<1x5xf32> to vector<8x5xf32>
    %885 = arith.addf %883, %884 : vector<8x5xf32>
    %886 = arith.cmpf ogt, %885, %878 : vector<8x5xf32>
    %887 = arith.select %886, %885, %878 : vector<8x5xi1>, vector<8x5xf32>
    %c3_i32_155 = arith.constant 3 : i32
    %888 = vector.broadcast %c3_i32_155 : i32 to vector<8x5xi32>
    %889 = arith.select %886, %888, %880 : vector<8x5xi1>, vector<8x5xi32>
    %890 = vector.extract_strided_slice %768 {offsets = [0, 4], sizes = [8, 1], strides = [1, 1]} : vector<8x5xf32> to vector<8x1xf32>
    %891 = vector.extract_strided_slice %8 {offsets = [4, 0], sizes = [1, 5], strides = [1, 1]} : vector<5x5xf32> to vector<1x5xf32>
    %892 = vector.broadcast %890 : vector<8x1xf32> to vector<8x5xf32>
    %893 = vector.broadcast %891 : vector<1x5xf32> to vector<8x5xf32>
    %894 = arith.addf %892, %893 : vector<8x5xf32>
    %895 = arith.cmpf ogt, %894, %887 : vector<8x5xf32>
    %896 = arith.select %895, %894, %887 : vector<8x5xi1>, vector<8x5xf32>
    %c4_i32_156 = arith.constant 4 : i32
    %897 = vector.broadcast %c4_i32_156 : i32 to vector<8x5xi32>
    %898 = arith.select %895, %897, %889 : vector<8x5xi1>, vector<8x5xi32>
    %899 = arith.addf %896, %819 : vector<8x5xf32>
    %900 = vector.broadcast %772 : vector<8x1xf32> to vector<8x5xf32>
    %901 = arith.mulf %900, %899 : vector<8x5xf32>
    %cst_157 = arith.constant 1.000000e+00 : f32
    %902 = vector.broadcast %cst_157 : f32 to vector<8x1xf32>
    %903 = arith.subf %902, %772 : vector<8x1xf32>
    %904 = vector.broadcast %903 : vector<8x1xf32> to vector<8x5xf32>
    %905 = arith.mulf %904, %768 : vector<8x5xf32>
    %906 = arith.addf %901, %905 : vector<8x5xf32>
    %c7_i32 = arith.constant 7 : i32
    %907 = vector.broadcast %c7_i32 : i32 to vector<8x1xi32>
    %908 = arith.cmpi sgt, %0, %907 : vector<8x1xi32>
    %909 = arith.extui %908 : vector<8x1xi1> to vector<8x1xi32>
    %910 = arith.sitofp %909 : vector<8x1xi32> to vector<8x1xf32>
    %911 = vector.extract_strided_slice %14 {offsets = [56, 0], sizes = [8, 128], strides = [1, 1]} : vector<64x128xf32> to vector<8x128xf32>
    %cst_158 = arith.constant dense<0.000000e+00> : vector<8x128xf32>
    %912 = tpu.matmul %807, %2, %cst_158 {dimension_numbers = #tpu.dot_dimension_numbers<[1], [0], [0], [1], [0, 0, 1, 1], [], []>} : vector<8x32xf32>, vector<32x128xf32>, vector<8x128xf32> -> vector<8x128xf32>
    %913 = arith.addf %911, %912 : vector<8x128xf32>
    %914 = vector.extract_strided_slice %913 {offsets = [0, 0], sizes = [8, 32], strides = [1, 1]} : vector<8x128xf32> to vector<8x32xf32>
    %915 = arith.negf %914 : vector<8x32xf32>
    %916 = math.exp %915 : vector<8x32xf32>
    %cst_159 = arith.constant 1.000000e+00 : f32
    %917 = vector.broadcast %cst_159 : f32 to vector<8x32xf32>
    %918 = arith.addf %917, %916 : vector<8x32xf32>
    %919 = arith.divf %917, %918 : vector<8x32xf32>
    %920 = vector.extract_strided_slice %913 {offsets = [0, 32], sizes = [8, 32], strides = [1, 1]} : vector<8x128xf32> to vector<8x32xf32>
    %921 = arith.negf %920 : vector<8x32xf32>
    %922 = math.exp %921 : vector<8x32xf32>
    %cst_160 = arith.constant 1.000000e+00 : f32
    %923 = vector.broadcast %cst_160 : f32 to vector<8x32xf32>
    %924 = arith.addf %923, %922 : vector<8x32xf32>
    %925 = arith.divf %923, %924 : vector<8x32xf32>
    %926 = vector.extract_strided_slice %913 {offsets = [0, 64], sizes = [8, 32], strides = [1, 1]} : vector<8x128xf32> to vector<8x32xf32>
    %927 = math.tanh %926 : vector<8x32xf32>
    %928 = vector.extract_strided_slice %913 {offsets = [0, 96], sizes = [8, 32], strides = [1, 1]} : vector<8x128xf32> to vector<8x32xf32>
    %929 = arith.negf %928 : vector<8x32xf32>
    %930 = math.exp %929 : vector<8x32xf32>
    %cst_161 = arith.constant 1.000000e+00 : f32
    %931 = vector.broadcast %cst_161 : f32 to vector<8x32xf32>
    %932 = arith.addf %931, %930 : vector<8x32xf32>
    %933 = arith.divf %931, %932 : vector<8x32xf32>
    %934 = arith.mulf %925, %814 : vector<8x32xf32>
    %935 = arith.mulf %919, %927 : vector<8x32xf32>
    %936 = arith.addf %934, %935 : vector<8x32xf32>
    %937 = math.tanh %936 : vector<8x32xf32>
    %938 = arith.mulf %933, %937 : vector<8x32xf32>
    %939 = vector.broadcast %910 : vector<8x1xf32> to vector<8x32xf32>
    %940 = arith.mulf %938, %939 : vector<8x32xf32>
    %cst_162 = arith.constant dense<0.000000e+00> : vector<8x5xf32>
    %941 = tpu.matmul %940, %4, %cst_162 {dimension_numbers = #tpu.dot_dimension_numbers<[1], [0], [0], [1], [0, 0, 1, 1], [], []>} : vector<8x32xf32>, vector<32x5xf32>, vector<8x5xf32> -> vector<8x5xf32>
    %942 = vector.broadcast %5 : vector<1x5xf32> to vector<8x5xf32>
    %943 = arith.addf %941, %942 : vector<8x5xf32>
    %c7 = arith.constant 7 : index
    %c0_163 = arith.constant 0 : index
    %c0_164 = arith.constant 0 : index
    %944 = vector.load %arg2[%c7, %c0_163, %c0_164] : memref<8x8x1xi32, #tpu.memory_space<vmem>>, vector<1x8x1xi32>
    %945 = vector.shape_cast %944 : vector<1x8x1xi32> to vector<8x1xi32>
    %946 = vector.broadcast %945 : vector<8x1xi32> to vector<8x5xi32>
    %947 = arith.cmpi eq, %10, %946 : vector<8x5xi32>
    %948 = arith.extui %947 : vector<8x5xi1> to vector<8x5xi32>
    %949 = arith.sitofp %948 : vector<8x5xi32> to vector<8x5xf32>
    %cst_165 = arith.constant dense<0.000000e+00> : vector<8x5xf32>
    %950 = tpu.matmul %825, %8, %cst_165 {dimension_numbers = #tpu.dot_dimension_numbers<[1], [0], [0], [1], [0, 0, 1, 1], [], []>} : vector<8x5xf32>, vector<5x5xf32>, vector<8x5xf32> -> vector<8x5xf32>
    %951 = arith.addf %950, %943 : vector<8x5xf32>
    %952 = arith.mulf %951, %949 : vector<8x5xf32>
    %cst_166 = arith.constant dense<0.000000e+00> : vector<8xf32>
    %953 = vector.multi_reduction <add>, %952, %cst_166 [1] : vector<8x5xf32> to vector<8xf32>
    %954 = vector.shape_cast %953 : vector<8xf32> to vector<8x1xf32>
    %955 = arith.mulf %910, %954 : vector<8x1xf32>
    %956 = arith.addf %832, %955 : vector<8x1xf32>
    %957 = vector.broadcast %910 : vector<8x1xf32> to vector<8x5xf32>
    %958 = arith.mulf %957, %949 : vector<8x5xf32>
    %cst_167 = arith.constant 1.000000e+00 : f32
    %959 = vector.broadcast %cst_167 : f32 to vector<8x1xf32>
    %960 = arith.subf %959, %910 : vector<8x1xf32>
    %961 = vector.broadcast %960 : vector<8x1xf32> to vector<8x5xf32>
    %962 = arith.mulf %961, %839 : vector<8x5xf32>
    %963 = arith.addf %958, %962 : vector<8x5xf32>
    %cst_168 = arith.constant dense<0xFF800000> : vector<8xf32>
    %964 = vector.multi_reduction <maximumf>, %856, %cst_168 [1] : vector<8x5xf32> to vector<8xf32>
    %965 = vector.shape_cast %964 : vector<8xf32> to vector<8x1xf32>
    %966 = vector.broadcast %965 : vector<8x1xf32> to vector<8x5xf32>
    %967 = arith.subf %856, %966 : vector<8x5xf32>
    %968 = math.exp %967 : vector<8x5xf32>
    %cst_169 = arith.constant dense<0.000000e+00> : vector<8x5xf32>
    %969 = tpu.matmul %968, %9, %cst_169 {dimension_numbers = #tpu.dot_dimension_numbers<[1], [0], [0], [1], [0, 0, 1, 1], [], []>} : vector<8x5xf32>, vector<5x5xf32>, vector<8x5xf32> -> vector<8x5xf32>
    %970 = math.log %969 : vector<8x5xf32>
    %971 = vector.broadcast %965 : vector<8x1xf32> to vector<8x5xf32>
    %972 = arith.addf %971, %970 : vector<8x5xf32>
    %973 = arith.addf %972, %943 : vector<8x5xf32>
    %974 = vector.broadcast %910 : vector<8x1xf32> to vector<8x5xf32>
    %975 = arith.mulf %974, %973 : vector<8x5xf32>
    %cst_170 = arith.constant 1.000000e+00 : f32
    %976 = vector.broadcast %cst_170 : f32 to vector<8x1xf32>
    %977 = arith.subf %976, %910 : vector<8x1xf32>
    %978 = vector.broadcast %977 : vector<8x1xf32> to vector<8x5xf32>
    %979 = arith.mulf %978, %856 : vector<8x5xf32>
    %980 = arith.addf %975, %979 : vector<8x5xf32>
    %981 = vector.extract_strided_slice %906 {offsets = [0, 0], sizes = [8, 1], strides = [1, 1]} : vector<8x5xf32> to vector<8x1xf32>
    %982 = vector.extract_strided_slice %8 {offsets = [0, 0], sizes = [1, 5], strides = [1, 1]} : vector<5x5xf32> to vector<1x5xf32>
    %983 = vector.broadcast %981 : vector<8x1xf32> to vector<8x5xf32>
    %984 = vector.broadcast %982 : vector<1x5xf32> to vector<8x5xf32>
    %985 = arith.addf %983, %984 : vector<8x5xf32>
    %c0_i32_171 = arith.constant 0 : i32
    %986 = vector.broadcast %c0_i32_171 : i32 to vector<8x5xi32>
    %987 = vector.extract_strided_slice %906 {offsets = [0, 1], sizes = [8, 1], strides = [1, 1]} : vector<8x5xf32> to vector<8x1xf32>
    %988 = vector.extract_strided_slice %8 {offsets = [1, 0], sizes = [1, 5], strides = [1, 1]} : vector<5x5xf32> to vector<1x5xf32>
    %989 = vector.broadcast %987 : vector<8x1xf32> to vector<8x5xf32>
    %990 = vector.broadcast %988 : vector<1x5xf32> to vector<8x5xf32>
    %991 = arith.addf %989, %990 : vector<8x5xf32>
    %992 = arith.cmpf ogt, %991, %985 : vector<8x5xf32>
    %993 = arith.select %992, %991, %985 : vector<8x5xi1>, vector<8x5xf32>
    %c1_i32_172 = arith.constant 1 : i32
    %994 = vector.broadcast %c1_i32_172 : i32 to vector<8x5xi32>
    %995 = arith.select %992, %994, %986 : vector<8x5xi1>, vector<8x5xi32>
    %996 = vector.extract_strided_slice %906 {offsets = [0, 2], sizes = [8, 1], strides = [1, 1]} : vector<8x5xf32> to vector<8x1xf32>
    %997 = vector.extract_strided_slice %8 {offsets = [2, 0], sizes = [1, 5], strides = [1, 1]} : vector<5x5xf32> to vector<1x5xf32>
    %998 = vector.broadcast %996 : vector<8x1xf32> to vector<8x5xf32>
    %999 = vector.broadcast %997 : vector<1x5xf32> to vector<8x5xf32>
    %1000 = arith.addf %998, %999 : vector<8x5xf32>
    %1001 = arith.cmpf ogt, %1000, %993 : vector<8x5xf32>
    %1002 = arith.select %1001, %1000, %993 : vector<8x5xi1>, vector<8x5xf32>
    %c2_i32_173 = arith.constant 2 : i32
    %1003 = vector.broadcast %c2_i32_173 : i32 to vector<8x5xi32>
    %1004 = arith.select %1001, %1003, %995 : vector<8x5xi1>, vector<8x5xi32>
    %1005 = vector.extract_strided_slice %906 {offsets = [0, 3], sizes = [8, 1], strides = [1, 1]} : vector<8x5xf32> to vector<8x1xf32>
    %1006 = vector.extract_strided_slice %8 {offsets = [3, 0], sizes = [1, 5], strides = [1, 1]} : vector<5x5xf32> to vector<1x5xf32>
    %1007 = vector.broadcast %1005 : vector<8x1xf32> to vector<8x5xf32>
    %1008 = vector.broadcast %1006 : vector<1x5xf32> to vector<8x5xf32>
    %1009 = arith.addf %1007, %1008 : vector<8x5xf32>
    %1010 = arith.cmpf ogt, %1009, %1002 : vector<8x5xf32>
    %1011 = arith.select %1010, %1009, %1002 : vector<8x5xi1>, vector<8x5xf32>
    %c3_i32_174 = arith.constant 3 : i32
    %1012 = vector.broadcast %c3_i32_174 : i32 to vector<8x5xi32>
    %1013 = arith.select %1010, %1012, %1004 : vector<8x5xi1>, vector<8x5xi32>
    %1014 = vector.extract_strided_slice %906 {offsets = [0, 4], sizes = [8, 1], strides = [1, 1]} : vector<8x5xf32> to vector<8x1xf32>
    %1015 = vector.extract_strided_slice %8 {offsets = [4, 0], sizes = [1, 5], strides = [1, 1]} : vector<5x5xf32> to vector<1x5xf32>
    %1016 = vector.broadcast %1014 : vector<8x1xf32> to vector<8x5xf32>
    %1017 = vector.broadcast %1015 : vector<1x5xf32> to vector<8x5xf32>
    %1018 = arith.addf %1016, %1017 : vector<8x5xf32>
    %1019 = arith.cmpf ogt, %1018, %1011 : vector<8x5xf32>
    %1020 = arith.select %1019, %1018, %1011 : vector<8x5xi1>, vector<8x5xf32>
    %c4_i32_175 = arith.constant 4 : i32
    %1021 = vector.broadcast %c4_i32_175 : i32 to vector<8x5xi32>
    %1022 = arith.select %1019, %1021, %1013 : vector<8x5xi1>, vector<8x5xi32>
    %1023 = arith.addf %1020, %943 : vector<8x5xf32>
    %1024 = vector.broadcast %910 : vector<8x1xf32> to vector<8x5xf32>
    %1025 = arith.mulf %1024, %1023 : vector<8x5xf32>
    %cst_176 = arith.constant 1.000000e+00 : f32
    %1026 = vector.broadcast %cst_176 : f32 to vector<8x1xf32>
    %1027 = arith.subf %1026, %910 : vector<8x1xf32>
    %1028 = vector.broadcast %1027 : vector<8x1xf32> to vector<8x5xf32>
    %1029 = arith.mulf %1028, %906 : vector<8x5xf32>
    %1030 = arith.addf %1025, %1029 : vector<8x5xf32>
    %1031 = vector.broadcast %7 : vector<1x5xf32> to vector<8x5xf32>
    %1032 = arith.mulf %1031, %963 : vector<8x5xf32>
    %cst_177 = arith.constant dense<0.000000e+00> : vector<8xf32>
    %1033 = vector.multi_reduction <add>, %1032, %cst_177 [1] : vector<8x5xf32> to vector<8xf32>
    %1034 = vector.shape_cast %1033 : vector<8xf32> to vector<8x1xf32>
    %1035 = arith.addf %956, %1034 : vector<8x1xf32>
    %1036 = vector.broadcast %7 : vector<1x5xf32> to vector<8x5xf32>
    %1037 = arith.addf %980, %1036 : vector<8x5xf32>
    %cst_178 = arith.constant dense<0xFF800000> : vector<8xf32>
    %1038 = vector.multi_reduction <maximumf>, %1037, %cst_178 [1] : vector<8x5xf32> to vector<8xf32>
    %1039 = vector.shape_cast %1038 : vector<8xf32> to vector<8x1xf32>
    %1040 = vector.broadcast %1039 : vector<8x1xf32> to vector<8x5xf32>
    %1041 = arith.subf %1037, %1040 : vector<8x5xf32>
    %1042 = math.exp %1041 : vector<8x5xf32>
    %cst_179 = arith.constant dense<0.000000e+00> : vector<8xf32>
    %1043 = vector.multi_reduction <add>, %1042, %cst_179 [1] : vector<8x5xf32> to vector<8xf32>
    %1044 = vector.shape_cast %1043 : vector<8xf32> to vector<8x1xf32>
    %1045 = math.log %1044 : vector<8x1xf32>
    %1046 = arith.addf %1039, %1045 : vector<8x1xf32>
    %c0_i32_180 = arith.constant 0 : i32
    %1047 = vector.broadcast %c0_i32_180 : i32 to vector<8x1xi32>
    %1048 = arith.cmpi sgt, %0, %1047 : vector<8x1xi32>
    %1049 = arith.extui %1048 : vector<8x1xi1> to vector<8x1xi32>
    %1050 = arith.sitofp %1049 : vector<8x1xi32> to vector<8x1xf32>
    %1051 = arith.subf %1035, %1046 : vector<8x1xf32>
    %1052 = arith.mulf %1051, %1050 : vector<8x1xf32>
    %cst_181 = arith.constant dense<0.000000e+00> : vector<1xf32>
    %1053 = vector.multi_reduction <add>, %1052, %cst_181 [0] : vector<8x1xf32> to vector<1xf32>
    %1054 = vector.shape_cast %1053 : vector<1xf32> to vector<1x1xf32>
    %c0_182 = arith.constant 0 : index
    %c0_183 = arith.constant 0 : index
    %1055 = vector.load %arg11[%c0_182, %c0_183] : memref<1x1xf32, #tpu.memory_space<vmem>>, vector<1x1xf32>
    tpu.vector_store %arg11[%c0_182, %c0_183], %1054 {strides = array<i32>} : memref<1x1xf32, #tpu.memory_space<vmem>>, vector<1x1xf32>,
    %1056 = vector.broadcast %7 : vector<1x5xf32> to vector<8x5xf32>
    %1057 = arith.addf %1030, %1056 : vector<8x5xf32>
    %cst_184 = arith.constant dense<0xFF800000> : vector<8xf32>
    %1058 = vector.multi_reduction <maximumf>, %1057, %cst_184 [1] : vector<8x5xf32> to vector<8xf32>
    %1059 = vector.shape_cast %1058 : vector<8xf32> to vector<8x1xf32>
    %1060 = vector.broadcast %1059 : vector<8x1xf32> to vector<8x5xf32>
    %1061 = arith.cmpf oeq, %1057, %1060 : vector<8x5xf32>
    %c5_i32_185 = arith.constant 5 : i32
    %1062 = vector.broadcast %c5_i32_185 : i32 to vector<8x5xi32>
    %1063 = arith.select %1061, %10, %1062 : vector<8x5xi1>, vector<8x5xi32>
    %cst_186 = arith.constant dense<2147483647> : vector<8xi32>
    %1064 = vector.multi_reduction <minsi>, %1063, %cst_186 [1] : vector<8x5xi32> to vector<8xi32>
    %1065 = vector.shape_cast %1064 : vector<8xi32> to vector<8x1xi32>
    %c1_i32_187 = arith.constant 1 : i32
    %1066 = vector.broadcast %c1_i32_187 : i32 to vector<8x1xi32>
    %1067 = arith.subi %0, %1066 : vector<8x1xi32>
    %1068 = tpu.iota {dimensions = array<i32: 1>} : vector<8x8xi32>
    %c0_i32_188 = arith.constant 0 : i32
    %1069 = vector.broadcast %c0_i32_188 : i32 to vector<8x8xi32>
    %c0_i32_189 = arith.constant 0 : i32
    %1070 = vector.broadcast %c0_i32_189 : i32 to vector<8x1xi32>
    %c7_i32_190 = arith.constant 7 : i32
    %1071 = vector.broadcast %c7_i32_190 : i32 to vector<8x1xi32>
    %1072 = arith.cmpi eq, %1067, %1071 : vector<8x1xi32>
    %1073 = arith.select %1072, %1065, %1070 : vector<8x1xi1>, vector<8x1xi32>
    %c7_i32_191 = arith.constant 7 : i32
    %1074 = vector.broadcast %c7_i32_191 : i32 to vector<8x8xi32>
    %1075 = arith.cmpi eq, %1068, %1074 : vector<8x8xi32>
    %1076 = vector.shape_cast %1073 : vector<8x1xi32> to vector<8x1xi32>
    %1077 = vector.broadcast %1076 : vector<8x1xi32> to vector<8x8xi32>
    %1078 = arith.select %1075, %1077, %1069 : vector<8x8xi1>, vector<8x8xi32>
    %1079 = vector.broadcast %1073 : vector<8x1xi32> to vector<8x5xi32>
    %1080 = arith.cmpi eq, %10, %1079 : vector<8x5xi32>
    %c0_i32_192 = arith.constant 0 : i32
    %1081 = vector.broadcast %c0_i32_192 : i32 to vector<8x5xi32>
    %1082 = arith.select %1080, %1022, %1081 : vector<8x5xi1>, vector<8x5xi32>
    %cst_193 = arith.constant dense<-2147483648> : vector<8xi32>
    %1083 = vector.multi_reduction <maxsi>, %1082, %cst_193 [1] : vector<8x5xi32> to vector<8xi32>
    %1084 = vector.shape_cast %1083 : vector<8xi32> to vector<8x1xi32>
    %c6_i32_194 = arith.constant 6 : i32
    %1085 = vector.broadcast %c6_i32_194 : i32 to vector<8x1xi32>
    %1086 = arith.cmpi eq, %1067, %1085 : vector<8x1xi32>
    %c6_i32_195 = arith.constant 6 : i32
    %1087 = vector.broadcast %c6_i32_195 : i32 to vector<8x1xi32>
    %1088 = arith.cmpi sgt, %1067, %1087 : vector<8x1xi32>
    %1089 = arith.select %1088, %1084, %1073 : vector<8x1xi1>, vector<8x1xi32>
    %1090 = arith.select %1086, %1065, %1089 : vector<8x1xi1>, vector<8x1xi32>
    %c6_i32_196 = arith.constant 6 : i32
    %1091 = vector.broadcast %c6_i32_196 : i32 to vector<8x8xi32>
    %1092 = arith.cmpi eq, %1068, %1091 : vector<8x8xi32>
    %1093 = vector.shape_cast %1090 : vector<8x1xi32> to vector<8x1xi32>
    %1094 = vector.broadcast %1093 : vector<8x1xi32> to vector<8x8xi32>
    %1095 = arith.select %1092, %1094, %1078 : vector<8x8xi1>, vector<8x8xi32>
    %1096 = vector.broadcast %1090 : vector<8x1xi32> to vector<8x5xi32>
    %1097 = arith.cmpi eq, %10, %1096 : vector<8x5xi32>
    %c0_i32_197 = arith.constant 0 : i32
    %1098 = vector.broadcast %c0_i32_197 : i32 to vector<8x5xi32>
    %1099 = arith.select %1097, %898, %1098 : vector<8x5xi1>, vector<8x5xi32>
    %cst_198 = arith.constant dense<-2147483648> : vector<8xi32>
    %1100 = vector.multi_reduction <maxsi>, %1099, %cst_198 [1] : vector<8x5xi32> to vector<8xi32>
    %1101 = vector.shape_cast %1100 : vector<8xi32> to vector<8x1xi32>
    %c5_i32_199 = arith.constant 5 : i32
    %1102 = vector.broadcast %c5_i32_199 : i32 to vector<8x1xi32>
    %1103 = arith.cmpi eq, %1067, %1102 : vector<8x1xi32>
    %c5_i32_200 = arith.constant 5 : i32
    %1104 = vector.broadcast %c5_i32_200 : i32 to vector<8x1xi32>
    %1105 = arith.cmpi sgt, %1067, %1104 : vector<8x1xi32>
    %1106 = arith.select %1105, %1101, %1090 : vector<8x1xi1>, vector<8x1xi32>
    %1107 = arith.select %1103, %1065, %1106 : vector<8x1xi1>, vector<8x1xi32>
    %c5_i32_201 = arith.constant 5 : i32
    %1108 = vector.broadcast %c5_i32_201 : i32 to vector<8x8xi32>
    %1109 = arith.cmpi eq, %1068, %1108 : vector<8x8xi32>
    %1110 = vector.shape_cast %1107 : vector<8x1xi32> to vector<8x1xi32>
    %1111 = vector.broadcast %1110 : vector<8x1xi32> to vector<8x8xi32>
    %1112 = arith.select %1109, %1111, %1095 : vector<8x8xi1>, vector<8x8xi32>
    %1113 = vector.broadcast %1107 : vector<8x1xi32> to vector<8x5xi32>
    %1114 = arith.cmpi eq, %10, %1113 : vector<8x5xi32>
    %c0_i32_202 = arith.constant 0 : i32
    %1115 = vector.broadcast %c0_i32_202 : i32 to vector<8x5xi32>
    %1116 = arith.select %1114, %760, %1115 : vector<8x5xi1>, vector<8x5xi32>
    %cst_203 = arith.constant dense<-2147483648> : vector<8xi32>
    %1117 = vector.multi_reduction <maxsi>, %1116, %cst_203 [1] : vector<8x5xi32> to vector<8xi32>
    %1118 = vector.shape_cast %1117 : vector<8xi32> to vector<8x1xi32>
    %c4_i32_204 = arith.constant 4 : i32
    %1119 = vector.broadcast %c4_i32_204 : i32 to vector<8x1xi32>
    %1120 = arith.cmpi eq, %1067, %1119 : vector<8x1xi32>
    %c4_i32_205 = arith.constant 4 : i32
    %1121 = vector.broadcast %c4_i32_205 : i32 to vector<8x1xi32>
    %1122 = arith.cmpi sgt, %1067, %1121 : vector<8x1xi32>
    %1123 = arith.select %1122, %1118, %1107 : vector<8x1xi1>, vector<8x1xi32>
    %1124 = arith.select %1120, %1065, %1123 : vector<8x1xi1>, vector<8x1xi32>
    %c4_i32_206 = arith.constant 4 : i32
    %1125 = vector.broadcast %c4_i32_206 : i32 to vector<8x8xi32>
    %1126 = arith.cmpi eq, %1068, %1125 : vector<8x8xi32>
    %1127 = vector.shape_cast %1124 : vector<8x1xi32> to vector<8x1xi32>
    %1128 = vector.broadcast %1127 : vector<8x1xi32> to vector<8x8xi32>
    %1129 = arith.select %1126, %1128, %1112 : vector<8x8xi1>, vector<8x8xi32>
    %1130 = vector.broadcast %1124 : vector<8x1xi32> to vector<8x5xi32>
    %1131 = arith.cmpi eq, %10, %1130 : vector<8x5xi32>
    %c0_i32_207 = arith.constant 0 : i32
    %1132 = vector.broadcast %c0_i32_207 : i32 to vector<8x5xi32>
    %1133 = arith.select %1131, %622, %1132 : vector<8x5xi1>, vector<8x5xi32>
    %cst_208 = arith.constant dense<-2147483648> : vector<8xi32>
    %1134 = vector.multi_reduction <maxsi>, %1133, %cst_208 [1] : vector<8x5xi32> to vector<8xi32>
    %1135 = vector.shape_cast %1134 : vector<8xi32> to vector<8x1xi32>
    %c3_i32_209 = arith.constant 3 : i32
    %1136 = vector.broadcast %c3_i32_209 : i32 to vector<8x1xi32>
    %1137 = arith.cmpi eq, %1067, %1136 : vector<8x1xi32>
    %c3_i32_210 = arith.constant 3 : i32
    %1138 = vector.broadcast %c3_i32_210 : i32 to vector<8x1xi32>
    %1139 = arith.cmpi sgt, %1067, %1138 : vector<8x1xi32>
    %1140 = arith.select %1139, %1135, %1124 : vector<8x1xi1>, vector<8x1xi32>
    %1141 = arith.select %1137, %1065, %1140 : vector<8x1xi1>, vector<8x1xi32>
    %c3_i32_211 = arith.constant 3 : i32
    %1142 = vector.broadcast %c3_i32_211 : i32 to vector<8x8xi32>
    %1143 = arith.cmpi eq, %1068, %1142 : vector<8x8xi32>
    %1144 = vector.shape_cast %1141 : vector<8x1xi32> to vector<8x1xi32>
    %1145 = vector.broadcast %1144 : vector<8x1xi32> to vector<8x8xi32>
    %1146 = arith.select %1143, %1145, %1129 : vector<8x8xi1>, vector<8x8xi32>
    %1147 = vector.broadcast %1141 : vector<8x1xi32> to vector<8x5xi32>
    %1148 = arith.cmpi eq, %10, %1147 : vector<8x5xi32>
    %c0_i32_212 = arith.constant 0 : i32
    %1149 = vector.broadcast %c0_i32_212 : i32 to vector<8x5xi32>
    %1150 = arith.select %1148, %484, %1149 : vector<8x5xi1>, vector<8x5xi32>
    %cst_213 = arith.constant dense<-2147483648> : vector<8xi32>
    %1151 = vector.multi_reduction <maxsi>, %1150, %cst_213 [1] : vector<8x5xi32> to vector<8xi32>
    %1152 = vector.shape_cast %1151 : vector<8xi32> to vector<8x1xi32>
    %c2_i32_214 = arith.constant 2 : i32
    %1153 = vector.broadcast %c2_i32_214 : i32 to vector<8x1xi32>
    %1154 = arith.cmpi eq, %1067, %1153 : vector<8x1xi32>
    %c2_i32_215 = arith.constant 2 : i32
    %1155 = vector.broadcast %c2_i32_215 : i32 to vector<8x1xi32>
    %1156 = arith.cmpi sgt, %1067, %1155 : vector<8x1xi32>
    %1157 = arith.select %1156, %1152, %1141 : vector<8x1xi1>, vector<8x1xi32>
    %1158 = arith.select %1154, %1065, %1157 : vector<8x1xi1>, vector<8x1xi32>
    %c2_i32_216 = arith.constant 2 : i32
    %1159 = vector.broadcast %c2_i32_216 : i32 to vector<8x8xi32>
    %1160 = arith.cmpi eq, %1068, %1159 : vector<8x8xi32>
    %1161 = vector.shape_cast %1158 : vector<8x1xi32> to vector<8x1xi32>
    %1162 = vector.broadcast %1161 : vector<8x1xi32> to vector<8x8xi32>
    %1163 = arith.select %1160, %1162, %1146 : vector<8x8xi1>, vector<8x8xi32>
    %1164 = vector.broadcast %1158 : vector<8x1xi32> to vector<8x5xi32>
    %1165 = arith.cmpi eq, %10, %1164 : vector<8x5xi32>
    %c0_i32_217 = arith.constant 0 : i32
    %1166 = vector.broadcast %c0_i32_217 : i32 to vector<8x5xi32>
    %1167 = arith.select %1165, %346, %1166 : vector<8x5xi1>, vector<8x5xi32>
    %cst_218 = arith.constant dense<-2147483648> : vector<8xi32>
    %1168 = vector.multi_reduction <maxsi>, %1167, %cst_218 [1] : vector<8x5xi32> to vector<8xi32>
    %1169 = vector.shape_cast %1168 : vector<8xi32> to vector<8x1xi32>
    %c1_i32_219 = arith.constant 1 : i32
    %1170 = vector.broadcast %c1_i32_219 : i32 to vector<8x1xi32>
    %1171 = arith.cmpi eq, %1067, %1170 : vector<8x1xi32>
    %c1_i32_220 = arith.constant 1 : i32
    %1172 = vector.broadcast %c1_i32_220 : i32 to vector<8x1xi32>
    %1173 = arith.cmpi sgt, %1067, %1172 : vector<8x1xi32>
    %1174 = arith.select %1173, %1169, %1158 : vector<8x1xi1>, vector<8x1xi32>
    %1175 = arith.select %1171, %1065, %1174 : vector<8x1xi1>, vector<8x1xi32>
    %c1_i32_221 = arith.constant 1 : i32
    %1176 = vector.broadcast %c1_i32_221 : i32 to vector<8x8xi32>
    %1177 = arith.cmpi eq, %1068, %1176 : vector<8x8xi32>
    %1178 = vector.shape_cast %1175 : vector<8x1xi32> to vector<8x1xi32>
    %1179 = vector.broadcast %1178 : vector<8x1xi32> to vector<8x8xi32>
    %1180 = arith.select %1177, %1179, %1163 : vector<8x8xi1>, vector<8x8xi32>
    %1181 = vector.broadcast %1175 : vector<8x1xi32> to vector<8x5xi32>
    %1182 = arith.cmpi eq, %10, %1181 : vector<8x5xi32>
    %c0_i32_222 = arith.constant 0 : i32
    %1183 = vector.broadcast %c0_i32_222 : i32 to vector<8x5xi32>
    %1184 = arith.select %1182, %208, %1183 : vector<8x5xi1>, vector<8x5xi32>
    %cst_223 = arith.constant dense<-2147483648> : vector<8xi32>
    %1185 = vector.multi_reduction <maxsi>, %1184, %cst_223 [1] : vector<8x5xi32> to vector<8xi32>
    %1186 = vector.shape_cast %1185 : vector<8xi32> to vector<8x1xi32>
    %c0_i32_224 = arith.constant 0 : i32
    %1187 = vector.broadcast %c0_i32_224 : i32 to vector<8x1xi32>
    %1188 = arith.cmpi eq, %1067, %1187 : vector<8x1xi32>
    %c0_i32_225 = arith.constant 0 : i32
    %1189 = vector.broadcast %c0_i32_225 : i32 to vector<8x1xi32>
    %1190 = arith.cmpi sgt, %1067, %1189 : vector<8x1xi32>
    %1191 = arith.select %1190, %1186, %1175 : vector<8x1xi1>, vector<8x1xi32>
    %1192 = arith.select %1188, %1065, %1191 : vector<8x1xi1>, vector<8x1xi32>
    %c0_i32_226 = arith.constant 0 : i32
    %1193 = vector.broadcast %c0_i32_226 : i32 to vector<8x8xi32>
    %1194 = arith.cmpi eq, %1068, %1193 : vector<8x8xi32>
    %1195 = vector.shape_cast %1192 : vector<8x1xi32> to vector<8x1xi32>
    %1196 = vector.broadcast %1195 : vector<8x1xi32> to vector<8x8xi32>
    %1197 = arith.select %1194, %1196, %1180 : vector<8x8xi1>, vector<8x8xi32>
    %c0_227 = arith.constant 0 : index
    %c0_228 = arith.constant 0 : index
    %1198 = vector.load %arg12[%c0_227, %c0_228] : memref<8x8xi32, #tpu.memory_space<vmem>>, vector<8x8xi32>
    tpu.vector_store %arg12[%c0_227, %c0_228], %1197 {strides = array<i32>} : memref<8x8xi32, #tpu.memory_space<vmem>>, vector<8x8xi32>,
    return
  }
}

</mosaic_0001>

<bundles_post_ra>
// kernel: _lambda_.1
= control target key start
LH: loop header
LB: loop body
LE: loop exit
PB: predicated region body
PF: predicated region fallthrough
CT: control target
= control target key end

     0   :  { %vm75_vm0 = vcmask 130048   ;;  %v5497_v3 = vmov 0.0|0.0   ;;  %vm4344_vm1 = vmmov 0   ;;  %v5505_v10 = vmov 0.0   ;;  %s5484_s0 = inlined_call_operand.vmem [shape: f32[64,16], index: 0, kind: input, shape index: {}]   ;;  %s5485_s1 = inlined_call_operand.vmem [shape: s32[8,1], index: 1, kind: input, shape index: {}]   ;;  %s5486_s2 = inlined_call_operand.vmem [shape: s32[8,8,1], index: 2, kind: input, shape index: {}]   ;;  %s5487_s3 = inlined_call_operand.vmem [shape: f32[16,128], index: 3, kind: input, shape index: {}]   ;;  %s5488_s4 = inlined_call_operand.vmem [shape: f32[32,128], index: 4, kind: input, shape index: {}]   ;;  %s5489_s5 = inlined_call_operand.vmem [shape: f32[1,128], index: 5, kind: input, shape index: {}]   ;;  %s5490_s6 = inlined_call_operand.vmem [shape: f32[32,5], index: 6, kind: input, shape index: {}]   ;;  %s5491_s7 = inlined_call_operand.vmem [shape: f32[1,5], index: 7, kind: input, shape index: {}]   ;;  %s5492_s8 = inlined_call_operand.vmem [shape: f32[1,5], index: 8, kind: input, shape index: {}]   ;;  %s5493_s9 = inlined_call_operand.vmem [shape: f32[1,5], index: 9, kind: input, shape index: {}]   ;;  %s5494_s10 = inlined_call_operand.vmem [shape: f32[5,5], index: 10, kind: input, shape index: {}]   ;;  %s5495_s11 = inlined_call_operand.hbm [shape: f32[1,1], index: 11, kind: output, shape index: {0}]   ;;  %s5496_s12 = inlined_call_operand.vmem [shape: s32[8,8], index: 12, kind: output, shape index: {1}]  }
   0x1   :  { %v42_v0 = vld [vmem:[%s5487_s3] sm:$0xff]  ;;  %v43_v1 = vld [vmem:[%s5487_s3 + $0x8] sm:$0xff]  ;;  %4073 = vmatprep.subr.bf16.mxu1 %v5497_v3  ;;  %v46_v8 = vld [vmem:[%s5488_s4 + $0x10] sm:$0xff]  ;;  %3831 = vmatprep.mubr.msk.f32.mxu1 %vm4344_vm1, %v5505_v10 }
   0x2   :  { %v44_v2 = vld [vmem:[%s5488_s4] sm:$0xff]  ;;  %v4069_v4 = vpack.c.bf16 %v43_v1, %v42_v0  ;;  %v45_v5 = vld [vmem:[%s5488_s4 + $0x8] sm:$0xff]  ;;  %v47_v9 = vld [vmem:[%s5488_s4 + $0x18] sm:$0xff] }
   0x3   :  { %v61_v6 = vld [vmem:[%s5484_s0] sm:$0xff]  ;;  %v4435_v7 = vpack.c.bf16 %v45_v5, %v44_v2 }
   0x4   :  { %3811 = vmatprep.mubr.msk.f32.mxu0 %vm75_vm0, %v61_v6 }
   0x5   :  { %18 = vsyncpa [#allocation3], 0  ;;  %4070 = vmatprep.subr.bf16.mxu0 %v4069_v4  ;;  %4075 = vmatpush3.bf16.msra.mxu1 %v4435_v7  ;;  %v62_v11 = vld [vmem:[%s5484_s0 + $0x8] sm:$0xff]  ;;  %v4450_v12 = vpack.c.bf16 %v47_v9, %v46_v8  ;;  %v4467_v13 = vld [vmem:[%s5485_s1] sm:$0xff]  ;;  %v5509_v14 = vmov 0   ;;  %s4347_s21 = smov 64  }
   0x6   :  { %4072 = vmatpush3.bf16.msra.mxu0 %v4069_v4  ;;  %4076 = vmatprep.subr.bf16.mxu1 %v5497_v3  ;;  %vm205_vm2 = vcmp.gt.s32.totalorder %v4467_v13, 0  ;;  %v4480_v17 = vld [vmem:[%s5489_s5] ss:$0 sm:$0xff]  ;;  %s4348_s22 = smov 32   ;;  %v63_v34 = vld [vmem:[%s5484_s0 + $0x10] sm:$0xff]  ;;  %v64_v35 = vld [vmem:[%s5484_s0 + $0x18] sm:$0xff] }
   0x7   :  { %4085 = vmatprep.subr.bf16.mxu0 %v5497_v3  ;;  %4180 = vset.pattern.permute.xlu1 %v5509_v14  ;;  %v4473_v15 = vsel %vm205_vm2, 1.0, %v5505_v10  ;;  %v65_v36 = vld [vmem:[%s5484_s0 + $0x20] sm:$0xff]  ;;  %v66_v37 = vld [vmem:[%s5484_s0 + $0x28] sm:$0xff]  ;;  %v67_v38 = vld [vmem:[%s5484_s0 + $0x30] sm:$0xff]  ;;  %vm208_vm3 = vcmask 261120   ;;  %vm423_vm4 = vcmp.gt.s32.totalorder %v4467_v13, 1 }
   0x8   :  { %4181 = vset.pattern.permute.xlu0 %v5509_v14  ;;  %5520 = vst [vmem:[#allocation5_spill] sm:$0xff] %v4473_v15  ;;  %309 = vperm.xlu1 %4180, %v4473_v15   ;;  %v313_v16 = vsub.f32 1.0, %v4473_v15  ;;  %v68_v40 = vld [vmem:[%s5484_s0 + $0x38] sm:$0xff]  ;;  %v49_v59 = vld [vmem:[%s5490_s6] sm:$0xff]  ;;  %v50_v60 = vld [vmem:[%s5490_s6 + $0x8] sm:$0xff]  ;;  %v4548_v63 = vsel %vm423_vm4, 1.0, %v5505_v10 }
   0x9   :  { %3812 = vmatmul.mubr.msk.f32.vlgmr.msra.gmra.mrb[0].mxu0 %vm75_vm0, %v62_v11  ;;  %4078 = vmatpush3.bf16.msra.mxu1 %v4450_v12  ;;  %v4541_v61 = vpack.c.bf16 %v50_v60, %v49_v59  ;;  %5521 = vst [vmem:[#allocation6_spill] sm:$0xff] %v4548_v63  ;;  %v51_v0 = vld [vmem:[%s5490_s6 + $0x10] sm:$0xff]  ;;  %v52_v1 = vld [vmem:[%s5490_s6 + $0x18] sm:$0xff]  ;;  %vm862_vm5 = vcmp.gt.s32.totalorder %v4467_v13, 2  ;;  %vm629_vm6 = vcmask 1044480   ;;  %vm419_vm8 = vcmask 39936  }
   0xa   :  { %4087 = vmatpush3.bf16.msra.mxu0 %v4435_v7  ;;  %4079 = vmatprep.subr.bf16.mxu1 %v5497_v3  ;;  %v4556_v2 = vpack.c.bf16 %v52_v1, %v51_v0  ;;  %vm1275_vm9 = vcmp.gt.s32.totalorder %v4467_v13, 3  ;;  %vm1688_vm11 = vcmp.gt.s32.totalorder %v4467_v13, 4  ;;  %vm2101_vm14 = vcmp.gt.s32.totalorder %v4467_v13, 5 }
   0xb   :  { %4088 = vmatprep.subr.bf16.mxu0 %v5497_v3  ;;  %3814 = vmatprep.mubr.msk.f32.mxu0 %vm75_vm0, %v63_v34 }
   0xc   :  { %3832 = vmatmul.mubr.f32.vlgmr.msra.gmra.mrb[0].mxu1 %v5505_v10  ;;  %316 = vperm.xlu1 %4180, %v313_v16  }
   0xd   :  { %3842 = vmatprep.mubr.msk.f32.mxu1 %vm4344_vm1, %v5505_v10  ;;  %3815 = vmatmul.mubr.msk.f32.gmra.mrb[2].mxu0 %vm75_vm0, %v64_v35 }
   0xe   :  { %4090 = vmatpush3.bf16.msra.mxu0 %v4450_v12  ;;  %3817 = vmatprep.mubr.msk.f32.mxu0 %vm75_vm0, %v65_v36 }
   0xf   :  { %3867 = vmatprep.subr.mxu0 %v5505_v10  ;;  %4081 = vmatpush3.bf16.msra.mxu1 %v4541_v61 }
  0x10   :  { %4082 = vmatprep.subr.bf16.mxu1 %v5497_v3 }
  0x11   :  { %3818 = vmatmul.mubr.msk.f32.gmra.mrb[4].mxu0 %vm75_vm0, %v66_v37 }
  0x12   :  { %3820 = vmatprep.mubr.msk.f32.mxu0 %vm75_vm0, %v67_v38 }
  0x13   :  { %4084 = vmatpush3.bf16.msra.mxu1 %v4556_v2 }
  0x14   :  { %4091 = vmatprep.subr.bf16.mxu1 %v5497_v3 }
  0x15   :  { %3821 = vmatmul.mubr.msk.f32.gmra.mrb[6].mxu0 %vm75_vm0, %v68_v40  ;;  %vm2514_vm0 = vcmp.gt.s32.totalorder %v4467_v13, 6  ;;  %v5499_v13 = vmov 3  }
  0x16   :  { %3853 = vmatprep.mubr.msk.f32.mxu0 %vm4344_vm1, %v5505_v10 }
  0x87   :  { %v310_v41 = vpop.permute.xlu1 %309 }
  0x8b   :  { %v317_v42 = vpop.permute.xlu1 %316 }
  0x8c   :  { %v319_v45 = vmul.f32 0.0, %v317_v42 }
  0xdc   :  { %v3813_v18 = vpop.f32.mrb[0].mxu0 }
  0xdd   :  { %v166_v19 = vpop.f32.mrb[1].mxu0  ;;  %v172_v55 = vadd.f32 %v3813_v18, %v4480_v17 }
  0xde   :  { %v167_v20 = vadd.f32 %v4480_v17, %v166_v19 }
  0xdf   :  { %v278_v21 = vpop.f32.mrb[0].mxu1 }
  0xe0   :  { %v282_v22 = vadd.f32 %v278_v21, %v167_v20  ;;  %v3833_v23 = vpop.f32.mrb[1].mxu1  ;;  %v4519_v48 = vpop.f32.mrb[2].mxu0 }
  0xe1   :  { %v4521_v49 = vpop.f32.mrb[3].mxu0 }
  0xe2   :  { %4218 = vtanh.f32 %v282_v22  ;;  %v3612_v25 = vmul.f32 -1.442695, %v282_v22  ;;  %v177_v38 = vadd.f32 %v4480_v17, %v4521_v49 }
  0xe4   :  { %4220 = vpow2.f32 %v3612_v25  ;;  %v4523_v50 = vpop.f32.mrb[4].mxu0  ;;  %v532_v25 = vsub.f32 1.0, %v4548_v63 }
  0xe5   :  { %v4525_v51 = vpop.f32.mrb[5].mxu0 }
  0xe8   :  { %v4527_v52 = vpop.f32.mrb[6].mxu0 }
  0xe9   :  { %v4529_v53 = vpop.f32.mrb[7].mxu0 }
  0xec   :  { %v4219_v24 = vpop.eup %4218 }
  0xed   :  { %292 = vrot.lane.b32.xlu0 %v4219_v24, %s4347_s21 }
  0xee   :  { %v4221_v26 = vpop.eup %4220 }
  0xef   :  { %v286_v27 = vadd.f32 1.0, %v4221_v26 }
  0xf1   :  { %4222 = vrcp.f32 %v286_v27 }
  0xfb   :  { %v4223_v28 = vpop.eup %4222 }
  0xfc   :  { %v290_v31 = vmul.f32 0.0, %v4223_v28 }
 0x15f   :  { %v293_v29 = vpop.permute.xlu0 %292 }
 0x160   :  { %v295_v30 = vmul.f32 %v4223_v28, %v293_v29 }
 0x162   :  { %297 = vrot.lane.b32.xlu0 %v295_v30, %s4348_s22 }
 0x1d4   :  { %v298_v32 = vpop.permute.xlu0 %297 }
 0x1d5   :  { %v4485_v33 = vadd.f32 %v298_v32, %v290_v31 }
 0x1d7   :  { %4224 = vtanh.f32 %v4485_v33  ;;  %v321_v19 = vmul.f32 %v310_v41, %v4485_v33 }
 0x1d9   :  { %v322_v20 = vadd.f32 %v321_v19, %v319_v45 }
 0x1e1   :  { %v4225_v39 = vpop.eup %4224 }
 0x1e2   :  { %303 = vrot.lane.b32.xlu0 %v4225_v39, %s4347_s21 }
 0x254   :  { %v304_v43 = vpop.permute.xlu0 %303 }
 0x255   :  { %v306_v44 = vmul.f32 %v4223_v28, %v304_v43  ;;  %v4604_v43 = vsel %vm862_vm5, 1.0, %v5505_v10 }
 0x256   :  { %5522 = vst [vmem:[#allocation7_spill] sm:$0xff] %v4604_v43 }
 0x257   :  { %v312_v46 = vmul.f32 %v310_v41, %v306_v44 }
 0x259   :  { %v4515_v47 = vadd.f32 %v319_v45, %v312_v46 }
 0x25b   :  { %427 = vrot.lane.b32.xlu1 %v4515_v47, %s4348_s22 }
 0x2cd   :  { %v428_v54 = vpop.permute.xlu1 %427 }
 0x2ce   :  { %3854 = vmatmul.mubr.msk.f32.vlgmr.msra.gmra.mrb[8].mxu0 %vm208_vm3, %v428_v54 }
 0x2cf   :  { %3869 = vmatprep.mubr.msk.f32.mxu0 %vm4344_vm1, %v5505_v10 }
 0x3a1   :  { %v497_v56 = vpop.f32.mrb[8].mxu0 }
 0x3a2   :  { %v501_v57 = vadd.f32 %v497_v56, %v172_v55  ;;  %v3855_v58 = vpop.f32.mrb[9].mxu0  ;;  %v971_v55 = vsub.f32 1.0, %v4604_v43  ;;  %v3621_v56 = vld [vmem:[%s5486_s2 + $0x8] sm:$0xff] }
 0x3a4   :  { %4226 = vtanh.f32 %v501_v57  ;;  %v3619_v4 = vmul.f32 -1.442695, %v501_v57  ;;  %v4615_v57 = vld [vmem:[%s5494_s10] sm:$0x1f] }
 0x3a5   :  { %3868 = vmatpush3.msk.msra.mxu0 %vm629_vm6, %v4615_v57 }
 0x3a6   :  { %4228 = vpow2.f32 %v3619_v4  ;;  %3872 = vmatprep.subr.mxu0 %v5505_v10 }
 0x3ae   :  { %v4227_v62 = vpop.eup %4226 }
 0x3af   :  { %511 = vrot.lane.b32.xlu0 %v4227_v62, %s4347_s21 }
 0x3b0   :  { %v4229_v5 = vpop.eup %4228 }
 0x3b1   :  { %v505_v6 = vadd.f32 1.0, %v4229_v5  ;;  %v59_v5 = vlaneseq }
 0x3b3   :  { %528 = vperm.xlu0 %4181, %v4548_v63   ;;  %4230 = vrcp.f32 %v505_v6 }
 0x3b7   :  { %330 = vrot.lane.b32.xlu0 %v312_v46, %s4348_s22 }
 0x3bd   :  { %v4231_v8 = vpop.eup %4230 }
 0x3be   :  { %v509_v21 = vmul.f32 %v4231_v8, %v322_v20 }
 0x421   :  { %v512_v9 = vpop.permute.xlu0 %511 }
 0x422   :  { %v514_v11 = vmul.f32 %v4231_v8, %v512_v9 }
 0x424   :  { %516 = vrot.lane.b32.xlu1 %v514_v11, %s4348_s22 }
 0x432   :  { %v4563_v16 = vpop.permute.xlu0 %528 }
 0x436   :  { %v331_v18 = vpop.permute.xlu0 %330 }
 0x437   :  { %3843 = vmatmul.mubr.msk.f32.vlgmr.msra.gmra.mrb[2].mxu1 %vm208_vm3, %v331_v18 }
 0x438   :  { %4093 = vmatpush3.bf16.msra.mxu1 %v4541_v61  ;;  %3864 = vmatprep.mubr.msk.f32.mxu1 %vm4344_vm1, %v5505_v10 }
 0x439   :  { %4094 = vmatprep.subr.bf16.mxu1 %v5497_v3 }
 0x43c   :  { %4096 = vmatpush3.bf16.msra.mxu1 %v4556_v2 }
 0x43d   :  { %4097 = vmatprep.subr.bf16.mxu1 %v5497_v3 }
 0x496   :  { %v517_v22 = vpop.permute.xlu1 %516 }
 0x497   :  { %v519_v23 = vadd.f32 %v517_v22, %v509_v21 }
 0x499   :  { %4232 = vtanh.f32 %v519_v23  ;;  %v540_v59 = vmul.f32 %v4563_v16, %v519_v23 }
 0x4a3   :  { %v4233_v24 = vpop.eup %4232 }
 0x4a4   :  { %522 = vrot.lane.b32.xlu1 %v4233_v24, %s4347_s21 }
 0x4a8   :  { %535 = vperm.xlu1 %4180, %v532_v25  }
 0x50a   :  { %v4575_v26 = vpop.f32.mrb[2].mxu1 }
 0x50b   :  { %v3844_v27 = vpop.f32.mrb[3].mxu1 }
 0x516   :  { %v523_v28 = vpop.permute.xlu1 %522 }
 0x517   :  { %v525_v29 = vmul.f32 %v4231_v8, %v523_v28  ;;  %v4632_v8 = vand.u32 127, %v59_v5  ;;  %v182_v28 = vadd.f32 %v4519_v48, %v4480_v17 }
 0x519   :  { %v531_v30 = vmul.f32 %v4563_v16, %v525_v29 }
 0x51b   :  { %544 = vrot.lane.b32.xlu1 %v531_v30, %s4348_s22 }
 0x527   :  { %v4579_v31 = vpop.permute.xlu1 %535 }
 0x528   :  { %v538_v32 = vmul.f32 %v4579_v31, %v4515_v47  ;;  %v541_v58 = vmul.f32 %v4579_v31, %v322_v20 }
 0x52a   :  { %v4583_v33 = vadd.f32 %v538_v32, %v531_v30  ;;  %v4625_v60 = vadd.f32 %v541_v58, %v540_v59 }
 0x52c   :  { %866 = vrot.lane.b32.xlu0 %v4583_v33, %s4348_s22 }
 0x58d   :  { %v545_v34 = vpop.permute.xlu1 %544 }
 0x58e   :  { %3865 = vmatmul.mubr.msk.f32.vlgmr.msra.gmra.mrb[4].mxu1 %vm208_vm3, %v545_v34  ;;  %v4665_v34 = vsel %vm1275_vm9, 1.0, %v5505_v10 }
 0x58f   :  { %4099 = vmatpush3.bf16.msra.mxu1 %v4435_v7  ;;  %3885 = vmatprep.mubr.msk.f32.mxu1 %vm4344_vm1, %v5505_v10  ;;  %5523 = vst [vmem:[#allocation8_spill] sm:$0xff] %v4665_v34 }
 0x590   :  { %4100 = vmatprep.subr.bf16.mxu1 %v5497_v3 }
 0x593   :  { %4102 = vmatpush3.bf16.msra.mxu1 %v4450_v12 }
 0x594   :  { %3899 = vmatprep.subr.mxu1 %v5505_v10 }
 0x59e   :  { %v867_v35 = vpop.permute.xlu0 %866 }
 0x59f   :  { %3886 = vmatmul.mubr.msk.f32.vlgmr.msra.gmra.mrb[6].mxu1 %vm208_vm3, %v867_v35 }
 0x5a0   :  { %3901 = vmatprep.mubr.msk.f32.mxu1 %vm4344_vm1, %v5505_v10  ;;  %3900 = vmatpush3.msk.msra.mxu1 %vm629_vm6, %v4615_v57 }
 0x5a1   :  { %4109 = vmatprep.subr.bf16.mxu1 %v5497_v3 }
 0x661   :  { %v4597_v36 = vpop.f32.mrb[4].mxu1 }
 0x662   :  { %v3866_v37 = vpop.f32.mrb[5].mxu1 }
 0x672   :  { %v936_v39 = vpop.f32.mrb[6].mxu1 }
 0x673   :  { %v940_v40 = vadd.f32 %v936_v39, %v177_v38  ;;  %v3887_v41 = vpop.f32.mrb[7].mxu1 }
 0x674   :  { %v1384_v41 = vsub.f32 1.0, %v4665_v34 }
 0x675   :  { %4234 = vtanh.f32 %v940_v40  ;;  %v3629_v44 = vmul.f32 -1.442695, %v940_v40 }
 0x677   :  { %4236 = vpow2.f32 %v3629_v44  ;;  %v4676_v44 = vld [vmem:[%s5491_s7] ss:$0 sm:$0xff] }
 0x67f   :  { %v4235_v42 = vpop.eup %4234 }
 0x680   :  { %950 = vrot.lane.b32.xlu1 %v4235_v42, %s4347_s21  ;;  %v3631_v42 = vld [vmem:[%s5486_s2 + $0x10] sm:$0xff] }
 0x681   :  { %v4237_v45 = vpop.eup %4236 }
 0x682   :  { %v944_v46 = vadd.f32 1.0, %v4237_v45  ;;  %v401_v45 = vadd.f32 %v4676_v44, %v4575_v26 }
 0x684   :  { %967 = vperm.xlu1 %4180, %v4604_v43   ;;  %4238 = vrcp.f32 %v944_v46  ;;  %v3616_v46 = vld [vmem:[%s5492_s8] ss:$0 sm:$0xff] }
 0x68e   :  { %v4239_v47 = vpop.eup %4238 }
 0x68f   :  { %v948_v62 = vmul.f32 %v4239_v47, %v4625_v60 }
 0x6f2   :  { %v951_v49 = vpop.permute.xlu1 %950 }
 0x6f3   :  { %v953_v54 = vmul.f32 %v4239_v47, %v951_v49 }
 0x6f5   :  { %955 = vrot.lane.b32.xlu0 %v953_v54, %s4348_s22 }
 0x6f9   :  { %974 = vperm.xlu0 %4181, %v971_v55  }
 0x6fd   :  { %621 = vperm.xlu0 %4181, %v3621_v56  }
 0x703   :  { %v4646_v18 = vpop.permute.xlu1 %967 }
 0x767   :  { %v956_v0 = vpop.permute.xlu0 %955 }
 0x768   :  { %v958_v1 = vadd.f32 %v956_v0, %v948_v62 }
 0x76a   :  { %4240 = vtanh.f32 %v958_v1  ;;  %v979_v55 = vmul.f32 %v4646_v18, %v958_v1 }
 0x774   :  { %v4241_v4 = vpop.eup %4240 }
 0x775   :  { %961 = vrot.lane.b32.xlu1 %v4241_v4, %s4347_s21 }
 0x778   :  { %v4629_v6 = vpop.permute.xlu0 %974 }
 0x779   :  { %v977_v22 = vmul.f32 %v4629_v6, %v4583_v33  ;;  %v980_v54 = vmul.f32 %v4629_v6, %v4625_v60 }
 0x77b   :  { %v4691_v56 = vadd.f32 %v980_v54, %v979_v55 }
 0x77c   :  { %v622_v9 = vpop.permute.xlu0 %621 }
 0x77d   :  { %vm623_vm7 = vcmp.eq.s32.totalorder %v4632_v8, %v622_v9 }
 0x77e   :  { %v4636_v11 = vsel %vm623_vm7, 1.0, %v5505_v10 }
 0x77f   :  { %3902 = vmatmul.mubr.msk.f32.vlgmr.msra.gmra.mrb[8].mxu1 %vm419_vm8, %v4636_v11 }
 0x780   :  { %4111 = vmatpush3.bf16.msra.mxu1 %v4435_v7  ;;  %3917 = vmatprep.mubr.msk.f32.mxu1 %vm4344_vm1, %v5505_v10 }
 0x781   :  { %4112 = vmatprep.subr.bf16.mxu1 %v5497_v3 }
 0x784   :  { %4114 = vmatpush3.bf16.msra.mxu1 %v4450_v12 }
 0x785   :  { %3931 = vmatprep.subr.mxu1 %v5505_v10 }
 0x7e7   :  { %v962_v19 = vpop.permute.xlu1 %961 }
 0x7e8   :  { %v964_v20 = vmul.f32 %v4239_v47, %v962_v19  ;;  %v4683_v47 = vadd.f32 %v3616_v46, %v401_v45  ;;  %v4743_v45 = vsel %vm1688_vm11, 1.0, %v5505_v10 }
 0x7e9   :  { %5524 = vst [vmem:[#allocation9_spill] sm:$0xff] %v4743_v45 }
 0x7ea   :  { %v970_v21 = vmul.f32 %v4646_v18, %v964_v20  ;;  %v712_v49 = vsel %vm419_vm8, %v4683_v47, -inf }
 0x7ec   :  { %v978_v23 = vadd.f32 %v977_v22, %v970_v21 }
 0x7ee   :  { %1279 = vrot.lane.b32.xlu1 %v978_v23, %s4348_s22 }
 0x852   :  { %v4652_v24 = vpop.f32.mrb[8].mxu1 }
 0x853   :  { %v3903_v25 = vpop.f32.mrb[9].mxu1 }
 0x860   :  { %v1280_v27 = vpop.permute.xlu1 %1279 }
 0x861   :  { %3918 = vmatmul.mubr.msk.f32.vlgmr.msra.gmra.mrb[10].mxu1 %vm208_vm3, %v1280_v27 }
 0x862   :  { %3932 = vmatpush3.msk.msra.mxu1 %vm629_vm6, %v4615_v57  ;;  %3933 = vmatprep.mubr.msk.f32.mxu1 %vm4344_vm1, %v5505_v10 }
 0x863   :  { %4121 = vmatprep.subr.bf16.mxu1 %v5497_v3 }
 0x934   :  { %v1349_v29 = vpop.f32.mrb[10].mxu1 }
 0x935   :  { %v1353_v30 = vadd.f32 %v1349_v29, %v182_v28  ;;  %v3919_v32 = vpop.f32.mrb[11].mxu1 }
 0x937   :  { %4242 = vtanh.f32 %v1353_v30  ;;  %v3639_v35 = vmul.f32 -1.442695, %v1353_v30 }
 0x939   :  { %4244 = vpow2.f32 %v3639_v35  ;;  %v404_v35 = vld [vmem:[%s5486_s2] sm:$0xff] }
 0x941   :  { %v4243_v33 = vpop.eup %4242 }
 0x942   :  { %1363 = vrot.lane.b32.xlu0 %v4243_v33, %s4347_s21 }
 0x943   :  { %v4245_v37 = vpop.eup %4244 }
 0x944   :  { %v1357_v38 = vadd.f32 1.0, %v4245_v37 }
 0x946   :  { %1380 = vperm.xlu0 %4181, %v4665_v34   ;;  %4246 = vrcp.f32 %v1357_v38 }
 0x950   :  { %v4247_v48 = vpop.eup %4246 }
 0x951   :  { %v1361_v26 = vmul.f32 %v4247_v48, %v4691_v56 }
 0x9b4   :  { %v1364_v39 = vpop.permute.xlu0 %1363 }
 0x9b5   :  { %v1366_v40 = vmul.f32 %v4247_v48, %v1364_v39 }
 0x9b7   :  { %1368 = vrot.lane.b32.xlu1 %v1366_v40, %s4348_s22 }
 0x9bb   :  { %1387 = vperm.xlu1 %4180, %v1384_v41  }
 0x9bf   :  { %1060 = vperm.xlu1 %4180, %v3631_v42   ;;  %v57_v42 = vmul.f32 1.442695, %v4615_v57 }
 0x9c5   :  { %v4712_v1 = vpop.permute.xlu0 %1380 }
 0x9e3   :  { %713 = vmax.xlane.f32.xlu1 %v712_v49  ;;  %v1797_v49 = vsub.f32 1.0, %v4743_v45 }
 0x9f4   :  { %983 = vrot.lane.b32.xlu1 %v970_v21, %s4348_s22 }
 0xa29   :  { %v1369_v58 = vpop.permute.xlu1 %1368 }
 0xa2a   :  { %v4694_v59 = vadd.f32 %v1369_v58, %v1361_v26 }
 0xa2c   :  { %4248 = vtanh.f32 %v4694_v59 }
 0xa36   :  { %v4249_v62 = vpop.eup %4248 }
 0xa37   :  { %1374 = vrot.lane.b32.xlu0 %v4249_v62, %s4347_s21 }
 0xa3a   :  { %v4698_v0 = vpop.permute.xlu1 %1387 }
 0xa3b   :  { %v1390_v21 = vmul.f32 %v4698_v0, %v978_v23  ;;  %v187_v23 = vadd.f32 %v4480_v17, %v4525_v51 }
 0xa3e   :  { %v1061_v4 = vpop.permute.xlu1 %1060 }
 0xa3f   :  { %vm1062_vm10 = vcmp.eq.s32.totalorder %v4632_v8, %v1061_v4 }
 0xa40   :  { %v4702_v60 = vsel %vm1062_vm10, 1.0, %v5505_v10 }
 0xa41   :  { %3934 = vmatmul.mubr.msk.f32.vlgmr.msra.gmra.mrb[12].mxu1 %vm419_vm8, %v4702_v60 }
 0xa42   :  { %4123 = vmatpush3.bf16.msra.mxu1 %v4435_v7  ;;  %3949 = vmatprep.mubr.msk.f32.mxu1 %vm4344_vm1, %v5505_v10 }
 0xa43   :  { %4124 = vmatprep.subr.bf16.mxu1 %v5497_v3 }
 0xa46   :  { %4126 = vmatpush3.bf16.msra.mxu1 %v4450_v12 }
 0xa47   :  { %3963 = vmatprep.subr.mxu1 %v5505_v10 }
 0xa70   :  { %v4738_v41 = vpop.xlane.xlu1 %713 }
 0xa71   :  { %v715_v46 = vsub.f32 %v4683_v47, %v4738_v41 }
 0xa73   :  { %v716_v54 = vmul.f32 1.442695, %v715_v46 }
 0xa74   :  { %v984_v4 = vpop.permute.xlu1 %983 }
 0xaa9   :  { %v1375_v9 = vpop.permute.xlu0 %1374 }
 0xaaa   :  { %v1377_v19 = vmul.f32 %v4247_v48, %v1375_v9  ;;  %v1393_v9 = vmul.f32 %v4698_v0, %v4691_v56 }
 0xaac   :  { %v4715_v20 = vmul.f32 %v4712_v1, %v1377_v19  ;;  %v1392_v19 = vmul.f32 %v4712_v1, %v4694_v59 }
 0xaae   :  { %v4719_v22 = vadd.f32 %v1390_v21, %v4715_v20  ;;  %v4779_v21 = vadd.f32 %v1393_v9, %v1392_v19 }
 0xab0   :  { %1692 = vrot.lane.b32.xlu0 %v4719_v22, %s4348_s22 }
 0xb14   :  { %v4723_v25 = vpop.f32.mrb[12].mxu1 }
 0xb15   :  { %v3935_v27 = vpop.f32.mrb[13].mxu1 }
 0xb22   :  { %v1693_v28 = vpop.permute.xlu0 %1692 }
 0xb23   :  { %3950 = vmatmul.mubr.msk.f32.vlgmr.msra.gmra.mrb[14].mxu1 %vm208_vm3, %v1693_v28 }
 0xb24   :  { %3964 = vmatpush3.msk.msra.mxu1 %vm629_vm6, %v4615_v57  ;;  %3965 = vmatprep.mubr.msk.f32.mxu1 %vm4344_vm1, %v5505_v10 }
 0xb25   :  { %4133 = vmatprep.subr.bf16.mxu1 %v5497_v3 }
 0xbf6   :  { %v1762_v29 = vpop.f32.mrb[14].mxu1 }
 0xbf7   :  { %v1766_v30 = vadd.f32 %v1762_v29, %v187_v23  ;;  %v3951_v32 = vpop.f32.mrb[15].mxu1 }
 0xbf9   :  { %4250 = vtanh.f32 %v1766_v30  ;;  %v3649_v37 = vmul.f32 -1.442695, %v1766_v30  ;;  %v3641_v30 = vld [vmem:[%s5486_s2 + $0x18] sm:$0xff] }
 0xbfb   :  { %4252 = vpow2.f32 %v3649_v37 }
 0xc03   :  { %v4251_v33 = vpop.eup %4250 }
 0xc04   :  { %1776 = vrot.lane.b32.xlu0 %v4251_v33, %s4347_s21 }
 0xc05   :  { %v4253_v38 = vpop.eup %4252 }
 0xc06   :  { %v1770_v48 = vadd.f32 1.0, %v4253_v38 }
 0xc08   :  { %406 = vperm.xlu0 %4181, %v404_v35   ;;  %4254 = vrcp.f32 %v1770_v48 }
 0xc09   :  { %4256 = vpow2.f32 %v57_v42 }
 0xc0a   :  { %4258 = vpow2.f32 %v716_v54 }
 0xc12   :  { %v4255_v39 = vpop.eup %4254 }
 0xc13   :  { %v4749_v26 = vpop.eup %4256  ;;  %v1774_v27 = vmul.f32 %v4255_v39, %v4779_v21 }
 0xc14   :  { %v4259_v62 = vpop.eup %4258 }
 0xc76   :  { %v1777_v40 = vpop.permute.xlu0 %1776 }
 0xc77   :  { %v1779_v51 = vmul.f32 %v4255_v39, %v1777_v40 }
 0xc79   :  { %1781 = vrot.lane.b32.xlu0 %v1779_v51, %s4348_s22 }
 0xc7d   :  { %1793 = vperm.xlu0 %4181, %v4743_v45  }
 0xc81   :  { %1800 = vperm.xlu0 %4181, %v1797_v49  }
 0xc87   :  { %v407_v55 = vpop.permute.xlu0 %406 }
 0xc88   :  { %vm408_vm12 = vcmp.eq.s32.totalorder %v4632_v8, %v407_v55 }
 0xc89   :  { %v4753_v58 = vsel %vm408_vm12, 1.0, %v5505_v10 }
 0xc8a   :  { %3870 = vmatmul.mubr.msk.f32.vlgmr.msra.gmra.mrb[10].mxu0 %vm419_vm8, %v4753_v58  ;;  %v710_v63 = vmul.f32 %v4753_v58, %v4579_v31 }
 0xc8b   :  { %3873 = vmatpush3.msk.msra.mxu0 %vm629_vm6, %v4749_v26  ;;  %3874 = vmatprep.mubr.msk.f32.mxu0 %vm4344_vm1, %v5505_v10 }
 0xc8c   :  { %4103 = vmatprep.subr.bf16.mxu0 %v5497_v3 }
 0xc8e   :  { %3875 = vmatmul.mubr.msk.f32.vlgmr.msra.gmra.mrb[12].mxu0 %vm419_vm8, %v4259_v62 }
 0xc8f   :  { %4105 = vmatpush3.bf16.msra.mxu0 %v4541_v61  ;;  %3896 = vmatprep.mubr.msk.f32.mxu0 %vm4344_vm1, %v5505_v10 }
 0xc90   :  { %4106 = vmatprep.subr.bf16.mxu0 %v5497_v3 }
 0xc93   :  { %4108 = vmatpush3.bf16.msra.mxu0 %v4556_v2 }
 0xc94   :  { %3904 = vmatprep.subr.mxu0 %v5505_v10 }
 0xc96   :  { %3897 = vmatmul.mubr.msk.f32.vlgmr.msra.gmra.mrb[14].mxu0 %vm208_vm3, %v984_v4  ;;  %v4820_v4 = vadd.f32 %v4676_v44, %v4597_v36 }
 0xc97   :  { %3905 = vmatpush3.msk.msra.mxu0 %vm629_vm6, %v4749_v26  ;;  %3906 = vmatprep.mubr.msk.f32.mxu0 %vm4344_vm1, %v5505_v10 }
 0xc98   :  { %4115 = vmatprep.subr.bf16.mxu0 %v5497_v3 }
 0xceb   :  { %v1782_v28 = vpop.permute.xlu0 %1781 }
 0xcec   :  { %v4782_v23 = vadd.f32 %v1782_v28, %v1774_v27 }
 0xcee   :  { %4260 = vtanh.f32 %v4782_v23 }
 0xcf8   :  { %v4261_v29 = vpop.eup %4260 }
 0xcf9   :  { %1787 = vrot.lane.b32.xlu0 %v4261_v29, %s4347_s21 }
 0xcfc   :  { %v4791_v32 = vpop.permute.xlu0 %1793 }
 0xcfd   :  { %1473 = vperm.xlu0 %4181, %v3641_v30  }
 0xd00   :  { %v4793_v37 = vpop.permute.xlu0 %1800 }
 0xd01   :  { %v1803_v46 = vmul.f32 %v4793_v37, %v4719_v22 }
 0xd5d   :  { %v4789_v56 = vpop.f32.mrb[10].mxu0 }
 0xd5e   :  { %v3871_v59 = vpop.f32.mrb[11].mxu0 }
 0xd61   :  { %v790_v33 = vpop.f32.mrb[12].mxu0 }
 0xd62   :  { %v3876_v35 = vpop.f32.mrb[13].mxu0  ;;  %4262 = vlog2.f32 %v790_v33 }
 0xd69   :  { %v4795_v38 = vpop.f32.mrb[14].mxu0 }
 0xd6a   :  { %v3898_v48 = vpop.f32.mrb[15].mxu0 }
 0xd6b   :  { %v1788_v40 = vpop.permute.xlu0 %1787 }
 0xd6c   :  { %v1790_v51 = vmul.f32 %v4255_v39, %v1788_v40  ;;  %v4263_v54 = vpop.eup %4262  ;;  %v192_v40 = vadd.f32 %v4523_v50, %v4480_v17  ;;  %v4853_v50 = vsel %vm2101_vm14, 1.0, %v5505_v10 }
 0xd6d   :  { %v795_v55 = vmul.f32 0.6931472, %v4263_v54  ;;  %5527 = vst [vmem:[#allocation12_spill] sm:$0xff] %v4853_v50 }
 0xd6e   :  { %v4798_v42 = vmul.f32 %v4791_v32, %v1790_v51 }
 0xd6f   :  { %v796_v22 = vadd.f32 %v795_v55, %v4738_v41  ;;  %v4828_v41 = vmul.f32 %v4579_v31, %v4683_v47 }
 0xd70   :  { %v4803_v49 = vadd.f32 %v1803_v46, %v4798_v42 }
 0xd71   :  { %v797_v9 = vadd.f32 %v796_v22, %v4820_v4 }
 0xd72   :  { %2105 = vrot.lane.b32.xlu0 %v4803_v49, %s4348_s22 }
 0xd73   :  { %v798_v19 = vmul.f32 %v797_v9, %v4563_v16 }
 0xd75   :  { %v800_v27 = vadd.f32 %v4828_v41, %v798_v19 }
 0xd77   :  { %v1147_v28 = vsel %vm419_vm8, %v800_v27, -inf }
 0xd7c   :  { %v1474_v62 = vpop.permute.xlu0 %1473 }
 0xd7d   :  { %vm1475_vm13 = vcmp.eq.s32.totalorder %v4632_v8, %v1474_v62 }
 0xd7e   :  { %v4809_v39 = vsel %vm1475_vm13, 1.0, %v5505_v10 }
 0xd7f   :  { %5525 = vst [vmem:[#allocation10_spill] sm:$0xff] %v4809_v39  ;;  %3966 = vmatmul.mubr.msk.f32.vlgmr.msra.gmra.mrb[16].mxu1 %vm419_vm8, %v4809_v39 }
 0xd80   :  { %4135 = vmatpush3.bf16.msra.mxu1 %v4435_v7  ;;  %3981 = vmatprep.mubr.msk.f32.mxu1 %vm4344_vm1, %v5505_v10 }
 0xd81   :  { %4136 = vmatprep.subr.bf16.mxu1 %v5497_v3 }
 0xd84   :  { %4138 = vmatpush3.bf16.msra.mxu1 %v4450_v12 }
 0xd85   :  { %3995 = vmatprep.subr.mxu1 %v5505_v10 }
 0xd91   :  { %1148 = vmax.xlane.f32.xlu0 %v1147_v28 }
 0xde4   :  { %v2106_v29 = vpop.permute.xlu0 %2105 }
 0xde5   :  { %3982 = vmatmul.mubr.msk.f32.vlgmr.msra.gmra.mrb[18].mxu1 %vm208_vm3, %v2106_v29 }
 0xde6   :  { %3996 = vmatpush3.msk.msra.mxu1 %vm629_vm6, %v4615_v57  ;;  %3997 = vmatprep.mubr.msk.f32.mxu1 %vm4344_vm1, %v5505_v10 }
 0xde7   :  { %4145 = vmatprep.subr.bf16.mxu1 %v5497_v3 }
 0xe1e   :  { %v1149_v36 = vpop.xlane.xlu0 %1148 }
 0xe1f   :  { %v1150_v30 = vsub.f32 %v800_v27, %v1149_v36 }
 0xe21   :  { %v1151_v59 = vmul.f32 1.442695, %v1150_v30 }
 0xe23   :  { %4264 = vpow2.f32 %v1151_v59 }
 0xe2d   :  { %v4265_v33 = vpop.eup %4264 }
 0xe2e   :  { %3907 = vmatmul.mubr.msk.f32.vlgmr.msra.gmra.mrb[16].mxu0 %vm419_vm8, %v4265_v33  ;;  %v2210_v33 = vsub.f32 1.0, %v4853_v50 }
 0xe2f   :  { %4117 = vmatpush3.bf16.msra.mxu0 %v4541_v61  ;;  %3928 = vmatprep.mubr.msk.f32.mxu0 %vm4344_vm1, %v5505_v10 }
 0xe30   :  { %4118 = vmatprep.subr.bf16.mxu0 %v5497_v3 }
 0xe33   :  { %4120 = vmatpush3.bf16.msra.mxu0 %v4556_v2 }
 0xe34   :  { %3936 = vmatprep.subr.mxu0 %v5505_v10 }
 0xe52   :  { %v4845_v35 = vpop.f32.mrb[16].mxu1 }
 0xe53   :  { %5526 = vst [vmem:[#allocation11_spill] sm:$0xff] %v4845_v35  ;;  %v3967_v48 = vpop.f32.mrb[17].mxu1  ;;  %v1557_v35 = vmul.f32 %v4809_v39, %v4712_v1 }
 0xeb8   :  { %v2175_v51 = vpop.f32.mrb[18].mxu1 }
 0xeb9   :  { %v2179_v46 = vadd.f32 %v2175_v51, %v192_v40  ;;  %v3983_v54 = vpop.f32.mrb[19].mxu1 }
 0xebb   :  { %4266 = vtanh.f32 %v2179_v46  ;;  %v3659_v9 = vmul.f32 -1.442695, %v2179_v46  ;;  %v4859_v46 = vadd.f32 %v4676_v44, %v4795_v38 }
 0xebd   :  { %4268 = vpow2.f32 %v3659_v9 }
 0xec5   :  { %v4267_v55 = vpop.eup %4266 }
 0xec6   :  { %2189 = vrot.lane.b32.xlu1 %v4267_v55, %s4347_s21 }
 0xec7   :  { %v4269_v19 = vpop.eup %4268 }
 0xec8   :  { %v2183_v28 = vadd.f32 1.0, %v4269_v19 }
 0xeca   :  { %4270 = vrcp.f32 %v2183_v28 }
 0xed4   :  { %v4271_v29 = vpop.eup %4270 }
 0xf01   :  { %v1222_v62 = vpop.f32.mrb[16].mxu0 }
 0xf02   :  { %v3908_v22 = vpop.f32.mrb[17].mxu0  ;;  %4272 = vlog2.f32 %v1222_v62  ;;  %v1806_v62 = vmul.f32 %v4793_v37, %v4779_v21  ;;  %v3651_v21 = vld [vmem:[%s5486_s2 + $0x20] sm:$0xff] }
 0xf03   :  { %v1231_v22 = vmul.f32 %v4629_v6, %v800_v27 }
 0xf0c   :  { %v4273_v48 = vpop.eup %4272 }
 0xf0d   :  { %v1227_v40 = vmul.f32 0.6931472, %v4273_v48 }
 0xf0f   :  { %v1228_v51 = vadd.f32 %v1227_v40, %v1149_v36  ;;  %v1805_v36 = vmul.f32 %v4791_v32, %v4782_v23 }
 0xf11   :  { %v1229_v54 = vadd.f32 %v1228_v51, %v4859_v46  ;;  %v4872_v38 = vadd.f32 %v1806_v62, %v1805_v36 }
 0xf13   :  { %v1230_v55 = vmul.f32 %v1229_v54, %v4646_v18  ;;  %v2187_v28 = vmul.f32 %v4271_v29, %v4872_v38 }
 0xf15   :  { %v4864_v9 = vadd.f32 %v1231_v22, %v1230_v55 }
 0xf17   :  { %v1560_v19 = vsel %vm419_vm8, %v4864_v9, -inf }
 0xf38   :  { %v2190_v30 = vpop.permute.xlu1 %2189 }
 0xf39   :  { %v2192_v59 = vmul.f32 %v4271_v29, %v2190_v30 }
 0xf3b   :  { %2194 = vrot.lane.b32.xlu1 %v2192_v59, %s4348_s22 }
 0xf3f   :  { %2206 = vperm.xlu1 %4180, %v4853_v50  }
 0xf43   :  { %2213 = vperm.xlu1 %4180, %v2210_v33  }
 0xf67   :  { %1561 = vmax.xlane.f32.xlu1 %v1560_v19 }
 0xfad   :  { %v2195_v30 = vpop.permute.xlu1 %2194 }
 0xfae   :  { %v4875_v59 = vadd.f32 %v2195_v30, %v2187_v28 }
 0xfb0   :  { %4274 = vtanh.f32 %v4875_v59 }
 0xfba   :  { %v4275_v27 = vpop.eup %4274 }
 0xfbb   :  { %2200 = vrot.lane.b32.xlu0 %v4275_v27, %s4347_s21 }
 0xfbe   :  { %v4884_v23 = vpop.permute.xlu1 %2206 }
 0xfbf   :  { %1396 = vrot.lane.b32.xlu0 %v4715_v20, %s4348_s22 }
 0xfc2   :  { %v4886_v33 = vpop.permute.xlu1 %2213 }
 0xfc3   :  { %1886 = vperm.xlu0 %4181, %v3651_v21   ;;  %v2216_v20 = vmul.f32 %v4886_v33, %v4803_v49 }
 0xff4   :  { %v1562_v48 = vpop.xlane.xlu1 %1561 }
 0xff5   :  { %v1563_v40 = vsub.f32 %v4864_v9, %v1562_v48 }
 0xff7   :  { %v1564_v51 = vmul.f32 1.442695, %v1563_v40 }
 0xff9   :  { %4276 = vpow2.f32 %v1564_v51 }
0x102d   :  { %v2201_v54 = vpop.permute.xlu0 %2200 }
0x102e   :  { %v2203_v55 = vmul.f32 %v4271_v29, %v2201_v54  ;;  %v4277_v29 = vpop.eup %4276 }
0x1030   :  { %v2209_v22 = vmul.f32 %v4884_v23, %v2203_v55 }
0x1031   :  { %v1397_v19 = vpop.permute.xlu0 %1396 }
0x1032   :  { %3929 = vmatmul.mubr.msk.f32.vlgmr.msra.gmra.mrb[18].mxu0 %vm208_vm3, %v1397_v19  ;;  %v4893_v62 = vadd.f32 %v2216_v20, %v2209_v22 }
0x1033   :  { %3937 = vmatpush3.msk.msra.mxu0 %vm629_vm6, %v4749_v26  ;;  %3938 = vmatprep.mubr.msk.f32.mxu0 %vm4344_vm1, %v5505_v10 }
0x1034   :  { %2518 = vrot.lane.b32.xlu0 %v4893_v62, %s4348_s22  ;;  %4127 = vmatprep.subr.bf16.mxu0 %v5497_v3 }
0x1036   :  { %3939 = vmatmul.mubr.msk.f32.vlgmr.msra.gmra.mrb[20].mxu0 %vm419_vm8, %v4277_v29 }
0x1037   :  { %4129 = vmatpush3.bf16.msra.mxu0 %v4541_v61  ;;  %3960 = vmatprep.mubr.msk.f32.mxu0 %vm4344_vm1, %v5505_v10 }
0x1038   :  { %4130 = vmatprep.subr.bf16.mxu0 %v5497_v3 }
0x103b   :  { %4132 = vmatpush3.bf16.msra.mxu0 %v4556_v2 }
0x103c   :  { %3968 = vmatprep.subr.mxu0 %v5505_v10 }
0x1042   :  { %v1887_v49 = vpop.permute.xlu0 %1886 }
0x1043   :  { %vm1888_vm15 = vcmp.eq.s32.totalorder %v4632_v8, %v1887_v49 }
0x1044   :  { %v4911_v36 = vsel %vm1888_vm15, 1.0, %v5505_v10 }
0x1045   :  { %5528 = vst [vmem:[#allocation13_spill] sm:$0xff] %v4911_v36  ;;  %3998 = vmatmul.mubr.msk.f32.vlgmr.msra.gmra.mrb[20].mxu1 %vm419_vm8, %v4911_v36 }
0x1046   :  { %4147 = vmatpush3.bf16.msra.mxu1 %v4435_v7  ;;  %4013 = vmatprep.mubr.msk.f32.mxu1 %vm4344_vm1, %v5505_v10 }
0x1047   :  { %4148 = vmatprep.subr.bf16.mxu1 %v5497_v3 }
0x104a   :  { %4150 = vmatpush3.bf16.msra.mxu1 %v4450_v12 }
0x104b   :  { %4027 = vmatprep.subr.mxu1 %v5505_v10 }
0x10a6   :  { %v2519_v28 = vpop.permute.xlu0 %2518 }
0x10a7   :  { %4014 = vmatmul.mubr.msk.f32.vlgmr.msra.gmra.mrb[22].mxu1 %vm208_vm3, %v2519_v28 }
0x10a8   :  { %4028 = vmatpush3.msk.msra.mxu1 %vm629_vm6, %v4615_v57  ;;  %4029 = vmatprep.mubr.msk.f32.mxu1 %vm4344_vm1, %v5505_v10 }
0x10a9   :  { %4157 = vmatprep.subr.bf16.mxu1 %v5497_v3  ;;  %v1644_v3 = vmul.f32 %v4698_v0, %v4864_v9  ;;  %v197_v9 = vadd.f32 %v4480_v17, %v4529_v53 }
0x1105   :  { %v1466_v30 = vpop.f32.mrb[18].mxu0 }
0x1106   :  { %v3930_v27 = vpop.f32.mrb[19].mxu0  ;;  %v4928_v55 = vadd.f32 %v4676_v44, %v1466_v30 }
0x1109   :  { %v1635_v21 = vpop.f32.mrb[20].mxu0 }
0x110a   :  { %4278 = vlog2.f32 %v1635_v21  ;;  %v3940_v40 = vpop.f32.mrb[21].mxu0 }
0x110b   :  { %v5501_v40 = vmov 1  }
0x1114   :  { %v4279_v51 = vpop.eup %4278 }
0x1115   :  { %v1640_v54 = vmul.f32 0.6931472, %v4279_v51 }
0x1117   :  { %v1641_v20 = vadd.f32 %v1640_v54, %v1562_v48  ;;  %v4942_v48 = vsel %vm2514_vm0, 1.0, %v5505_v10 }
0x1118   :  { %v4930_v19 = vpop.f32.mrb[20].mxu1  ;;  %5529 = vst [vmem:[#allocation14_spill] sm:$0xff] %v4942_v48  ;;  %v2623_v30 = vsub.f32 1.0, %v4942_v48 }
0x1119   :  { %v1642_v29 = vadd.f32 %v1641_v20, %v4928_v55  ;;  %v3999_v49 = vpop.f32.mrb[21].mxu1 }
0x111b   :  { %v1643_v28 = vmul.f32 %v1642_v29, %v4712_v1 }
0x111d   :  { %v4936_v27 = vadd.f32 %v1644_v3, %v1643_v28  ;;  %v5503_v3 = vmov 2   ;;  %v4964_v28 = vshrl.u32 %v59_v5, 7 }
0x111f   :  { %v1973_v21 = vsel %vm419_vm8, %v4936_v27, -inf  ;;  %v817_v17 = vsub.s32 1, %v4964_v28  ;;  %v808_v53 = vsub.s32 0, %v4964_v28 }
0x1120   :  { %1974 = vmax.xlane.f32.xlu0 %v1973_v21 }
0x1136   :  { %2626 = vperm.xlu0 %4181, %v2623_v30  }
0x113a   :  { %2222 = vrot.lane.b32.xlu0 %v2209_v22, %s4348_s22 }
0x113e   :  { %803 = vperm.xlu0 %4181, %v4683_v47  }
0x1142   :  { %4182 = vset.pattern.permute.xlu0 %v5501_v40  ;;  %v841_v40 = vsub.s32 3, %v4964_v28 }
0x1143   :  { %812 = vperm.xlu0 %4182, %v4683_v47  }
0x1147   :  { %4183 = vset.pattern.permute.xlu0 %v5503_v3 }
0x1148   :  { %824 = vperm.xlu0 %4183, %v4683_v47  }
0x114c   :  { %4184 = vset.pattern.permute.xlu0 %v5499_v13 }
0x114d   :  { %836 = vperm.xlu0 %4184, %v4683_v47  }
0x1151   :  { %4186 = vset.pattern.permute.xlu0 %v5509_v14 }
0x117a   :  { %v2588_v22 = vpop.f32.mrb[22].mxu1 }
0x117b   :  { %v2592_v51 = vadd.f32 %v2588_v22, %v197_v9  ;;  %v4015_v54 = vpop.f32.mrb[23].mxu1  ;;  %v4969_v9 = vrot.slane %v4615_v57, %v817_v17  ;;  %v4972_v22 = vrot.slane %v4615_v57, %v808_v53  ;;  %v4983_v53 = vrot.slane %v4615_v57, %v841_v40 }
0x117d   :  { %4280 = vtanh.f32 %v2592_v51  ;;  %v3669_v40 = vmul.f32 -1.442695, %v2592_v51  ;;  %v5531_v51 = vmov 0.0|0.0  }
0x117f   :  { %4282 = vpow2.f32 %v3669_v40 }
0x1187   :  { %v4281_v20 = vpop.eup %4280 }
0x1188   :  { %2602 = vrot.lane.b32.xlu1 %v4281_v20, %s4347_s21 }
0x118c   :  { %1809 = vrot.lane.b32.xlu1 %v4798_v42, %s4348_s22  ;;  %v829_v42 = vsub.s32 2, %v4964_v28 }
0x118e   :  { %v4978_v13 = vrot.slane %v4615_v57, %v829_v42 }
0x11ad   :  { %v4959_v29 = vpop.xlane.xlu0 %1974 }
0x11b5   :  { %v4961_v49 = vpop.permute.xlu0 %2626 }
0x11b9   :  { %v2223_v21 = vpop.permute.xlu0 %2222 }
0x11bd   :  { %v804_v30 = vpop.permute.xlu0 %803 }
0x11be   :  { %v810_v5 = vadd.f32 %v4972_v22, %v804_v30 }
0x11c2   :  { %v813_v54 = vpop.permute.xlu0 %812 }
0x11c3   :  { %v819_v20 = vadd.f32 %v4969_v9, %v813_v54 }
0x11c5   :  { %vm820_vm2 = vcmp.gt.f32.partialorder %v819_v20, %v810_v5 }
0x11c6   :  { %v821_v10 = vsel %vm820_vm2, %v819_v20, %v810_v5  ;;  %v822_v15 = vsel %vm820_vm2, 1, %v5509_v14  ;;  %v4283_v20 = vpop.eup %4282 }
0x11c7   :  { %v825_v3 = vpop.permute.xlu0 %824  ;;  %v2596_v5 = vadd.f32 1.0, %v4283_v20 }
0x11c8   :  { %v831_v17 = vadd.f32 %v4978_v13, %v825_v3 }
0x11c9   :  { %4284 = vrcp.f32 %v2596_v5 }
0x11ca   :  { %vm832_vm4 = vcmp.gt.f32.partialorder %v831_v17, %v821_v10 }
0x11cb   :  { %v834_v50 = vsel %vm832_vm4, 2, %v822_v15  ;;  %v4989_v42 = vsel %vm832_vm4, %v831_v17, %v821_v10  ;;  %v1976_v15 = vsub.f32 %v4936_v27, %v4959_v29 }
0x11cc   :  { %v837_v54 = vpop.permute.xlu0 %836 }
0x11cd   :  { %v4987_v30 = vadd.f32 %v4983_v53, %v837_v54  ;;  %v1977_v54 = vmul.f32 1.442695, %v1976_v15 }
0x11cf   :  { %vm844_vm5 = vcmp.gt.f32.partialorder %v4987_v30, %v4989_v42  ;;  %4286 = vpow2.f32 %v1977_v54 }
0x11d0   :  { %v4996_v3 = vsel %vm844_vm5, 3, %v834_v50  ;;  %v5530_v50 = vmov 0.0  }
0x11d3   :  { %v4285_v10 = vpop.eup %4284 }
0x11d9   :  { %v4287_v40 = vpop.eup %4286 }
0x11fa   :  { %v2603_v17 = vpop.permute.xlu1 %2602 }
0x11fb   :  { %v2605_v14 = vmul.f32 %v4285_v10, %v2603_v17  ;;  %v3661_v17 = vld [vmem:[%s5486_s2 + $0x28] sm:$0xff] }
0x11fd   :  { %2607 = vrot.lane.b32.xlu1 %v2605_v14, %s4348_s22  ;;  %v2219_v14 = vmul.f32 %v4886_v33, %v4872_v38 }
0x11fe   :  { %v1810_v45 = vpop.permute.xlu1 %1809 }
0x11ff   :  { %3961 = vmatmul.mubr.msk.f32.vlgmr.msra.gmra.mrb[22].mxu0 %vm208_vm3, %v1810_v45  ;;  %v2218_v45 = vmul.f32 %v4884_v23, %v4875_v59 }
0x1200   :  { %3969 = vmatpush3.msk.msra.mxu0 %vm629_vm6, %v4749_v26  ;;  %3970 = vmatprep.mubr.msk.f32.mxu0 %vm4344_vm1, %v5530_v50 }
0x1201   :  { %2619 = vperm.xlu1 %4180, %v4942_v48   ;;  %4139 = vmatprep.subr.bf16.mxu0 %v5531_v51  ;;  %v2220_v20 = vadd.f32 %v2219_v14, %v2218_v45  ;;  %v5516_v14 = vmov 4  }
0x1203   :  { %3971 = vmatmul.mubr.msk.f32.vlgmr.msra.gmra.mrb[24].mxu0 %vm419_vm8, %v4287_v40  ;;  %v2600_v5 = vmul.f32 %v4285_v10, %v2220_v20  ;;  %v2632_v48 = vmul.f32 %v4961_v49, %v2220_v20 }
0x1204   :  { %4141 = vmatpush3.bf16.msra.mxu0 %v4541_v61  ;;  %3992 = vmatprep.mubr.msk.f32.mxu0 %vm4344_vm1, %v5530_v50 }
0x1205   :  { %4142 = vmatprep.subr.bf16.mxu0 %v5531_v51 }
0x1208   :  { %4144 = vmatpush3.bf16.msra.mxu0 %v4556_v2 }
0x1209   :  { %4000 = vmatprep.subr.mxu0 %v5530_v50 }
0x120b   :  { %3993 = vmatmul.mubr.msk.f32.vlgmr.msra.gmra.mrb[26].mxu0 %vm208_vm3, %v2223_v21 }
0x120c   :  { %4001 = vmatpush3.msk.msra.mxu0 %vm629_vm6, %v4749_v26  ;;  %4002 = vmatprep.mubr.msk.f32.mxu0 %vm4344_vm1, %v5530_v50 }
0x120d   :  { %4151 = vmatprep.subr.bf16.mxu0 %v5531_v51 }
0x126f   :  { %v2608_v15 = vpop.permute.xlu1 %2607 }
0x1270   :  { %v2610_v54 = vadd.f32 %v2608_v15, %v2600_v5 }
0x1272   :  { %4288 = vtanh.f32 %v2610_v54 }
0x127c   :  { %v4289_v21 = vpop.eup %4288 }
0x127d   :  { %2613 = vrot.lane.b32.xlu1 %v4289_v21, %s4347_s21 }
0x1280   :  { %v5029_v40 = vpop.permute.xlu1 %2619 }
0x1281   :  { %2299 = vperm.xlu1 %4180, %v3661_v17   ;;  %v2631_v38 = vmul.f32 %v5029_v40, %v2610_v54  ;;  %v709_v17 = vmul.f32 %v4636_v11, %v4563_v16 }
0x1283   :  { %v5033_v59 = vadd.f32 %v2632_v48, %v2631_v38  ;;  %v711_v54 = vadd.f32 %v710_v63, %v709_v17  ;;  %v1970_v17 = vmul.f32 %v4911_v36, %v4791_v32 }
0x1285   :  { %4185 = vset.pattern.permute.xlu1 %v5516_v14  ;;  %v1145_v20 = vmul.f32 %v4629_v6, %v711_v54  ;;  %v1144_v14 = vmul.f32 %v4702_v60, %v4646_v18 }
0x12d2   :  { %v1879_v45 = vpop.f32.mrb[22].mxu0 }
0x12d3   :  { %v3962_v5 = vpop.f32.mrb[23].mxu0 }
0x12d6   :  { %v2048_v15 = vpop.f32.mrb[24].mxu0 }
0x12d7   :  { %v3972_v21 = vpop.f32.mrb[25].mxu0  ;;  %4290 = vlog2.f32 %v2048_v15 }
0x12d8   :  { %v1146_v21 = vadd.f32 %v1145_v20, %v1144_v14 }
0x12da   :  { %v1558_v63 = vmul.f32 %v4698_v0, %v1146_v21 }
0x12de   :  { %v2292_v34 = vpop.f32.mrb[26].mxu0 }
0x12df   :  { %v3994_v43 = vpop.f32.mrb[27].mxu0 }
0x12e0   :  { %v2629_v43 = vmul.f32 %v4961_v49, %v4893_v62 }
0x12ef   :  { %v2614_v48 = vpop.permute.xlu1 %2613 }
0x12f0   :  { %v2616_v38 = vmul.f32 %v4285_v10, %v2614_v48  ;;  %v1559_v10 = vadd.f32 %v1558_v63, %v1557_v35  ;;  %v5057_v48 = vadd.f32 %v4676_v44, %v2292_v34  ;;  %v5078_v63 = vadd.f32 %v4676_v44, %v1879_v45 }
0x12f1   :  { %v853_v44 = vsub.s32 4, %v4964_v28 }
0x12f2   :  { %v5044_v5 = vmul.f32 %v5029_v40, %v2616_v38  ;;  %v1971_v54 = vmul.f32 %v4793_v37, %v1559_v10  ;;  %v2374_v20 = vadd.f32 %v4930_v19, %v5057_v48  ;;  %v4291_v38 = vpop.eup %4290 }
0x12f3   :  { %v2053_v34 = vmul.f32 0.6931472, %v4291_v38 }
0x12f4   :  { %v2630_v31 = vadd.f32 %v2629_v43, %v5044_v5  ;;  %v1972_v62 = vadd.f32 %v1971_v54, %v1970_v17  ;;  %v2057_v17 = vmul.f32 %v4793_v37, %v4936_v27 }
0x12f6   :  { %2931 = vrot.lane.b32.xlu1 %v2630_v31, %s4348_s22  ;;  %v2384_v35 = vmul.f32 %v4886_v33, %v1972_v62  ;;  %v2054_v31 = vadd.f32 %v2053_v34, %v4959_v29 }
0x12f8   :  { %v2055_v10 = vadd.f32 %v2054_v31, %v5078_v63 }
0x1300   :  { %v2300_v14 = vpop.permute.xlu1 %2299 }
0x1301   :  { %vm2301_vm7 = vcmp.eq.s32.totalorder %v4632_v8, %v2300_v14  ;;  %v5101_v14 = vrot.slane %v4615_v57, %v853_v44  ;;  %v4316_v44 = vld [vmem:[%s5489_s5] ss:$0 sm:$0xff] }
0x1302   :  { %v3662_v43 = vsel %vm2301_vm7, 1.0, %v5530_v50 }
0x1303   :  { %v2383_v15 = vmul.f32 %v3662_v43, %v4884_v23  ;;  %4030 = vmatmul.mubr.msk.f32.vlgmr.msra.gmra.mrb[24].mxu1 %vm419_vm8, %v3662_v43  ;;  %v5066_v21 = vmul.f32 %v3662_v43, %v2374_v20 }
0x1304   :  { %4159 = vmatpush3.bf16.msra.mxu1 %v4435_v7  ;;  %4045 = vmatprep.mubr.msk.f32.mxu1 %vm4344_vm1, %v5530_v50  ;;  %v2056_v7 = vmul.f32 %v2055_v10, %v4791_v32 }
0x1305   :  { %5532 = vst [vmem:[#allocation15_spill] sm:$0xff] %v5066_v21  ;;  %v5071_v19 = vadd.f32 %v2384_v35, %v2383_v15  ;;  %4160 = vmatprep.subr.bf16.mxu1 %v5531_v51  ;;  %v845_v35 = vsel %vm844_vm5, %v4987_v30, %v4989_v42  ;;  %v5534_v30 = vmov 4   ;;  %v5535_v42 = vmov 1  }
0x1306   :  { %v5084_v54 = vadd.f32 %v2057_v17, %v2056_v7 }
0x1308   :  { %4162 = vmatpush3.bf16.msra.mxu1 %v4450_v12  ;;  %v2386_v62 = vsel %vm419_vm8, %v5084_v54, -inf  ;;  %v5533_v12 = vmov 2  }
0x1309   :  { %4059 = vmatprep.subr.mxu1 %v5530_v50 }
0x131a   :  { %2387 = vmax.xlane.f32.xlu1 %v2386_v62 }
0x132b   :  { %848 = vperm.xlu1 %4185, %v4683_v47  }
0x132f   :  { %4188 = vset.pattern.permute.xlu1 %v5533_v12 }
0x1368   :  { %v2932_v29 = vpop.permute.xlu1 %2931 }
0x1369   :  { %4046 = vmatmul.mubr.msk.f32.vlgmr.msra.gmra.mrb[26].mxu1 %vm208_vm3, %v2932_v29 }
0x136a   :  { %4060 = vmatpush3.msk.msra.mxu1 %vm629_vm6, %v4615_v57  ;;  %4061 = vmatprep.mubr.msk.f32.mxu1 %vm4344_vm1, %v5530_v50 }
0x13a7   :  { %v5096_v27 = vpop.xlane.xlu1 %2387 }
0x13a8   :  { %v2389_v45 = vsub.f32 %v5084_v54, %v5096_v27 }
0x13aa   :  { %v2390_v20 = vmul.f32 1.442695, %v2389_v45  ;;  %v202_v45 = vadd.f32 %v4316_v44, %v4527_v52 }
0x13ab   :  { %v849_v38 = vpop.permute.xlu1 %848 }
0x13ac   :  { %4292 = vpow2.f32 %v2390_v20  ;;  %v855_v43 = vadd.f32 %v5101_v14, %v849_v38 }
0x13ae   :  { %vm856_vm9 = vcmp.gt.f32.partialorder %v855_v43, %v845_v35 }
0x13af   :  { %v857_v28 = vsel %vm856_vm9, %v855_v43, %v845_v35  ;;  %v5110_v15 = vsel %vm856_vm9, 4, %v4996_v3 }
0x13b0   :  { %v859_v34 = vadd.f32 %v857_v28, %v4820_v4 }
0x13b2   :  { %v860_v57 = vmul.f32 %v859_v34, %v4563_v16  ;;  %v5536_v16 = vmov 3  }
0x13b4   :  { %v861_v31 = vadd.f32 %v860_v57, %v4828_v41  ;;  %v5537_v41 = vmov 0  }
0x13b6   :  { %v4293_v10 = vpop.eup %4292  ;;  %1248 = vperm.xlu1 %4188, %v861_v31   ;;  %1235 = vperm.xlu0 %4186, %v861_v31  }
0x13b7   :  { %4003 = vmatmul.mubr.msk.f32.vlgmr.msra.gmra.mrb[28].mxu0 %vm419_vm8, %v4293_v10 }
0x13b8   :  { %4153 = vmatpush3.bf16.msra.mxu0 %v4541_v61  ;;  %4024 = vmatprep.mubr.msk.f32.mxu0 %vm4344_vm1, %v5530_v50 }
0x13b9   :  { %4154 = vmatprep.subr.bf16.mxu0 %v5531_v51 }
0x13ba   :  { %4190 = vset.pattern.permute.xlu1 %v5534_v30  ;;  %4187 = vset.pattern.permute.xlu0 %v5535_v42 }
0x13bb   :  { %1264 = vperm.xlu1 %4190, %v861_v31   ;;  %1240 = vperm.xlu0 %4187, %v861_v31  }
0x13bc   :  { %4156 = vmatpush3.bf16.msra.mxu0 %v4556_v2 }
0x13bd   :  { %4032 = vmatprep.subr.mxu0 %v5530_v50 }
0x13bf   :  { %4189 = vset.pattern.permute.xlu0 %v5536_v16  ;;  %4191 = vset.pattern.permute.xlu1 %v5537_v41 }
0x13c0   :  { %1256 = vperm.xlu0 %4189, %v861_v31  }
0x13c4   :  { %4192 = vset.pattern.permute.xlu0 %v5535_v42 }
0x13d6   :  { %v5127_v3 = vpop.f32.mrb[24].mxu1 }
0x13d7   :  { %v4031_v7 = vpop.f32.mrb[25].mxu1 }
0x1435   :  { %v1236_v17 = vpop.permute.xlu0 %1235  ;;  %v1249_v62 = vpop.permute.xlu1 %1248 }
0x1436   :  { %v1238_v20 = vadd.f32 %v1236_v17, %v4972_v22  ;;  %v1251_v35 = vadd.f32 %v1249_v62, %v4978_v13 }
0x143a   :  { %v1241_v29 = vpop.permute.xlu0 %1240  ;;  %v1265_v7 = vpop.permute.xlu1 %1264 }
0x143b   :  { %v1243_v38 = vadd.f32 %v1241_v29, %v4969_v9  ;;  %v1267_v17 = vadd.f32 %v1265_v7, %v5101_v14 }
0x143c   :  { %v3001_v43 = vpop.f32.mrb[26].mxu1 }
0x143d   :  { %vm1244_vm10 = vcmp.gt.f32.partialorder %v1243_v38, %v1238_v20  ;;  %v3005_v28 = vadd.f32 %v3001_v43, %v202_v45  ;;  %v4047_v34 = vpop.f32.mrb[27].mxu1 }
0x143e   :  { %v1245_v57 = vsel %vm1244_vm10, %v1243_v38, %v1238_v20  ;;  %v1246_v10 = vsel %vm1244_vm10, 1, %v5537_v41  ;;  %v1273_v34 = vmul.f32 %v4629_v6, %v861_v31  ;;  %v5155_v31 = vld [vmem:[%s5485_s1] sm:$0xff] }
0x143f   :  { %4294 = vtanh.f32 %v3005_v28  ;;  %vm1252_vm11 = vcmp.gt.f32.partialorder %v1251_v35, %v1245_v57  ;;  %v1257_v21 = vpop.permute.xlu0 %1256  ;;  %vm2927_vm14 = vcmp.gt.s32.totalorder %v5155_v31, 7 }
0x1440   :  { %v1253_v36 = vsel %vm1252_vm11, %v1251_v35, %v1245_v57  ;;  %v1254_v39 = vsel %vm1252_vm11, 2, %v1246_v10  ;;  %v1259_v52 = vadd.f32 %v1257_v21, %v4983_v53  ;;  %v5159_v57 = vsel %vm2927_vm14, 1.0, %v5530_v50 }
0x1442   :  { %vm1260_vm12 = vcmp.gt.f32.partialorder %v1259_v52, %v1253_v36 }
0x1443   :  { %v1261_v29 = vsel %vm1260_vm12, %v1259_v52, %v1253_v36  ;;  %v1262_v44 = vsel %vm1260_vm12, 3, %v1254_v39  ;;  %v3679_v36 = vmul.f32 -1.442695, %v3005_v28 }
0x1444   :  { %vm1268_vm13 = vcmp.gt.f32.partialorder %v1267_v17, %v1261_v29 }
0x1445   :  { %v1269_v62 = vsel %vm1268_vm13, %v1267_v17, %v1261_v29  ;;  %v5139_v45 = vsel %vm1268_vm13, 4, %v1262_v44  ;;  %4296 = vpow2.f32 %v3679_v36 }
0x1446   :  { %v1271_v20 = vadd.f32 %v1269_v62, %v4859_v46 }
0x1448   :  { %v1272_v38 = vmul.f32 %v1271_v20, %v4646_v18 }
0x1449   :  { %v4295_v43 = vpop.eup %4294 }
0x144a   :  { %3015 = vrot.lane.b32.xlu1 %v4295_v43, %s4347_s21  ;;  %v1274_v35 = vadd.f32 %v1273_v34, %v1272_v38 }
0x144e   :  { %1648 = vperm.xlu1 %4191, %v1274_v35  }
0x144f   :  { %v4297_v6 = vpop.eup %4296 }
0x1450   :  { %v3009_v21 = vadd.f32 1.0, %v4297_v6 }
0x1452   :  { %4193 = vset.pattern.permute.xlu1 %v5533_v12  ;;  %4298 = vrcp.f32 %v3009_v21 }
0x1453   :  { %1661 = vperm.xlu1 %4193, %v1274_v35  }
0x1457   :  { %4194 = vset.pattern.permute.xlu1 %v5536_v16 }
0x1458   :  { %1669 = vperm.xlu1 %4194, %v1274_v35  }
0x145c   :  { %2635 = vrot.lane.b32.xlu1 %v5044_v5, %s4348_s22  ;;  %v5162_v5 = vpop.eup %4298 }
0x145d   :  { %4196 = vset.pattern.permute.xlu1 %v5537_v41  ;;  %v3013_v44 = vmul.f32 %v5162_v5, %v5033_v59 }
0x1460   :  { %3032 = vperm.xlu1 %4196, %v5159_v57  }
0x148a   :  { %v5150_v39 = vpop.f32.mrb[28].mxu0 }
0x148b   :  { %v4004_v18 = vpop.f32.mrb[29].mxu0 }
0x14bc   :  { %v3016_v10 = vpop.permute.xlu1 %3015 }
0x14bd   :  { %v3018_v28 = vmul.f32 %v5162_v5, %v3016_v10 }
0x14bf   :  { %3020 = vrot.lane.b32.xlu0 %v3018_v28, %s4348_s22 }
0x14c3   :  { %1653 = vperm.xlu0 %4192, %v1274_v35  }
0x14c7   :  { %4195 = vset.pattern.permute.xlu0 %v5534_v30 }
0x14c8   :  { %1677 = vperm.xlu0 %4195, %v1274_v35  }
0x14cc   :  { %4197 = vset.pattern.permute.xlu0 %v5535_v42 }
0x14cd   :  { %v1649_v7 = vpop.permute.xlu1 %1648 }
0x14ce   :  { %v1651_v34 = vadd.f32 %v1649_v7, %v4972_v22 }
0x14d2   :  { %v1662_v52 = vpop.permute.xlu1 %1661 }
0x14d3   :  { %v1664_v36 = vadd.f32 %v1662_v52, %v4978_v13 }
0x14d7   :  { %v1670_v17 = vpop.permute.xlu1 %1669 }
0x14d8   :  { %v1672_v10 = vadd.f32 %v1670_v17, %v4983_v53 }
0x14db   :  { %v2636_v29 = vpop.permute.xlu1 %2635 }
0x14dc   :  { %4025 = vmatmul.mubr.msk.f32.vlgmr.msra.gmra.mrb[30].mxu0 %vm208_vm3, %v2636_v29 }
0x14dd   :  { %4033 = vmatpush3.msk.msra.mxu0 %vm629_vm6, %v4749_v26  ;;  %4034 = vmatprep.mubr.msk.f32.mxu0 %vm4344_vm1, %v5530_v50 }
0x14de   :  { %4163 = vmatprep.subr.bf16.mxu0 %v5531_v51 }
0x1531   :  { %v3021_v62 = vpop.permute.xlu0 %3020 }
0x1532   :  { %v3023_v20 = vadd.f32 %v3021_v62, %v3013_v44 }
0x1534   :  { %4300 = vtanh.f32 %v3023_v20 }
0x1535   :  { %4302 = vlog2.f32 %v5150_v39 }
0x153e   :  { %v4301_v38 = vpop.eup %4300 }
0x153f   :  { %3026 = vrot.lane.b32.xlu0 %v4301_v38, %s4347_s21 }
0x1542   :  { %v1654_v43 = vpop.permute.xlu0 %1653 }
0x1543   :  { %v1656_v18 = vadd.f32 %v1654_v43, %v4969_v9 }
0x1545   :  { %vm1657_vm15 = vcmp.gt.f32.partialorder %v1656_v18, %v1651_v34 }
0x1546   :  { %v1658_v6 = vsel %vm1657_vm15, %v1656_v18, %v1651_v34  ;;  %v1659_v21 = vsel %vm1657_vm15, 1, %v5537_v41  ;;  %v1686_v34 = vmul.f32 %v4698_v0, %v1274_v35 }
0x1547   :  { %vm1665_vm0 = vcmp.gt.f32.partialorder %v1664_v36, %v1658_v6  ;;  %v1678_v59 = vpop.permute.xlu0 %1677 }
0x1548   :  { %v1667_v28 = vsel %vm1665_vm0, 2, %v1659_v21  ;;  %v1666_v29 = vsel %vm1665_vm0, %v1664_v36, %v1658_v6  ;;  %v1680_v44 = vadd.f32 %v1678_v59, %v5101_v14  ;;  %v2470_v6 = vmul.f32 %v4886_v33, %v5084_v54 }
0x1549   :  { %vm1673_vm2 = vcmp.gt.f32.partialorder %v1672_v10, %v1666_v29 }
0x154a   :  { %v1674_v62 = vsel %vm1673_vm2, %v1672_v10, %v1666_v29  ;;  %v1675_v20 = vsel %vm1673_vm2, 3, %v1667_v28  ;;  %v5205_v29 = vpop.permute.xlu1 %3032 }
0x154b   :  { %vm1681_vm4 = vcmp.gt.f32.partialorder %v1680_v44, %v1674_v62 }
0x154c   :  { %v1682_v7 = vsel %vm1681_vm4, %v1680_v44, %v1674_v62  ;;  %v5183_v38 = vsel %vm1681_vm4, 4, %v1675_v20 }
0x154d   :  { %v1684_v52 = vadd.f32 %v1682_v7, %v4928_v55 }
0x154f   :  { %v1685_v43 = vmul.f32 %v1684_v52, %v4712_v1  ;;  %v4303_v1 = vpop.eup %4302 }
0x1550   :  { %v2466_v0 = vmul.f32 0.6931472, %v4303_v1 }
0x1551   :  { %v1687_v17 = vadd.f32 %v1686_v34, %v1685_v43 }
0x1552   :  { %v2467_v35 = vadd.f32 %v2466_v0, %v5096_v27 }
0x1553   :  { %2066 = vperm.xlu0 %4197, %v1687_v17   ;;  %2061 = vperm.xlu1 %4196, %v1687_v17  }
0x1554   :  { %v2468_v18 = vadd.f32 %v2467_v35, %v5057_v48 }
0x1556   :  { %v2469_v36 = vmul.f32 %v2468_v18, %v4884_v23 }
0x1557   :  { %4200 = vset.pattern.permute.xlu0 %v5534_v30  ;;  %4198 = vset.pattern.permute.xlu1 %v5533_v12 }
0x1558   :  { %2090 = vperm.xlu0 %4200, %v1687_v17   ;;  %2074 = vperm.xlu1 %4198, %v1687_v17   ;;  %v5199_v21 = vadd.f32 %v2470_v6, %v2469_v36 }
0x155a   :  { %v2799_v10 = vsel %vm419_vm8, %v5199_v21, -inf }
0x155c   :  { %4199 = vset.pattern.permute.xlu1 %v5536_v16  ;;  %4201 = vset.pattern.permute.xlu0 %v5537_v41 }
0x155d   :  { %2082 = vperm.xlu1 %4199, %v1687_v17  }
0x1561   :  { %4205 = vset.pattern.permute.xlu1 %v5534_v30 }
0x1581   :  { %2800 = vmax.xlane.f32.xlu1 %v2799_v10 }
0x15af   :  { %v5203_v39 = vpop.f32.mrb[30].mxu0 }
0x15b0   :  { %v4026_v59 = vpop.f32.mrb[31].mxu0 }
0x15b1   :  { %v3027_v28 = vpop.permute.xlu0 %3026 }
0x15b2   :  { %v3029_v27 = vmul.f32 %v5162_v5, %v3027_v28 }
0x15b4   :  { %v3035_v44 = vmul.f32 %v5205_v29, %v3029_v27 }
0x15b6   :  { %3037 = vrot.lane.b32.xlu0 %v3035_v44, %s4348_s22 }
0x15d2   :  { %v2067_v62 = vpop.permute.xlu0 %2066  ;;  %v2062_v54 = vpop.permute.xlu1 %2061 }
0x15d3   :  { %v2069_v20 = vadd.f32 %v2067_v62, %v4969_v9  ;;  %v2064_v7 = vadd.f32 %v2062_v54, %v4972_v22  ;;  %v2099_v54 = vmul.f32 %v4793_v37, %v1687_v17 }
0x15d5   :  { %vm2070_vm5 = vcmp.gt.f32.partialorder %v2069_v20, %v2064_v7 }
0x15d6   :  { %v2071_v34 = vsel %vm2070_vm5, %v2069_v20, %v2064_v7  ;;  %v2072_v1 = vsel %vm2070_vm5, 1, %v5537_v41 }
0x15d7   :  { %v2075_v52 = vpop.permute.xlu1 %2074  ;;  %v2091_v5 = vpop.permute.xlu0 %2090 }
0x15d8   :  { %v2077_v43 = vadd.f32 %v2075_v52, %v4978_v13  ;;  %v2093_v6 = vadd.f32 %v2091_v5, %v5101_v14 }
0x15da   :  { %vm2078_vm7 = vcmp.gt.f32.partialorder %v2077_v43, %v2071_v34 }
0x15db   :  { %v2080_v0 = vsel %vm2078_vm7, 2, %v2072_v1  ;;  %v2079_v36 = vsel %vm2078_vm7, %v2077_v43, %v2071_v34 }
0x15dc   :  { %v2083_v35 = vpop.permute.xlu1 %2082 }
0x15dd   :  { %v2085_v18 = vadd.f32 %v2083_v35, %v4983_v53 }
0x15df   :  { %vm2086_vm9 = vcmp.gt.f32.partialorder %v2085_v18, %v2079_v36 }
0x15e0   :  { %v2087_v10 = vsel %vm2086_vm9, %v2085_v18, %v2079_v36  ;;  %v2088_v59 = vsel %vm2086_vm9, 3, %v2080_v0 }
0x15e1   :  { %vm2094_vm10 = vcmp.gt.f32.partialorder %v2093_v6, %v2087_v10 }
0x15e2   :  { %v2095_v28 = vsel %vm2094_vm10, %v2093_v6, %v2087_v10  ;;  %v5216_v27 = vsel %vm2094_vm10, 4, %v2088_v59 }
0x15e3   :  { %v2097_v44 = vadd.f32 %v2095_v28, %v5078_v63 }
0x15e5   :  { %v2098_v62 = vmul.f32 %v2097_v44, %v4791_v32 }
0x15e7   :  { %v2100_v20 = vadd.f32 %v2099_v54, %v2098_v62 }
0x15e9   :  { %2474 = vperm.xlu0 %4201, %v2100_v20   ;;  %2503 = vperm.xlu1 %4205, %v2100_v20  }
0x15ed   :  { %4202 = vset.pattern.permute.xlu0 %v5535_v42  ;;  %4208 = vset.pattern.permute.xlu1 %v5533_v12 }
0x15ee   :  { %2479 = vperm.xlu0 %4202, %v2100_v20  }
0x15f2   :  { %4203 = vset.pattern.permute.xlu0 %v5533_v12 }
0x15f3   :  { %2487 = vperm.xlu0 %4203, %v2100_v20  }
0x15f7   :  { %4204 = vset.pattern.permute.xlu0 %v5536_v16 }
0x15f8   :  { %2495 = vperm.xlu0 %4204, %v2100_v20  }
0x15fc   :  { %4206 = vset.pattern.permute.xlu0 %v5537_v41 }
0x160e   :  { %v5226_v7 = vpop.xlane.xlu1 %2800 }
0x160f   :  { %v2802_v32 = vsub.f32 %v5199_v21, %v5226_v7 }
0x1611   :  { %v2803_v37 = vmul.f32 1.442695, %v2802_v32 }
0x1613   :  { %4304 = vpow2.f32 %v2803_v37  ;;  %v2512_v37 = vmul.f32 %v4886_v33, %v2100_v20 }
0x161d   :  { %v4305_v17 = vpop.eup %4304 }
0x161e   :  { %4035 = vmatmul.mubr.msk.f32.vlgmr.msra.gmra.mrb[32].mxu0 %vm419_vm8, %v4305_v17 }
0x161f   :  { %4165 = vmatpush3.bf16.msra.mxu0 %v4541_v61  ;;  %4056 = vmatprep.mubr.msk.f32.mxu0 %vm4344_vm1, %v5530_v50 }
0x1620   :  { %4166 = vmatprep.subr.bf16.mxu0 %v5531_v51 }
0x1623   :  { %4168 = vmatpush3.bf16.msra.mxu0 %v4556_v2 }
0x1624   :  { %4064 = vmatprep.subr.mxu0 %v5530_v50 }
0x1628   :  { %v3038_v52 = vpop.permute.xlu0 %3037 }
0x1629   :  { %4057 = vmatmul.mubr.msk.f32.vlgmr.msra.gmra.mrb[34].mxu0 %vm208_vm3, %v3038_v52 }
0x162a   :  { %4065 = vmatpush3.msk.msra.mxu0 %vm629_vm6, %v4749_v26  ;;  %4066 = vmatprep.mubr.msk.f32.mxu0 %vm4344_vm1, %v5530_v50 }
0x1668   :  { %v2475_v43 = vpop.permute.xlu0 %2474  ;;  %v2504_v18 = vpop.permute.xlu1 %2503 }
0x1669   :  { %v2477_v1 = vadd.f32 %v2475_v43, %v4972_v22  ;;  %v2506_v10 = vadd.f32 %v2504_v18, %v5101_v14 }
0x166d   :  { %v2480_v61 = vpop.permute.xlu0 %2479 }
0x166e   :  { %v2482_v34 = vadd.f32 %v2480_v61, %v4969_v9 }
0x1670   :  { %vm2483_vm11 = vcmp.gt.f32.partialorder %v2482_v34, %v2477_v1 }
0x1671   :  { %v2484_v0 = vsel %vm2483_vm11, %v2482_v34, %v2477_v1  ;;  %v2485_v5 = vsel %vm2483_vm11, 1, %v5537_v41 }
0x1672   :  { %v2488_v51 = vpop.permute.xlu0 %2487 }
0x1673   :  { %v2490_v2 = vadd.f32 %v2488_v51, %v4978_v13 }
0x1675   :  { %vm2491_vm3 = vcmp.gt.f32.partialorder %v2490_v2, %v2484_v0 }
0x1676   :  { %v2493_v35 = vsel %vm2491_vm3, 2, %v2485_v5  ;;  %v2492_v6 = vsel %vm2491_vm3, %v2490_v2, %v2484_v0 }
0x1677   :  { %v2496_v26 = vpop.permute.xlu0 %2495 }
0x1678   :  { %v2498_v36 = vadd.f32 %v2496_v26, %v4983_v53 }
0x167a   :  { %vm2499_vm1 = vcmp.gt.f32.partialorder %v2498_v36, %v2492_v6 }
0x167b   :  { %v2500_v59 = vsel %vm2499_vm1, %v2498_v36, %v2492_v6  ;;  %v2501_v28 = vsel %vm2499_vm1, 3, %v2493_v35 }
0x167c   :  { %vm2507_vm6 = vcmp.gt.f32.partialorder %v2506_v10, %v2500_v59 }
0x167d   :  { %v2508_v44 = vsel %vm2507_vm6, %v2506_v10, %v2500_v59  ;;  %v5248_v62 = vsel %vm2507_vm6, 4, %v2501_v28  ;;  %v4318_v59 = vld [vmem:[%s5491_s7] ss:$0 sm:$0xff] }
0x167e   :  { %v2510_v54 = vadd.f32 %v2508_v44, %v5057_v48  ;;  %v5270_v28 = vadd.f32 %v4318_v59, %v5203_v39 }
0x1680   :  { %v2511_v32 = vmul.f32 %v2510_v54, %v4884_v23 }
0x1682   :  { %v2513_v17 = vadd.f32 %v2512_v37, %v2511_v32 }
0x1684   :  { %2900 = vperm.xlu1 %4208, %v2513_v17   ;;  %2887 = vperm.xlu0 %4206, %v2513_v17  }
0x1688   :  { %4209 = vset.pattern.permute.xlu1 %v5536_v16  ;;  %4207 = vset.pattern.permute.xlu0 %v5535_v42 }
0x1689   :  { %2908 = vperm.xlu1 %4209, %v2513_v17   ;;  %2892 = vperm.xlu0 %4207, %v2513_v17  }
0x168d   :  { %4210 = vset.pattern.permute.xlu0 %v5534_v30  ;;  %4211 = vset.pattern.permute.xlu1 %v5537_v41 }
0x168e   :  { %2916 = vperm.xlu0 %4210, %v2513_v17  }
0x1692   :  { %4213 = vset.pattern.permute.xlu0 %v5533_v12 }
0x16f1   :  { %v5258_v48 = vpop.f32.mrb[32].mxu0 }
0x16f2   :  { %v4036_v23 = vpop.f32.mrb[33].mxu0  ;;  %4306 = vlog2.f32 %v5258_v48  ;;  %v2883_v48 = vmul.f32 %v4961_v49, %v5199_v21  ;;  %v3671_v21 = vld [vmem:[%s5486_s2 + $0x30] sm:$0xff] }
0x16f3   :  { %v2925_v23 = vmul.f32 %v4961_v49, %v2513_v17 }
0x16fc   :  { %v3107_v33 = vpop.f32.mrb[34].mxu0 }
0x16fd   :  { %v4058_v20 = vpop.f32.mrb[35].mxu0 }
0x1703   :  { %v2888_v52 = vpop.permute.xlu0 %2887  ;;  %v2901_v43 = vpop.permute.xlu1 %2900 }
0x1704   :  { %v2890_v34 = vadd.f32 %v2888_v52, %v4972_v22  ;;  %v2903_v2 = vadd.f32 %v2901_v43, %v4978_v13  ;;  %v3199_v52 = vsub.f32 1.0, %v5159_v57 }
0x1708   :  { %v2893_v61 = vpop.permute.xlu0 %2892  ;;  %v2909_v51 = vpop.permute.xlu1 %2908 }
0x1709   :  { %v2895_v1 = vadd.f32 %v2893_v61, %v4969_v9  ;;  %v2911_v12 = vadd.f32 %v2909_v51, %v4983_v53 }
0x170b   :  { %vm2896_vm12 = vcmp.gt.f32.partialorder %v2895_v1, %v2890_v34 }
0x170c   :  { %v2897_v0 = vsel %vm2896_vm12, %v2895_v1, %v2890_v34  ;;  %v2898_v5 = vsel %vm2896_vm12, 1, %v5537_v41 }
0x170d   :  { %vm2904_vm13 = vcmp.gt.f32.partialorder %v2903_v2, %v2897_v0  ;;  %v2917_v35 = vpop.permute.xlu0 %2916 }
0x170e   :  { %v2906_v18 = vsel %vm2904_vm13, 2, %v2898_v5  ;;  %v2905_v26 = vsel %vm2904_vm13, %v2903_v2, %v2897_v0  ;;  %v2919_v36 = vadd.f32 %v2917_v35, %v5101_v14 }
0x170f   :  { %vm2912_vm14 = vcmp.gt.f32.partialorder %v2911_v12, %v2905_v26 }
0x1710   :  { %v2913_v6 = vsel %vm2912_vm14, %v2911_v12, %v2905_v26  ;;  %v2914_v10 = vsel %vm2912_vm14, 3, %v2906_v18  ;;  %v5289_v18 = vadd.f32 %v4318_v59, %v3107_v33 }
0x1711   :  { %vm2920_vm15 = vcmp.gt.f32.partialorder %v2919_v36, %v2913_v6 }
0x1712   :  { %v2921_v44 = vsel %vm2920_vm15, %v2919_v36, %v2913_v6  ;;  %v5272_v54 = vsel %vm2920_vm15, 4, %v2914_v10 }
0x1713   :  { %v2923_v32 = vadd.f32 %v2921_v44, %v5270_v28 }
0x1715   :  { %v2924_v37 = vmul.f32 %v2923_v32, %v5029_v40 }
0x1717   :  { %v2926_v20 = vadd.f32 %v2925_v23, %v2924_v37 }
0x1719   :  { %3308 = vperm.xlu0 %4213, %v2926_v20   ;;  %3295 = vperm.xlu1 %4211, %v2926_v20  }
0x171d   :  { %4216 = vset.pattern.permute.xlu0 %v5537_v41  ;;  %4212 = vset.pattern.permute.xlu1 %v5535_v42 }
0x171e   :  { %3202 = vperm.xlu0 %4216, %v3199_v52   ;;  %3300 = vperm.xlu1 %4212, %v2926_v20  }
0x1722   :  { %4214 = vset.pattern.permute.xlu1 %v5536_v16 }
0x1723   :  { %3316 = vperm.xlu1 %4214, %v2926_v20  }
0x1727   :  { %4215 = vset.pattern.permute.xlu1 %v5534_v30 }
0x1728   :  { %3324 = vperm.xlu1 %4215, %v2926_v20  }
0x172c   :  { %4217 = vset.pattern.permute.xlu1 %v5537_v41 }
0x1798   :  { %v3296_v39 = vpop.permute.xlu1 %3295  ;;  %v3309_v17 = vpop.permute.xlu0 %3308 }
0x1799   :  { %v3298_v61 = vadd.f32 %v3296_v39, %v4972_v22  ;;  %v3311_v1 = vadd.f32 %v3309_v17, %v4978_v13 }
0x179d   :  { %v3301_v43 = vpop.permute.xlu1 %3300  ;;  %v5291_v13 = vpop.permute.xlu0 %3202 }
0x179e   :  { %v3303_v34 = vadd.f32 %v3301_v43, %v4969_v9  ;;  %v3333_v36 = vmul.f32 %v5291_v13, %v2926_v20 }
0x17a0   :  { %vm3304_vm0 = vcmp.gt.f32.partialorder %v3303_v34, %v3298_v61 }
0x17a1   :  { %v3305_v42 = vsel %vm3304_vm0, %v3303_v34, %v3298_v61  ;;  %v3306_v51 = vsel %vm3304_vm0, 1, %v5537_v41  ;;  %v5306_v61 = vadd.s32 4294967295, %v5155_v31 }
0x17a2   :  { %vm3312_vm2 = vcmp.gt.f32.partialorder %v3311_v1, %v3305_v42  ;;  %v3317_v16 = vpop.permute.xlu1 %3316 }
0x17a3   :  { %v3313_v2 = vsel %vm3312_vm2, %v3311_v1, %v3305_v42  ;;  %v3314_v30 = vsel %vm3312_vm2, 2, %v3306_v51  ;;  %v3319_v0 = vadd.f32 %v3317_v16, %v4983_v53  ;;  %v5299_v53 = vld [vmem:[%s5493_s9] ss:$0 sm:$0xff]  ;;  %vm3393_vm10 = vcmp.eq.s32.totalorder %v5306_v61, 7 }
0x17a4   :  { %vm3418_vm1 = vcmp.gt.s32.totalorder %v5306_v61, 6  ;;  %vm3417_vm6 = vcmp.eq.s32.totalorder %v5306_v61, 6  ;;  %vm3444_vm14 = vcmp.gt.s32.totalorder %v5306_v61, 5  ;;  %vm3443_vm15 = vcmp.eq.s32.totalorder %v5306_v61, 5 }
0x17a5   :  { %vm3320_vm4 = vcmp.gt.f32.partialorder %v3319_v0, %v3313_v2 }
0x17a6   :  { %v3322_v5 = vsel %vm3320_vm4, 3, %v3314_v30  ;;  %v3321_v22 = vsel %vm3320_vm4, %v3319_v0, %v3313_v2  ;;  %vm3470_vm4 = vcmp.gt.s32.totalorder %v5306_v61, 4 }
0x17a7   :  { %v3325_v12 = vpop.permute.xlu1 %3324 }
0x17a8   :  { %v3327_v35 = vadd.f32 %v3325_v12, %v5101_v14 }
0x17aa   :  { %vm3328_vm5 = vcmp.gt.f32.partialorder %v3327_v35, %v3321_v22 }
0x17ab   :  { %v3329_v9 = vsel %vm3328_vm5, %v3327_v35, %v3321_v22  ;;  %v3330_v26 = vsel %vm3328_vm5, 4, %v3322_v5  ;;  %vm3469_vm5 = vcmp.eq.s32.totalorder %v5306_v61, 4 }
0x17ac   :  { %v3331_v41 = vadd.f32 %v3329_v9, %v5289_v18 }
0x17ae   :  { %v3332_v6 = vmul.f32 %v3331_v41, %v5205_v29 }
0x17b0   :  { %v3334_v14 = vadd.f32 %v3333_v36, %v3332_v6 }
0x17b2   :  { %v3371_v33 = vadd.f32 %v5299_v53, %v3334_v14 }
0x17b4   :  { %v3372_v10 = vsel %vm419_vm8, %v3371_v33, -inf }
0x17b5   :  { %3373 = vmax.xlane.f32.xlu1 %v3372_v10 }
0x1842   :  { %v3374_v59 = vpop.xlane.xlu1 %3373 }
0x1843   :  { %vm3375_vm7 = vcmp.eq.f32.partialorder %v3371_v33, %v3374_v59 }
0x1844   :  { %v3376_v44 = vsel %vm3375_vm7, %v4632_v8, 5 }
0x1845   :  { %v3377_v32 = vsel %vm419_vm8, %v3376_v44, 2147483647 }
0x1846   :  { %v3379_v37 = vshra.s32 %v3377_v32, 16  ;;  %v3378_v20 = vand.u32 65535, %v3377_v32 }
0x1848   :  { %v3381_v23 = vcvt.s32.f32 %v3379_v37  ;;  %v3380_v39 = vcvt.s32.f32 %v3378_v20 }
0x184a   :  { %3382 = vmin.xlane.f32.xlu0 %v3381_v23 }
0x18d7   :  { %v3383_v52 = vpop.xlane.xlu0 %3382 }
0x18d8   :  { %vm3384_vm9 = vcmp.eq.f32.partialorder %v3381_v23, %v3383_v52  ;;  %v3389_v43 = vcvt.f32.s32 %v3383_v52 }
0x18d9   :  { %v3385_v17 = vsel %vm3384_vm9, %v3380_v39, inf }
0x18da   :  { %3386 = vmin.xlane.f32.xlu1 %v3385_v17  ;;  %v3390_v1 = vshll.u32 %v3389_v43, 16 }
0x1967   :  { %v3387_v34 = vpop.xlane.xlu1 %3386 }
0x1968   :  { %v3388_v42 = vcvt.f32.s32 %v3387_v34 }
0x196a   :  { %v5309_v51 = vadd.s32 %v3390_v1, %v3388_v42 }
0x196c   :  { %v3394_v16 = vsel %vm3393_vm10, %v5309_v51, 0  ;;  %vm3496_vm10 = vcmp.gt.s32.totalorder %v5306_v61, 3 }
0x196d   :  { %3397 = vperm.xlu0 %4216, %v3394_v16  }
0x19ec   :  { %v5312_v2 = vpop.permute.xlu0 %3397 }
0x19ed   :  { %vm3400_vm11 = vcmp.eq.s32.totalorder %v4632_v8, %v5312_v2 }
0x19ee   :  { %v3401_v30 = vsel %vm3400_vm11, %v3330_v26, 0  ;;  %vm3495_vm11 = vcmp.eq.s32.totalorder %v5306_v61, 3 }
0x19ef   :  { %v3402_v0 = vsel %vm419_vm8, %v3401_v30, 2147483648 }
0x19f0   :  { %v3404_v31 = vshra.s32 %v3402_v0, 16  ;;  %v3403_v12 = vand.u32 65535, %v3402_v0 }
0x19f2   :  { %v3406_v5 = vcvt.s32.f32 %v3404_v31  ;;  %v3405_v22 = vcvt.s32.f32 %v3403_v12 }
0x19f4   :  { %3407 = vmax.xlane.f32.xlu1 %v3406_v5 }
0x1a81   :  { %v3408_v35 = vpop.xlane.xlu1 %3407 }
0x1a82   :  { %vm3409_vm3 = vcmp.eq.f32.partialorder %v3406_v5, %v3408_v35  ;;  %v3414_v41 = vcvt.f32.s32 %v3408_v35 }
0x1a83   :  { %v3410_v9 = vsel %vm3409_vm3, %v3405_v22, -inf }
0x1a84   :  { %3411 = vmax.xlane.f32.xlu1 %v3410_v9  ;;  %v3415_v6 = vshll.u32 %v3414_v41, 16 }
0x1b11   :  { %v3412_v36 = vpop.xlane.xlu1 %3411 }
0x1b12   :  { %v3413_v14 = vcvt.f32.s32 %v3412_v36 }
0x1b14   :  { %v3416_v33 = vadd.s32 %v3415_v6, %v3413_v14 }
0x1b16   :  { %v3419_v26 = vsel %vm3418_vm1, %v3416_v33, %v3394_v16 }
0x1b17   :  { %v3420_v10 = vsel %vm3417_vm6, %v5309_v51, %v3419_v26  ;;  %vm3522_vm6 = vcmp.gt.s32.totalorder %v5306_v61, 2 }
0x1b18   :  { %3423 = vperm.xlu1 %4217, %v3420_v10  }
0x1b97   :  { %v5320_v59 = vpop.permute.xlu1 %3423 }
0x1b98   :  { %vm3426_vm12 = vcmp.eq.s32.totalorder %v4632_v8, %v5320_v59 }
0x1b99   :  { %v3427_v44 = vsel %vm3426_vm12, %v5272_v54, 0  ;;  %vm3521_vm12 = vcmp.eq.s32.totalorder %v5306_v61, 2 }
0x1b9a   :  { %v3428_v32 = vsel %vm419_vm8, %v3427_v44, 2147483648 }
0x1b9b   :  { %v3430_v37 = vshra.s32 %v3428_v32, 16  ;;  %v3429_v20 = vand.u32 65535, %v3428_v32 }
0x1b9d   :  { %v3432_v23 = vcvt.s32.f32 %v3430_v37  ;;  %v3431_v39 = vcvt.s32.f32 %v3429_v20 }
0x1b9f   :  { %3433 = vmax.xlane.f32.xlu0 %v3432_v23 }
0x1c2c   :  { %v3434_v52 = vpop.xlane.xlu0 %3433 }
0x1c2d   :  { %vm3435_vm13 = vcmp.eq.f32.partialorder %v3432_v23, %v3434_v52  ;;  %v3440_v43 = vcvt.f32.s32 %v3434_v52 }
0x1c2e   :  { %v3436_v17 = vsel %vm3435_vm13, %v3431_v39, -inf }
0x1c2f   :  { %3437 = vmax.xlane.f32.xlu1 %v3436_v17  ;;  %v3441_v1 = vshll.u32 %v3440_v43, 16 }
0x1cbc   :  { %v3438_v34 = vpop.xlane.xlu1 %3437 }
0x1cbd   :  { %v3439_v42 = vcvt.f32.s32 %v3438_v34 }
0x1cbf   :  { %v3442_v16 = vadd.s32 %v3441_v1, %v3439_v42 }
0x1cc1   :  { %v3445_v54 = vsel %vm3444_vm14, %v3442_v16, %v3420_v10 }
0x1cc2   :  { %v3446_v30 = vsel %vm3443_vm15, %v5309_v51, %v3445_v54 }
0x1cc3   :  { %3449 = vperm.xlu0 %4216, %v3446_v30  }
0x1d42   :  { %v5329_v0 = vpop.permute.xlu0 %3449 }
0x1d43   :  { %vm3452_vm0 = vcmp.eq.s32.totalorder %v4632_v8, %v5329_v0 }
0x1d44   :  { %v3453_v31 = vsel %vm3452_vm0, %v5248_v62, 0  ;;  %vm3548_vm0 = vcmp.gt.s32.totalorder %v5306_v61, 1 }
0x1d45   :  { %v3454_v5 = vsel %vm419_vm8, %v3453_v31, 2147483648 }
0x1d46   :  { %v3456_v12 = vshra.s32 %v3454_v5, 16  ;;  %v3455_v22 = vand.u32 65535, %v3454_v5  ;;  %v4307_v5 = vpop.eup %4306 }
0x1d48   :  { %v3458_v35 = vcvt.s32.f32 %v3456_v12  ;;  %v3457_v41 = vcvt.s32.f32 %v3455_v22  ;;  %v2879_v12 = vmul.f32 0.6931472, %v4307_v5  ;;  %v2797_v5 = vmul.f32 %v4961_v49, %v5071_v19 }
0x1d4a   :  { %3459 = vmax.xlane.f32.xlu1 %v3458_v35 }
0x1dd7   :  { %v3460_v9 = vpop.xlane.xlu1 %3459 }
0x1dd8   :  { %vm3461_vm2 = vcmp.eq.f32.partialorder %v3458_v35, %v3460_v9  ;;  %v3466_v6 = vcvt.f32.s32 %v3460_v9  ;;  %v2880_v35 = vadd.f32 %v2879_v12, %v5226_v7 }
0x1dd9   :  { %v3462_v36 = vsel %vm3461_vm2, %v3457_v41, -inf  ;;  %vm3547_vm2 = vcmp.eq.s32.totalorder %v5306_v61, 1 }
0x1dda   :  { %3463 = vmax.xlane.f32.xlu1 %v3462_v36  ;;  %v3467_v33 = vshll.u32 %v3466_v6, 16  ;;  %v2881_v22 = vadd.f32 %v2880_v35, %v5270_v28 }
0x1ddc   :  { %v2882_v36 = vmul.f32 %v2881_v22, %v5029_v40 }
0x1e67   :  { %v3464_v14 = vpop.xlane.xlu1 %3463 }
0x1e68   :  { %v3465_v26 = vcvt.f32.s32 %v3464_v14 }
0x1e6a   :  { %v3468_v10 = vadd.s32 %v3467_v33, %v3465_v26  ;;  %v2884_v26 = vadd.f32 %v2883_v48, %v2882_v36 }
0x1e6c   :  { %v3471_v62 = vsel %vm3470_vm4, %v3468_v10, %v3446_v30  ;;  %v3207_v7 = vsel %vm419_vm8, %v2884_v26, -inf }
0x1e6d   :  { %v3472_v44 = vsel %vm3469_vm5, %v5309_v51, %v3471_v62 }
0x1e6e   :  { %3475 = vperm.xlu1 %4217, %v3472_v44  }
0x1eed   :  { %v5338_v32 = vpop.permute.xlu1 %3475 }
0x1eee   :  { %vm3478_vm7 = vcmp.eq.s32.totalorder %v4632_v8, %v5338_v32 }
0x1eef   :  { %v3479_v37 = vsel %vm3478_vm7, %v5216_v27, 0 }
0x1ef0   :  { %v3480_v23 = vsel %vm419_vm8, %v3479_v37, 2147483648 }
0x1ef1   :  { %v3482_v20 = vshra.s32 %v3480_v23, 16  ;;  %v3481_v39 = vand.u32 65535, %v3480_v23 }
0x1ef3   :  { %v3484_v52 = vcvt.s32.f32 %v3482_v20  ;;  %v3483_v43 = vcvt.s32.f32 %v3481_v39 }
0x1ef5   :  { %3485 = vmax.xlane.f32.xlu0 %v3484_v52 }
0x1f82   :  { %v3486_v17 = vpop.xlane.xlu0 %3485 }
0x1f83   :  { %vm3487_vm9 = vcmp.eq.f32.partialorder %v3484_v52, %v3486_v17  ;;  %v3492_v1 = vcvt.f32.s32 %v3486_v17 }
0x1f84   :  { %v3488_v34 = vsel %vm3487_vm9, %v3483_v43, -inf  ;;  %vm3573_vm9 = vcmp.eq.s32.totalorder %v5306_v61, 0 }
0x1f85   :  { %3489 = vmax.xlane.f32.xlu1 %v3488_v34  ;;  %v3493_v16 = vshll.u32 %v3492_v1, 16 }
0x2012   :  { %v3490_v42 = vpop.xlane.xlu1 %3489 }
0x2013   :  { %v3491_v54 = vcvt.f32.s32 %v3490_v42 }
0x2015   :  { %v3494_v30 = vadd.s32 %v3493_v16, %v3491_v54 }
0x2017   :  { %v3497_v27 = vsel %vm3496_vm10, %v3494_v30, %v3472_v44  ;;  %v2787_v30 = vadd.f32 %v5127_v3, %v5270_v28  ;;  %vm3361_vm10 = vcmask 7168  }
0x2018   :  { %v3498_v31 = vsel %vm3495_vm11, %v5309_v51, %v3497_v27  ;;  %vm3369_vm11 = vcmask 0  }
0x2019   :  { %3501 = vperm.xlu0 %4216, %v3498_v31  }
0x2098   :  { %v5350_v9 = vpop.permute.xlu0 %3501 }
0x2099   :  { %vm3504_vm3 = vcmp.eq.s32.totalorder %v4632_v8, %v5350_v9 }
0x209a   :  { %v3505_v41 = vsel %vm3504_vm3, %v5183_v38, 0 }
0x209b   :  { %v3506_v6 = vsel %vm419_vm8, %v3505_v41, 2147483648 }
0x209c   :  { %v3508_v14 = vshra.s32 %v3506_v6, 16  ;;  %v3507_v10 = vand.u32 65535, %v3506_v6 }
0x209e   :  { %v3510_v33 = vcvt.s32.f32 %v3508_v14  ;;  %v3509_v44 = vcvt.s32.f32 %v3507_v10 }
0x20a0   :  { %3511 = vmax.xlane.f32.xlu1 %v3510_v33 }
0x20a4   :  { %3208 = vmax.xlane.f32.xlu1 %v3207_v7 }
0x212d   :  { %v3512_v62 = vpop.xlane.xlu1 %3511 }
0x212e   :  { %vm3513_vm1 = vcmp.eq.f32.partialorder %v3510_v33, %v3512_v62  ;;  %v3518_v39 = vcvt.f32.s32 %v3512_v62  ;;  %v3291_v62 = vmul.f32 %v5291_v13, %v2884_v26 }
0x212f   :  { %v3514_v37 = vsel %vm3513_vm1, %v3509_v44, -inf }
0x2130   :  { %3515 = vmax.xlane.f32.xlu0 %v3514_v37  ;;  %v3519_v43 = vshll.u32 %v3518_v39, 16 }
0x2131   :  { %v3209_v38 = vpop.xlane.xlu1 %3208 }
0x2132   :  { %v3210_v23 = vsub.f32 %v2884_v26, %v3209_v38 }
0x2134   :  { %v3211_v20 = vmul.f32 1.442695, %v3210_v23 }
0x2136   :  { %4308 = vpow2.f32 %v3211_v20 }
0x2140   :  { %v4309_v52 = vpop.eup %4308 }
0x2141   :  { %4067 = vmatmul.mubr.msk.f32.vlgmr.msra.gmra.mrb[36].mxu0 %vm419_vm8, %v4309_v52 }
0x2146   :  { %2712 = vperm.xlu0 %4216, %v3671_v21  }
0x21bd   :  { %v3516_v17 = vpop.xlane.xlu0 %3515 }
0x21be   :  { %v3517_v34 = vcvt.f32.s32 %v3516_v17 }
0x21c0   :  { %v3520_v1 = vadd.s32 %v3519_v43, %v3517_v34 }
0x21c2   :  { %v3523_v42 = vsel %vm3522_vm6, %v3520_v1, %v3498_v31 }
0x21c3   :  { %v3524_v16 = vsel %vm3521_vm12, %v5309_v51, %v3523_v42 }
0x21c4   :  { %3527 = vperm.xlu1 %4217, %v3524_v16  }
0x21c5   :  { %v2713_v54 = vpop.permute.xlu0 %2712 }
0x21c6   :  { %vm2714_vm13 = vcmp.eq.s32.totalorder %v4632_v8, %v2713_v54 }
0x21c7   :  { %v3672_v27 = vsel %vm2714_vm13, 1.0, %v5530_v50 }
0x21c8   :  { %v2796_v12 = vmul.f32 %v3672_v27, %v5029_v40  ;;  %4062 = vmatmul.mubr.msk.f32.vlgmr.msra.gmra.mrb[28].mxu1 %vm419_vm8, %v3672_v27  ;;  %v5375_v35 = vmul.f32 %v3672_v27, %v2787_v30 }
0x21ca   :  { %v5377_v31 = vadd.f32 %v2797_v5, %v2796_v12 }
0x2214   :  { %v3282_v22 = vpop.f32.mrb[36].mxu0 }
0x2215   :  { %v4068_v41 = vpop.f32.mrb[37].mxu0  ;;  %4310 = vlog2.f32 %v3282_v22 }
0x221f   :  { %v4311_v14 = vpop.eup %4310 }
0x2220   :  { %v3287_v48 = vmul.f32 0.6931472, %v4311_v14 }
0x2222   :  { %v3288_v33 = vadd.f32 %v3287_v48, %v3209_v38  ;;  %v3681_v38 = vld [vmem:[%s5486_s2 + $0x38] sm:$0xff]  ;;  %s4353_s2 = smov [#allocation2]  }
0x2223   :  { %s3590_s25 = sshll.u32 %s4353_s2, 4  ;;  %s3591_s25 = int_to_ptr.vmem [resolvable:$true] %s3590_s25 }
0x2224   :  { %v3289_v7 = vadd.f32 %v3288_v33, %v5289_v18  ;;  %v5540_v33 = vld [vmem:[#allocation13_spill] sm:$0xff]  ;;  %s4319_s26 = scalar_lea.vmem %s3591_s25, 16  ;;  %s4323_s10 = scalar_lea.vmem %s3591_s25, 32 }
0x2225   :  { %p4320_p0 = scmp.ne.s32.totalorder %s3591_s25, %s4319_s26  ;;  %p4324_p1 = scmp.lt.s32.totalorder %s3591_s25, %s3591_s25 }
0x2226   :  { %v3290_v10 = vmul.f32 %v3289_v7, %v5205_v29  ;;  %v5541_v7 = vld [vmem:[#allocation15_spill] sm:$0xff]  ;;  %p4325_p2 = scmp.lt.s32.totalorder %s4323_s10, %s4319_s26 }
0x2228   :  { %v3292_v37 = vadd.f32 %v3291_v62, %v3290_v10  ;;  %v3205_v10 = vmul.f32 %v5291_v13, %v5377_v31  ;;  %p4326_p3 = por %p4325_p2, %p4324_p1 }
0x222a   :  { %v3346_v52 = vadd.f32 %v5299_v53, %v3292_v37  ;;  %p4327_p4 = pnand %p4326_p3, %p4320_p0 }
0x222c   :  { %v3347_v21 = vsel %vm419_vm8, %v3346_v52, -inf }
0x2243   :  { %v5379_v36 = vpop.permute.xlu1 %3527 }
0x2244   :  { %vm3530_vm14 = vcmp.eq.s32.totalorder %v4632_v8, %v5379_v36 }
0x2245   :  { %v3531_v3 = vsel %vm3530_vm14, %v5139_v45, 0 }
0x2246   :  { %v3532_v28 = vsel %vm419_vm8, %v3531_v3, 2147483648 }
0x2247   :  { %v3534_v49 = vshra.s32 %v3532_v28, 16  ;;  %v3533_v44 = vand.u32 65535, %v3532_v28 }
0x2249   :  { %v3536_v19 = vcvt.s32.f32 %v3534_v49  ;;  %v3535_v23 = vcvt.s32.f32 %v3533_v44  ;;  %v700_v49 = vadd.f32 %v4789_v56, %v4820_v4  ;;  %v5539_v4 = vld [vmem:[#allocation10_spill] sm:$0xff]  ;;  %v2791_v44 = vsel %vm419_vm8, %v5375_v35, 0.0 }
0x224b   :  { %3537 = vmax.xlane.f32.xlu1 %v3536_v19 }
0x229b   :  { %v3188_v40 = vpop.f32.mrb[28].mxu1 }
0x229c   :  { %v4063_v6 = vpop.f32.mrb[29].mxu1  ;;  %v3189_v27 = vadd.f32 %v3188_v40, %v5289_v18  ;;  %v418_v18 = vmul.f32 %v4753_v58, %v4683_v47  ;;  %v5538_v47 = vld [vmem:[#allocation11_spill] sm:$0xff] }
0x229d   :  { %v1961_v58 = vadd.f32 %v5538_v47, %v5078_v63  ;;  %v2378_v63 = vsel %vm419_vm8, %v5541_v7, 0.0 }
0x229e   :  { %v420_v40 = vsel %vm419_vm8, %v418_v18, 0.0 }
0x22d8   :  { %v3538_v45 = vpop.xlane.xlu1 %3537 }
0x22d9   :  { %vm3539_vm15 = vcmp.eq.f32.partialorder %v3536_v19, %v3538_v45  ;;  %v3544_v39 = vcvt.f32.s32 %v3538_v45  ;;  %v1135_v19 = vadd.f32 %v4652_v24, %v4859_v46 }
0x22da   :  { %v3540_v20 = vsel %vm3539_vm15, %v3535_v23, -inf }
0x22db   :  { %3541 = vmax.xlane.f32.xlu0 %v3540_v20  ;;  %v3545_v26 = vshll.u32 %v3544_v39, 16  ;;  %v1138_v14 = vmul.f32 %v4702_v60, %v1135_v19  ;;  %v5546_v19 = vld [vmem:[#allocation12_spill] sm:$0xff] }
0x22df   :  { %3348 = vmax.xlane.f32.xlu0 %v3347_v21 }
0x22f5   :  { %3114 = vperm.xlu0 %4216, %v3681_v38  }
0x2368   :  { %v3542_v17 = vpop.xlane.xlu0 %3541 }
0x2369   :  { %v3543_v43 = vcvt.f32.s32 %v3542_v17 }
0x236b   :  { %v3546_v34 = vadd.s32 %v3545_v26, %v3543_v43 }
0x236c   :  { %v5399_v54 = vpop.xlane.xlu0 %3348 }
0x236d   :  { %v3549_v1 = vsel %vm3548_vm0, %v3546_v34, %v3524_v16  ;;  %v3350_v56 = vsub.f32 %v3346_v52, %v5399_v54 }
0x236e   :  { %v5396_v42 = vsel %vm3547_vm2, %v5309_v51, %v3549_v1  ;;  %v5542_v1 = vld [vmem:[#allocation6_spill] sm:$0xff] }
0x236f   :  { %3553 = vperm.xlu1 %4217, %v5396_v42   ;;  %v3351_v46 = vmul.f32 1.442695, %v3350_v56  ;;  %v5547_v56 = vld [vmem:[#allocation14_spill] sm:$0xff] }
0x2371   :  { %4312 = vpow2.f32 %v3351_v46 }
0x2374   :  { %v3115_v30 = vpop.permute.xlu0 %3114 }
0x2375   :  { %vm3116_vm4 = vcmp.eq.s32.totalorder %v4632_v8, %v3115_v30 }
0x2376   :  { %v3682_v5 = vsel %vm3116_vm4, 1.0, %v5530_v50  ;;  %v703_v50 = vmul.f32 %v4636_v11, %v700_v49  ;;  %v1139_v11 = vsel %vm419_vm8, %v1138_v14, 0.0 }
0x2377   :  { %v3192_v12 = vmul.f32 %v3682_v5, %v3189_v27  ;;  %v5543_v27 = vld [vmem:[#allocation7_spill] sm:$0xff] }
0x2378   :  { %v704_v6 = vsel %vm419_vm8, %v703_v50, 0.0 }
0x2379   :  { %v3193_v13 = vsel %vm419_vm8, %v3192_v12, 0.0  ;;  %v5545_v12 = vld [vmem:[#allocation9_spill] sm:$0xff] }
0x237b   :  { %v4313_v37 = vpop.eup %4312 }
0x237c   :  { %v3353_v45 = vsel %vm419_vm8, %v4313_v37, 0.0  ;;  %v5548_v37 = vld [vmem:[#allocation5_spill] sm:$0xff] }
0x23ee   :  { %v5404_v22 = vpop.permute.xlu1 %3553 }
0x23ef   :  { %vm3556_vm5 = vcmp.eq.s32.totalorder %v4632_v8, %v5404_v22 }
0x23f0   :  { %v3557_v16 = vsel %vm3556_vm5, %v5110_v15, 0  ;;  %v1548_v15 = vadd.f32 %v4723_v25, %v4928_v55  ;;  %v1964_v25 = vmul.f32 %v5540_v33, %v1961_v58  ;;  %v3198_v55 = vmul.f32 %v3682_v5, %v5205_v29 }
0x23f1   :  { %v3558_v41 = vsel %vm419_vm8, %v3557_v16, 2147483648 }
0x23f2   :  { %v3560_v3 = vshra.s32 %v3558_v41, 16  ;;  %v1551_v24 = vmul.f32 %v5539_v4, %v1548_v15  ;;  %v1965_v60 = vsel %vm419_vm8, %v1964_v25, 0.0  ;;  %v3206_v62 = vadd.f32 %v3205_v10, %v3198_v55 }
0x23f3   :  { %v3559_v20 = vand.u32 65535, %v3558_v41  ;;  %v5544_v41 = vld [vmem:[#allocation8_spill] sm:$0xff] }
0x23f4   :  { %v3562_v28 = vcvt.s32.f32 %v3560_v3  ;;  %v1552_v48 = vsel %vm419_vm8, %v1551_v24, 0.0  ;;  %v3341_v23 = vmul.f32 %v5299_v53, %v3206_v62 }
0x23f5   :  { %v3561_v21 = vcvt.s32.f32 %v3559_v20 }
0x23f6   :  { %3563 = vmax.xlane.f32.xlu1 %v3562_v28  ;;  %v3342_v29 = vsel %vm419_vm8, %v3341_v23, 0.0  ;;  %vm3574_vm8 = vcmp.gt.s32.totalorder %v5306_v61, 0 }
0x23fa   :  { %421 = vadd.xlane.f32.xlu1 %v420_v40 }
0x23fe   :  { %705 = vadd.xlane.f32.xlu1 %v704_v6 }
0x2402   :  { %1140 = vadd.xlane.f32.xlu1 %v1139_v11 }
0x2406   :  { %1553 = vadd.xlane.f32.xlu1 %v1552_v48 }
0x240a   :  { %1966 = vadd.xlane.f32.xlu1 %v1965_v60 }
0x240e   :  { %2379 = vadd.xlane.f32.xlu1 %v2378_v63 }
0x2412   :  { %2792 = vadd.xlane.f32.xlu1 %v2791_v44 }
0x2416   :  { %3354 = vadd.xlane.f32.xlu1 %v3353_v45 }
0x241a   :  { %3343 = vadd.xlane.f32.xlu1 %v3342_v29 }
0x2483   :  { %v3564_v52 = vpop.xlane.xlu1 %3563 }
0x2484   :  { %vm3565_vm7 = vcmp.eq.f32.partialorder %v3562_v28, %v3564_v52  ;;  %v3570_v28 = vcvt.f32.s32 %v3564_v52 }
0x2485   :  { %v3566_v38 = vsel %vm3565_vm7, %v3561_v21, -inf }
0x2486   :  { %3567 = vmax.xlane.f32.xlu0 %v3566_v38  ;;  %v3571_v6 = vshll.u32 %v3570_v28, 16 }
0x2487   :  { %v422_v35 = vpop.xlane.xlu1 %421 }
0x248a   :  { %3194 = vadd.xlane.f32.xlu0 %v3193_v13 }
0x248b   :  { %v706_v31 = vpop.xlane.xlu1 %705 }
0x248c   :  { %v707_v30 = vmul.f32 %v5542_v1, %v706_v31 }
0x248e   :  { %v708_v16 = vadd.f32 %v707_v30, %v422_v35 }
0x248f   :  { %v1141_v39 = vpop.xlane.xlu1 %1140 }
0x2490   :  { %v1142_v5 = vmul.f32 %v5543_v27, %v1141_v39 }
0x2492   :  { %v1143_v49 = vadd.f32 %v1142_v5, %v708_v16 }
0x2493   :  { %v1554_v17 = vpop.xlane.xlu1 %1553 }
0x2494   :  { %v1555_v3 = vmul.f32 %v5544_v41, %v1554_v17 }
0x2496   :  { %v1556_v50 = vadd.f32 %v1555_v3, %v1143_v49 }
0x2497   :  { %v1967_v26 = vpop.xlane.xlu1 %1966 }
0x2498   :  { %v1968_v18 = vmul.f32 %v5545_v12, %v1967_v26 }
0x249a   :  { %v1969_v14 = vadd.f32 %v1968_v18, %v1556_v50 }
0x249b   :  { %v2380_v43 = vpop.xlane.xlu1 %2379 }
0x249c   :  { %v2381_v40 = vmul.f32 %v5546_v19, %v2380_v43 }
0x249e   :  { %v2382_v4 = vadd.f32 %v2381_v40, %v1969_v14 }
0x249f   :  { %v2793_v53 = vpop.xlane.xlu1 %2792 }
0x24a0   :  { %v2794_v47 = vmul.f32 %v5547_v56, %v2793_v53 }
0x24a2   :  { %v2795_v48 = vadd.f32 %v2794_v47, %v2382_v4 }
0x24a3   :  { %v3355_v34 = vpop.xlane.xlu1 %3354 }
0x24a4   :  { %4314 = vlog2.f32 %v3355_v34 }
0x24a7   :  { %v3344_v63 = vpop.xlane.xlu1 %3343 }
0x24ae   :  { %v4315_v11 = vpop.eup %4314 }
0x24af   :  { %v3357_v33 = vmul.f32 0.6931472, %v4315_v11 }
0x24b1   :  { %v3358_v10 = vadd.f32 %v3357_v33, %v5399_v54 }
0x2513   :  { %v3568_v15 = vpop.xlane.xlu0 %3567 }
0x2514   :  { %v3569_v58 = vcvt.f32.s32 %v3568_v15 }
0x2516   :  { %v3572_v24 = vadd.s32 %v3571_v6, %v3569_v58 }
0x2517   :  { %v3195_v46 = vpop.xlane.xlu0 %3194 }
0x2518   :  { %v3196_v25 = vmul.f32 %v5159_v57, %v3195_v46  ;;  %v3575_v60 = vsel %vm3574_vm8, %v3572_v24, %v5396_v42 }
0x2519   :  { %v3576_v55 = vsel %vm3573_vm9, %v5309_v51, %v3575_v60 }
0x251a   :  { %v3197_v7 = vadd.f32 %v3196_v25, %v2795_v48  ;;  %3579 = vperm.xlu0 %4216, %v3576_v55  }
0x251c   :  { %v3345_v62 = vadd.f32 %v3344_v63, %v3197_v7 }
0x251e   :  { %v3359_v44 = vsub.f32 %v3345_v62, %v3358_v10 }
0x2520   :  { %v3360_v45 = vmul.f32 %v5548_v37, %v3359_v44 }
0x2522   :  { %v3362_v61 = vsel %vm3361_vm10, %v3360_v45, 0.0 }
0x2523   :  { %v3363_v23 = vrot.slane %v3362_v61, 4 }
0x2525   :  { %v3364_v29 = vadd.f32 %v3363_v23, %v3362_v61 }
0x2527   :  { %v3365_v20 = vrot.slane %v3364_v29, 2 }
0x2529   :  { %v3366_v52 = vadd.f32 %v3365_v20, %v3364_v29 }
0x252b   :  { %v3367_v57 = vrot.slane %v3366_v52, 1 }
0x252d   :  { %v3368_v51 = vadd.f32 %v3367_v57, %v3366_v52 }
0x252f   :  { %3370 = vst.msk [vmem:[#allocation2] sm:$0x1] %vm3369_vm11, %v3368_v51 }
0x2530   :  { %4330 = shalt.err (!%p4327_p4)
}
0x2531   :  { %s4331_s29 = scalar_lea.hbm %s5495_s11, 16 }
0x2532   :  { %p4332_p5 = scmp.ne.s32.totalorder %s5495_s11, %s4331_s29  ;;  %p4335_p6 = scmp.lt.u32.totalorder %s4331_s29, %s5495_s11 }
0x2534   :  { %p4337_p7 = pnand %p4335_p6, %p4332_p5 }
0x2536   :  { %4340 = shalt.err (!%p4337_p7)
}
0x2537   :  { %3593 = dma.vmem_to_hbm [thread:$0]  %s3591_s25, 16, %s5495_s11, [#allocation3]   ;;  %vm3395_vm3 = vcmp.eq.s32.totalorder %v4632_v8, 7  ;;  %vm3421_vm1 = vcmp.eq.s32.totalorder %v4632_v8, 6  ;;  %vm3447_vm6 = vcmp.eq.s32.totalorder %v4632_v8, 5  ;;  %vm3473_vm12 = vcmp.eq.s32.totalorder %v4632_v8, 4 }
0x2538   :  { %v3399_v42 = vsel %vm3395_vm3, %v5312_v2, 0  ;;  %vm3499_vm13 = vcmp.eq.s32.totalorder %v4632_v8, 3  ;;  %vm3525_vm14 = vcmp.eq.s32.totalorder %v4632_v8, 2  ;;  %vm3551_vm15 = vcmp.eq.s32.totalorder %v4632_v8, 1 }
0x2539   :  { %v3425_v54 = vsel %vm3421_vm1, %v5320_v59, %v3399_v42  ;;  %vm3577_vm0 = vcmp.eq.s32.totalorder %v4632_v8, 0  ;;  %vm3582_vm2 = vcmask 64512  }
0x253a   :  { %v3451_v21 = vsel %vm3447_vm6, %v5329_v0, %v3425_v54 }
0x253b   :  { %v3477_v38 = vsel %vm3473_vm12, %v5338_v32, %v3451_v21 }
0x253c   :  { %v3503_v13 = vsel %vm3499_vm13, %v5350_v9, %v3477_v38 }
0x253d   :  { %v3529_v2 = vsel %vm3525_vm14, %v5379_v36, %v3503_v13 }
0x253e   :  { %v3555_v35 = vsel %vm3551_vm15, %v5404_v22, %v3529_v2 }
0x2599   :  { %v3580_v59 = vpop.permute.xlu0 %3579 }
0x259a   :  { %v3581_v31 = vsel %vm3577_vm0, %v3580_v59, %v3555_v35 }
0x259b   :  { %3583 = vst.msk [vmem:[%s5496_s12] sm:$0xff] %vm3582_vm2, %v3581_v31 }
0x259c   :  { %4341 = dma.done.wait [#allocation3], 16  }
0x259d   :  { %4342 = vsyncadd [#allocation3], 4294967280 }
0x259e   :  { %3601 = vsyncpa [#allocation3], 1 }

</bundles_post_ra>
